<compile_context>
chip_gen: v7x
topology: tpu7x:2x2x1
jax: 0.10.0
libtpu: 0.0.40
codegen_flags: <defaults>
</compile_context>

<pallas_src>
import functools

import numpy as np
import jax
import jax.numpy as jnp
from jax.experimental import pallas as pl
from jax.experimental.pallas import tpu as pltpu


# ----------------------------------------------------------------------------
# In-kernel helpers
# ----------------------------------------------------------------------------
def _build_im2col(pad_ref, col_ref, act_hw, H, W, P):
    """Write activation (H, W, P) f32 into the zero-padded scratch (border stays 0)
    and pack the 9 shifted taps into the (H*W, 9*P) bf16 im2col buffer."""
    pad_ref[1:H + 1, 1:W + 1, :] = act_hw
    for t in range(9):                                   # unrolled at trace time
        kh, kw = divmod(t, 3)
        tap = pad_ref[kh:kh + H, kw:kw + W, :]           # shifted neighbor view (H, W, P)
        col_ref[:, t * P:(t + 1) * P] = tap.reshape(H * W, P).astype(jnp.bfloat16)


def _conv_stack(x_ref, w1_ref, b1_ref, w2_ref, b2_ref, pad_ref, col_ref, H, W):
    """ReLU -> SNConv3x3 -> ReLU -> SNConv3x3 on the current image. Returns (H*W, P) f32."""
    P = x_ref.shape[-1]
    pad_ref[...] = jnp.zeros_like(pad_ref)               # zero halo once per grid step
    x = x_ref[0]                                         # (H, W, P) f32

    _build_im2col(pad_ref, col_ref, jnp.maximum(x, 0.0), H, W, P)
    y1 = jnp.dot(col_ref[...], w1_ref[...],
                 preferred_element_type=jnp.float32) + b1_ref[...]

    _build_im2col(pad_ref, col_ref, jnp.maximum(y1, 0.0).reshape(H, W, P), H, W, P)
    y2 = jnp.dot(col_ref[...], w2_ref[...],
                 preferred_element_type=jnp.float32) + b2_ref[...]
    return y2                                            # (H*W, P) f32


def _avgpool2x2(y_flat, hs_ref, H, W):
    """AvgPool2d(2, stride=2) on a flattened (H*W, P) f32 image -> (H//2 * W//2, P) f32."""
    P = y_flat.shape[-1]
    Ho, Wo = H // 2, W // 2
    # vertical pair-sum: rows h=2ho and h=2ho+1 are adjacent (W, P) slabs (outer-dim split).
    y4 = y_flat.reshape(Ho, 2, W, P)
    vsum = y4[:, 0, :, :] + y4[:, 1, :, :]               # (Ho, W, P)
    # horizontal pair-sum: columns w=2wo, 2wo+1 are adjacent rows of the (Ho*W, P) view;
    # read them with sublane-strided ref slices (pl.ds stride=2) on the VPU.
    hs_ref[...] = vsum.reshape(Ho * W, P)
    hsum = (hs_ref[pl.ds(0, Ho * Wo, 2), :] +
            hs_ref[pl.ds(1, Ho * Wo, 2), :])             # (Ho*Wo, P)
    return 0.25 * hsum


# ----------------------------------------------------------------------------
# Pallas kernels
# ----------------------------------------------------------------------------
def _resblock_kernel_s1(x_ref, w1_ref, b1_ref, w2_ref, b2_ref, o_ref,
                        pad_ref, col_ref, *, H, W):
    # stride == 1: ReLU -> SNConv3x3 -> ReLU -> SNConv3x3 (no bypass add, per PyTorch forward)
    P = x_ref.shape[-1]
    y2 = _conv_stack(x_ref, w1_ref, b1_ref, w2_ref, b2_ref, pad_ref, col_ref, H, W)
    o_ref[0] = y2.reshape(H, W, P)


def _resblock_kernel_s2(x_ref, w1_ref, b1_ref, w2_ref, b2_ref, wb_ref, bb_ref,
                        o_ref, pad_ref, col_ref, hs_ref, *, H, W):
    # stride == 2: AvgPool(conv stack) + AvgPool(SN 1x1 bypass conv on raw x)
    P = x_ref.shape[-1]
    N = H * W
    y2 = _conv_stack(x_ref, w1_ref, b1_ref, w2_ref, b2_ref, pad_ref, col_ref, H, W)

    xb = x_ref[0].reshape(N, P).astype(jnp.bfloat16)     # bypass sees raw x (no ReLU)
    byp = jnp.dot(xb, wb_ref[...],
                  preferred_element_type=jnp.float32) + bb_ref[...]

    main_p = _avgpool2x2(y2, hs_ref, H, W)               # (No, P)
    byp_p = _avgpool2x2(byp, hs_ref, H, W)
    o_ref[0] = (main_p + byp_p).reshape(H // 2, W // 2, P)


# ----------------------------------------------------------------------------
# Parameter preprocessing (plain JAX glue)
# ----------------------------------------------------------------------------
def _l2n(v, eps=1e-12):
    return v / (jnp.linalg.norm(v) + eps)


def spectral_norm_weight(w, n_iter=3):
    """w / sigma_max(w.reshape(Cout, -1)) via deterministic power iteration."""
    # TODO(synk): PyTorch's SpectralNorm keeps the power-iteration vector `u` as a persistent
    # buffer across forward calls; here it is recomputed from a fixed start every call
    # (the in-file reference uses the identical procedure).
    wm = w.reshape(w.shape[0], -1)
    u = _l2n(jnp.ones((wm.shape[0],), jnp.float32))
    v = None
    for _ in range(n_iter):
        v = _l2n(wm.T @ u)
        u = _l2n(wm @ v)
    sigma = u @ (wm @ v)
    return w / sigma


def _pack_conv3x3_weight(w, P):
    """(Cout, Cin, 3, 3) -> lane-padded (9*P, P) bf16 im2col weight; row = t*P + ci, t = kh*3+kw."""
    cout, cin = w.shape[0], w.shape[1]
    wt = jnp.transpose(w, (2, 3, 1, 0)).reshape(9, cin, cout)
    wp = jnp.zeros((9, P, P), jnp.float32).at[:, :cin, :cout].set(wt)
    return wp.reshape(9 * P, P).astype(jnp.bfloat16)


def _pack_conv1x1_weight(w, P):
    cout, cin = w.shape[0], w.shape[1]
    wp = jnp.zeros((P, P), jnp.float32).at[:cin, :cout].set(w[:, :, 0, 0].T)
    return wp.astype(jnp.bfloat16)


def _pack_bias(b, P):
    return jnp.zeros((1, P), jnp.float32).at[0, :b.shape[0]].set(b)


# ----------------------------------------------------------------------------
# Forward wrapper
# ----------------------------------------------------------------------------
def resblock_discriminator(x_nchw, params, stride=1):
    assert stride in (1, 2), "only stride 1 and 2 are supported"
    B, Cin, H, W = x_nchw.shape
    Cout = params["w1"].shape[0]
    assert H % 2 == 0 and W % 2 == 0
    N = H * W
    P = 128 * ((max(Cin, Cout) + 127) // 128)            # lane-dense channel padding

    w1c = _pack_conv3x3_weight(spectral_norm_weight(params["w1"]), P)
    w2c = _pack_conv3x3_weight(spectral_norm_weight(params["w2"]), P)
    b1 = _pack_bias(params["b1"], P)
    b2 = _pack_bias(params["b2"], P)

    x_nhwc = jnp.transpose(x_nchw, (0, 2, 3, 1)).astype(jnp.float32)
    x_pad = jnp.zeros((B, H, W, P), jnp.float32).at[..., :Cin].set(x_nhwc)

    x_spec = pl.BlockSpec((1, H, W, P), lambda b: (b, 0, 0, 0))
    w_spec = pl.BlockSpec((9 * P, P), lambda b: (0, 0))
    b_spec = pl.BlockSpec((1, P), lambda b: (0, 0))
    cparams = pltpu.CompilerParams(dimension_semantics=("parallel",))

    base_scratch = [
        pltpu.VMEM((H + 2, W + 2, P), jnp.float32),       # zero-padded activation
        pltpu.VMEM((N, 9 * P), jnp.bfloat16),             # im2col buffer
    ]

    if stride == 1:
        out = pl.pallas_call(
            functools.partial(_resblock_kernel_s1, H=H, W=W),
            out_shape=jax.ShapeDtypeStruct((B, H, W, P), jnp.float32),
            grid=(B,),
            in_specs=[x_spec, w_spec, b_spec, w_spec, b_spec],
            out_specs=pl.BlockSpec((1, H, W, P), lambda b: (b, 0, 0, 0)),
            scratch_shapes=base_scratch,
            compiler_params=cparams,
        )(x_pad, w1c, b1, w2c, b2)
        Ho, Wo = H, W
    else:
        wbc = _pack_conv1x1_weight(spectral_norm_weight(params["wb"]), P)
        bb = _pack_bias(params["bb"], P)
        Ho, Wo = H // 2, W // 2
        out = pl.pallas_call(
            functools.partial(_resblock_kernel_s2, H=H, W=W),
            out_shape=jax.ShapeDtypeStruct((B, Ho, Wo, P), jnp.float32),
            grid=(B,),
            in_specs=[x_spec, w_spec, b_spec, w_spec, b_spec,
                      pl.BlockSpec((P, P), lambda b: (0, 0)), b_spec],
            out_specs=pl.BlockSpec((1, Ho, Wo, P), lambda b: (b, 0, 0, 0)),
            scratch_shapes=base_scratch + [pltpu.VMEM((Ho * W, P), jnp.float32)],
            compiler_params=cparams,
        )(x_pad, w1c, b1, w2c, b2, wbc, bb)

    out = out[..., :Cout]                                 # drop lane padding
    return jnp.transpose(out, (0, 3, 1, 2))               # NHWC -> NCHW


# ----------------------------------------------------------------------------
# Pure-JAX reference (mirrors the PyTorch forward) for a correctness check
# ----------------------------------------------------------------------------
def _conv_nchw(x, w, b, pad):
    y = jax.lax.conv_general_dilated(
        x, w, window_strides=(1, 1), padding=[(pad, pad), (pad, pad)],
        dimension_numbers=("NCHW", "OIHW", "NCHW"))
    return y + b[None, :, None, None]


def _avgpool2(x):
    B, C, H, W = x.shape
    return x.reshape(B, C, H // 2, 2, W // 2, 2).mean(axis=(3, 5))


def reference_forward(x, params, stride):
    w1 = spectral_norm_weight(params["w1"])
    w2 = spectral_norm_weight(params["w2"])
    h = jnp.maximum(x, 0.0)
    y1 = _conv_nchw(h, w1, params["b1"], 1)
    h2 = jnp.maximum(y1, 0.0)
    y2 = _conv_nchw(h2, w2, params["b2"], 1)
    if stride == 1:
        return y2
    wb = spectral_norm_weight(params["wb"])
    byp = _conv_nchw(x, wb, params["bb"], 0)
    return _avgpool2(y2) + _avgpool2(byp)


# ----------------------------------------------------------------------------
# Deterministic parameter construction (shapes from the PyTorch __init__)
# ----------------------------------------------------------------------------
def xavier_uniform(key, shape, gain):
    fan_out = shape[0] * shape[2] * shape[3]
    fan_in = shape[1] * shape[2] * shape[3]
    limit = gain * np.sqrt(6.0 / (fan_in + fan_out))
    return jax.random.uniform(key, shape, jnp.float32, -limit, limit)


def bias_init(key, cout, fan_in):
    limit = 1.0 / np.sqrt(fan_in)
    return jax.random.uniform(key, (cout,), jnp.float32, -limit, limit)


if __name__ == "__main__":
    B, Cin, Cout, H, W = 2, 4, 8, 16, 16

    key = jax.random.PRNGKey(0)
    ks = jax.random.split(key, 7)
    x = jax.random.normal(ks[0], (B, Cin, H, W), jnp.float32)

    params = {
        "w1": xavier_uniform(ks[1], (Cout, Cin, 3, 3), 1.0),
        "b1": bias_init(ks[2], Cout, Cin * 9),
        "w2": xavier_uniform(ks[3], (Cout, Cout, 3, 3), 1.0),
        "b2": bias_init(ks[4], Cout, Cout * 9),
        "wb": xavier_uniform(ks[5], (Cout, Cin, 1, 1), np.sqrt(2.0)),
        "bb": bias_init(ks[6], Cout, Cin),
    }

    # stride=2 path (conv stack -> avgpool, plus SN 1x1 bypass conv -> avgpool)
    out_s2 = resblock_discriminator(x, params, stride=2)
    jax.block_until_ready(out_s2)
    ref_s2 = reference_forward(x, params, stride=2)
    np.testing.assert_allclose(np.asarray(out_s2), np.asarray(ref_s2),
                               rtol=3e-2, atol=3e-2)
    assert out_s2.shape == (B, Cout, H // 2, W // 2)

    # stride=1 path (no pooling; PyTorch forward returns model(x) only)
    out_s1 = resblock_discriminator(x, params, stride=1)
    jax.block_until_ready(out_s1)
    ref_s1 = reference_forward(x, params, stride=1)
    np.testing.assert_allclose(np.asarray(out_s1), np.asarray(ref_s1),
                               rtol=3e-2, atol=3e-2)
    assert out_s1.shape == (B, Cout, H, W)

    print("KERNEL_OK")
</pallas_src>

<mosaic_0001>
module attributes {stable_mosaic.version = 11 : i64} {
  func.func @_resblock_kernel_s2(%arg0: i32, %arg1: memref<1x16x16x128xf32, #tpu.memory_space<vmem>>, %arg2: memref<1152x128xbf16, #tpu.memory_space<vmem>>, %arg3: memref<1x128xf32, #tpu.memory_space<vmem>>, %arg4: memref<1152x128xbf16, #tpu.memory_space<vmem>>, %arg5: memref<1x128xf32, #tpu.memory_space<vmem>>, %arg6: memref<128x128xbf16, #tpu.memory_space<vmem>>, %arg7: memref<1x128xf32, #tpu.memory_space<vmem>>, %arg8: memref<1x8x8x128xf32, #tpu.memory_space<vmem>>, %arg9: memref<18x18x128xf32, #tpu.memory_space<vmem>>, %arg10: memref<256x1152xbf16, #tpu.memory_space<vmem>>, %arg11: memref<128x128xf32, #tpu.memory_space<vmem>>) attributes {dimension_semantics = [#tpu.dimension_semantics<parallel>], iteration_bounds = array<i64: 2>, scalar_prefetch = 0 : i64, scratch_operands = 3 : i64, tpu.core_type = #tpu.core_type<tc>, window_params = [{transform_indices = @transform_0, window_bounds = array<i64: 1, 16, 16, 128>}, {pipeline_mode = #tpu.pipeline_mode<synchronous>, transform_indices = @transform_1, window_bounds = array<i64: 1152, 128>}, {pipeline_mode = #tpu.pipeline_mode<synchronous>, transform_indices = @transform_2, window_bounds = array<i64: 1, 128>}, {pipeline_mode = #tpu.pipeline_mode<synchronous>, transform_indices = @transform_3, window_bounds = array<i64: 1152, 128>}, {pipeline_mode = #tpu.pipeline_mode<synchronous>, transform_indices = @transform_4, window_bounds = array<i64: 1, 128>}, {pipeline_mode = #tpu.pipeline_mode<synchronous>, transform_indices = @transform_5, window_bounds = array<i64: 128, 128>}, {pipeline_mode = #tpu.pipeline_mode<synchronous>, transform_indices = @transform_6, window_bounds = array<i64: 1, 128>}, {transform_indices = @transform_7, window_bounds = array<i64: 1, 8, 8, 128>}]} {
    %cst = arith.constant 0.000000e+00 : f32
    %0 = vector.broadcast %cst : f32 to vector<18x18x128xf32>
    %c0 = arith.constant 0 : index
    %c0_0 = arith.constant 0 : index
    %c0_1 = arith.constant 0 : index
    %1 = vector.load %arg9[%c0, %c0_0, %c0_1] : memref<18x18x128xf32, #tpu.memory_space<vmem>>, vector<18x18x128xf32>
    tpu.vector_store %arg9[%c0, %c0_0, %c0_1], %0 {strides = array<i32>} : memref<18x18x128xf32, #tpu.memory_space<vmem>>, vector<18x18x128xf32>,
    %c0_2 = arith.constant 0 : index
    %c0_3 = arith.constant 0 : index
    %c0_4 = arith.constant 0 : index
    %c0_5 = arith.constant 0 : index
    %2 = vector.load %arg1[%c0_2, %c0_3, %c0_4, %c0_5] : memref<1x16x16x128xf32, #tpu.memory_space<vmem>>, vector<1x16x16x128xf32>
    %3 = vector.shape_cast %2 : vector<1x16x16x128xf32> to vector<16x16x128xf32>
    %cst_6 = arith.constant 0.000000e+00 : f32
    %4 = vector.broadcast %cst_6 : f32 to vector<16x16x128xf32>
    %5 = arith.maximumf %3, %4 : vector<16x16x128xf32>
    %c1 = arith.constant 1 : index
    %c1_7 = arith.constant 1 : index
    %c0_8 = arith.constant 0 : index
    %6 = vector.load %arg9[%c1, %c1_7, %c0_8] : memref<18x18x128xf32, #tpu.memory_space<vmem>>, vector<16x16x128xf32>
    tpu.vector_store %arg9[%c1, %c1_7, %c0_8], %5 {strides = array<i32>} : memref<18x18x128xf32, #tpu.memory_space<vmem>>, vector<16x16x128xf32>,
    %c0_9 = arith.constant 0 : index
    %c0_10 = arith.constant 0 : index
    %c0_11 = arith.constant 0 : index
    %7 = vector.load %arg9[%c0_9, %c0_10, %c0_11] : memref<18x18x128xf32, #tpu.memory_space<vmem>>, vector<16x16x128xf32>
    %8 = vector.shape_cast %7 : vector<16x16x128xf32> to vector<256x128xf32>
    %9 = arith.truncf %8 : vector<256x128xf32> to vector<256x128xbf16>
    %c0_12 = arith.constant 0 : index
    %c0_13 = arith.constant 0 : index
    %10 = vector.load %arg10[%c0_12, %c0_13] : memref<256x1152xbf16, #tpu.memory_space<vmem>>, vector<256x128xbf16>
    tpu.vector_store %arg10[%c0_12, %c0_13], %9 {strides = array<i32>} : memref<256x1152xbf16, #tpu.memory_space<vmem>>, vector<256x128xbf16>,
    %c0_14 = arith.constant 0 : index
    %c1_15 = arith.constant 1 : index
    %c0_16 = arith.constant 0 : index
    %11 = vector.load %arg9[%c0_14, %c1_15, %c0_16] : memref<18x18x128xf32, #tpu.memory_space<vmem>>, vector<16x16x128xf32>
    %12 = vector.shape_cast %11 : vector<16x16x128xf32> to vector<256x128xf32>
    %13 = arith.truncf %12 : vector<256x128xf32> to vector<256x128xbf16>
    %c0_17 = arith.constant 0 : index
    %c128 = arith.constant 128 : index
    %14 = vector.load %arg10[%c0_17, %c128] : memref<256x1152xbf16, #tpu.memory_space<vmem>>, vector<256x128xbf16>
    tpu.vector_store %arg10[%c0_17, %c128], %13 {strides = array<i32>} : memref<256x1152xbf16, #tpu.memory_space<vmem>>, vector<256x128xbf16>,
    %c0_18 = arith.constant 0 : index
    %c2 = arith.constant 2 : index
    %c0_19 = arith.constant 0 : index
    %15 = vector.load %arg9[%c0_18, %c2, %c0_19] : memref<18x18x128xf32, #tpu.memory_space<vmem>>, vector<16x16x128xf32>
    %16 = vector.shape_cast %15 : vector<16x16x128xf32> to vector<256x128xf32>
    %17 = arith.truncf %16 : vector<256x128xf32> to vector<256x128xbf16>
    %c0_20 = arith.constant 0 : index
    %c256 = arith.constant 256 : index
    %18 = vector.load %arg10[%c0_20, %c256] : memref<256x1152xbf16, #tpu.memory_space<vmem>>, vector<256x128xbf16>
    tpu.vector_store %arg10[%c0_20, %c256], %17 {strides = array<i32>} : memref<256x1152xbf16, #tpu.memory_space<vmem>>, vector<256x128xbf16>,
    %c1_21 = arith.constant 1 : index
    %c0_22 = arith.constant 0 : index
    %c0_23 = arith.constant 0 : index
    %19 = vector.load %arg9[%c1_21, %c0_22, %c0_23] : memref<18x18x128xf32, #tpu.memory_space<vmem>>, vector<16x16x128xf32>
    %20 = vector.shape_cast %19 : vector<16x16x128xf32> to vector<256x128xf32>
    %21 = arith.truncf %20 : vector<256x128xf32> to vector<256x128xbf16>
    %c0_24 = arith.constant 0 : index
    %c384 = arith.constant 384 : index
    %22 = vector.load %arg10[%c0_24, %c384] : memref<256x1152xbf16, #tpu.memory_space<vmem>>, vector<256x128xbf16>
    tpu.vector_store %arg10[%c0_24, %c384], %21 {strides = array<i32>} : memref<256x1152xbf16, #tpu.memory_space<vmem>>, vector<256x128xbf16>,
    %c1_25 = arith.constant 1 : index
    %c1_26 = arith.constant 1 : index
    %c0_27 = arith.constant 0 : index
    %23 = vector.load %arg9[%c1_25, %c1_26, %c0_27] : memref<18x18x128xf32, #tpu.memory_space<vmem>>, vector<16x16x128xf32>
    %24 = vector.shape_cast %23 : vector<16x16x128xf32> to vector<256x128xf32>
    %25 = arith.truncf %24 : vector<256x128xf32> to vector<256x128xbf16>
    %c0_28 = arith.constant 0 : index
    %c512 = arith.constant 512 : index
    %26 = vector.load %arg10[%c0_28, %c512] : memref<256x1152xbf16, #tpu.memory_space<vmem>>, vector<256x128xbf16>
    tpu.vector_store %arg10[%c0_28, %c512], %25 {strides = array<i32>} : memref<256x1152xbf16, #tpu.memory_space<vmem>>, vector<256x128xbf16>,
    %c1_29 = arith.constant 1 : index
    %c2_30 = arith.constant 2 : index
    %c0_31 = arith.constant 0 : index
    %27 = vector.load %arg9[%c1_29, %c2_30, %c0_31] : memref<18x18x128xf32, #tpu.memory_space<vmem>>, vector<16x16x128xf32>
    %28 = vector.shape_cast %27 : vector<16x16x128xf32> to vector<256x128xf32>
    %29 = arith.truncf %28 : vector<256x128xf32> to vector<256x128xbf16>
    %c0_32 = arith.constant 0 : index
    %c640 = arith.constant 640 : index
    %30 = vector.load %arg10[%c0_32, %c640] : memref<256x1152xbf16, #tpu.memory_space<vmem>>, vector<256x128xbf16>
    tpu.vector_store %arg10[%c0_32, %c640], %29 {strides = array<i32>} : memref<256x1152xbf16, #tpu.memory_space<vmem>>, vector<256x128xbf16>,
    %c2_33 = arith.constant 2 : index
    %c0_34 = arith.constant 0 : index
    %c0_35 = arith.constant 0 : index
    %31 = vector.load %arg9[%c2_33, %c0_34, %c0_35] : memref<18x18x128xf32, #tpu.memory_space<vmem>>, vector<16x16x128xf32>
    %32 = vector.shape_cast %31 : vector<16x16x128xf32> to vector<256x128xf32>
    %33 = arith.truncf %32 : vector<256x128xf32> to vector<256x128xbf16>
    %c0_36 = arith.constant 0 : index
    %c768 = arith.constant 768 : index
    %34 = vector.load %arg10[%c0_36, %c768] : memref<256x1152xbf16, #tpu.memory_space<vmem>>, vector<256x128xbf16>
    tpu.vector_store %arg10[%c0_36, %c768], %33 {strides = array<i32>} : memref<256x1152xbf16, #tpu.memory_space<vmem>>, vector<256x128xbf16>,
    %c2_37 = arith.constant 2 : index
    %c1_38 = arith.constant 1 : index
    %c0_39 = arith.constant 0 : index
    %35 = vector.load %arg9[%c2_37, %c1_38, %c0_39] : memref<18x18x128xf32, #tpu.memory_space<vmem>>, vector<16x16x128xf32>
    %36 = vector.shape_cast %35 : vector<16x16x128xf32> to vector<256x128xf32>
    %37 = arith.truncf %36 : vector<256x128xf32> to vector<256x128xbf16>
    %c0_40 = arith.constant 0 : index
    %c896 = arith.constant 896 : index
    %38 = vector.load %arg10[%c0_40, %c896] : memref<256x1152xbf16, #tpu.memory_space<vmem>>, vector<256x128xbf16>
    tpu.vector_store %arg10[%c0_40, %c896], %37 {strides = array<i32>} : memref<256x1152xbf16, #tpu.memory_space<vmem>>, vector<256x128xbf16>,
    %c2_41 = arith.constant 2 : index
    %c2_42 = arith.constant 2 : index
    %c0_43 = arith.constant 0 : index
    %39 = vector.load %arg9[%c2_41, %c2_42, %c0_43] : memref<18x18x128xf32, #tpu.memory_space<vmem>>, vector<16x16x128xf32>
    %40 = vector.shape_cast %39 : vector<16x16x128xf32> to vector<256x128xf32>
    %41 = arith.truncf %40 : vector<256x128xf32> to vector<256x128xbf16>
    %c0_44 = arith.constant 0 : index
    %c1024 = arith.constant 1024 : index
    %42 = vector.load %arg10[%c0_44, %c1024] : memref<256x1152xbf16, #tpu.memory_space<vmem>>, vector<256x128xbf16>
    tpu.vector_store %arg10[%c0_44, %c1024], %41 {strides = array<i32>} : memref<256x1152xbf16, #tpu.memory_space<vmem>>, vector<256x128xbf16>,
    %c0_45 = arith.constant 0 : index
    %c0_46 = arith.constant 0 : index
    %43 = vector.load %arg10[%c0_45, %c0_46] : memref<256x1152xbf16, #tpu.memory_space<vmem>>, vector<256x1152xbf16>
    %c0_47 = arith.constant 0 : index
    %c0_48 = arith.constant 0 : index
    %44 = vector.load %arg2[%c0_47, %c0_48] : memref<1152x128xbf16, #tpu.memory_space<vmem>>, vector<1152x128xbf16>
    %cst_49 = arith.constant dense<0.000000e+00> : vector<256x128xf32>
    %45 = tpu.matmul %43, %44, %cst_49 {dimension_numbers = #tpu.dot_dimension_numbers<[1], [0], [0], [1], [0, 0, 1, 1], [], []>} : vector<256x1152xbf16>, vector<1152x128xbf16>, vector<256x128xf32> -> vector<256x128xf32>
    %c0_50 = arith.constant 0 : index
    %c0_51 = arith.constant 0 : index
    %46 = vector.load %arg3[%c0_50, %c0_51] : memref<1x128xf32, #tpu.memory_space<vmem>>, vector<1x128xf32>
    %47 = vector.broadcast %46 : vector<1x128xf32> to vector<256x128xf32>
    %48 = arith.addf %45, %47 : vector<256x128xf32>
    %cst_52 = arith.constant 0.000000e+00 : f32
    %49 = vector.broadcast %cst_52 : f32 to vector<256x128xf32>
    %50 = arith.maximumf %48, %49 : vector<256x128xf32>
    %51 = vector.shape_cast %50 : vector<256x128xf32> to vector<16x16x128xf32>
    %c1_53 = arith.constant 1 : index
    %c1_54 = arith.constant 1 : index
    %c0_55 = arith.constant 0 : index
    %52 = vector.load %arg9[%c1_53, %c1_54, %c0_55] : memref<18x18x128xf32, #tpu.memory_space<vmem>>, vector<16x16x128xf32>
    tpu.vector_store %arg9[%c1_53, %c1_54, %c0_55], %51 {strides = array<i32>} : memref<18x18x128xf32, #tpu.memory_space<vmem>>, vector<16x16x128xf32>,
    %c0_56 = arith.constant 0 : index
    %c0_57 = arith.constant 0 : index
    %c0_58 = arith.constant 0 : index
    %53 = vector.load %arg9[%c0_56, %c0_57, %c0_58] : memref<18x18x128xf32, #tpu.memory_space<vmem>>, vector<16x16x128xf32>
    %54 = vector.shape_cast %53 : vector<16x16x128xf32> to vector<256x128xf32>
    %55 = arith.truncf %54 : vector<256x128xf32> to vector<256x128xbf16>
    %c0_59 = arith.constant 0 : index
    %c0_60 = arith.constant 0 : index
    %56 = vector.load %arg10[%c0_59, %c0_60] : memref<256x1152xbf16, #tpu.memory_space<vmem>>, vector<256x128xbf16>
    tpu.vector_store %arg10[%c0_59, %c0_60], %55 {strides = array<i32>} : memref<256x1152xbf16, #tpu.memory_space<vmem>>, vector<256x128xbf16>,
    %c0_61 = arith.constant 0 : index
    %c1_62 = arith.constant 1 : index
    %c0_63 = arith.constant 0 : index
    %57 = vector.load %arg9[%c0_61, %c1_62, %c0_63] : memref<18x18x128xf32, #tpu.memory_space<vmem>>, vector<16x16x128xf32>
    %58 = vector.shape_cast %57 : vector<16x16x128xf32> to vector<256x128xf32>
    %59 = arith.truncf %58 : vector<256x128xf32> to vector<256x128xbf16>
    %c0_64 = arith.constant 0 : index
    %c128_65 = arith.constant 128 : index
    %60 = vector.load %arg10[%c0_64, %c128_65] : memref<256x1152xbf16, #tpu.memory_space<vmem>>, vector<256x128xbf16>
    tpu.vector_store %arg10[%c0_64, %c128_65], %59 {strides = array<i32>} : memref<256x1152xbf16, #tpu.memory_space<vmem>>, vector<256x128xbf16>,
    %c0_66 = arith.constant 0 : index
    %c2_67 = arith.constant 2 : index
    %c0_68 = arith.constant 0 : index
    %61 = vector.load %arg9[%c0_66, %c2_67, %c0_68] : memref<18x18x128xf32, #tpu.memory_space<vmem>>, vector<16x16x128xf32>
    %62 = vector.shape_cast %61 : vector<16x16x128xf32> to vector<256x128xf32>
    %63 = arith.truncf %62 : vector<256x128xf32> to vector<256x128xbf16>
    %c0_69 = arith.constant 0 : index
    %c256_70 = arith.constant 256 : index
    %64 = vector.load %arg10[%c0_69, %c256_70] : memref<256x1152xbf16, #tpu.memory_space<vmem>>, vector<256x128xbf16>
    tpu.vector_store %arg10[%c0_69, %c256_70], %63 {strides = array<i32>} : memref<256x1152xbf16, #tpu.memory_space<vmem>>, vector<256x128xbf16>,
    %c1_71 = arith.constant 1 : index
    %c0_72 = arith.constant 0 : index
    %c0_73 = arith.constant 0 : index
    %65 = vector.load %arg9[%c1_71, %c0_72, %c0_73] : memref<18x18x128xf32, #tpu.memory_space<vmem>>, vector<16x16x128xf32>
    %66 = vector.shape_cast %65 : vector<16x16x128xf32> to vector<256x128xf32>
    %67 = arith.truncf %66 : vector<256x128xf32> to vector<256x128xbf16>
    %c0_74 = arith.constant 0 : index
    %c384_75 = arith.constant 384 : index
    %68 = vector.load %arg10[%c0_74, %c384_75] : memref<256x1152xbf16, #tpu.memory_space<vmem>>, vector<256x128xbf16>
    tpu.vector_store %arg10[%c0_74, %c384_75], %67 {strides = array<i32>} : memref<256x1152xbf16, #tpu.memory_space<vmem>>, vector<256x128xbf16>,
    %c1_76 = arith.constant 1 : index
    %c1_77 = arith.constant 1 : index
    %c0_78 = arith.constant 0 : index
    %69 = vector.load %arg9[%c1_76, %c1_77, %c0_78] : memref<18x18x128xf32, #tpu.memory_space<vmem>>, vector<16x16x128xf32>
    %70 = vector.shape_cast %69 : vector<16x16x128xf32> to vector<256x128xf32>
    %71 = arith.truncf %70 : vector<256x128xf32> to vector<256x128xbf16>
    %c0_79 = arith.constant 0 : index
    %c512_80 = arith.constant 512 : index
    %72 = vector.load %arg10[%c0_79, %c512_80] : memref<256x1152xbf16, #tpu.memory_space<vmem>>, vector<256x128xbf16>
    tpu.vector_store %arg10[%c0_79, %c512_80], %71 {strides = array<i32>} : memref<256x1152xbf16, #tpu.memory_space<vmem>>, vector<256x128xbf16>,
    %c1_81 = arith.constant 1 : index
    %c2_82 = arith.constant 2 : index
    %c0_83 = arith.constant 0 : index
    %73 = vector.load %arg9[%c1_81, %c2_82, %c0_83] : memref<18x18x128xf32, #tpu.memory_space<vmem>>, vector<16x16x128xf32>
    %74 = vector.shape_cast %73 : vector<16x16x128xf32> to vector<256x128xf32>
    %75 = arith.truncf %74 : vector<256x128xf32> to vector<256x128xbf16>
    %c0_84 = arith.constant 0 : index
    %c640_85 = arith.constant 640 : index
    %76 = vector.load %arg10[%c0_84, %c640_85] : memref<256x1152xbf16, #tpu.memory_space<vmem>>, vector<256x128xbf16>
    tpu.vector_store %arg10[%c0_84, %c640_85], %75 {strides = array<i32>} : memref<256x1152xbf16, #tpu.memory_space<vmem>>, vector<256x128xbf16>,
    %c2_86 = arith.constant 2 : index
    %c0_87 = arith.constant 0 : index
    %c0_88 = arith.constant 0 : index
    %77 = vector.load %arg9[%c2_86, %c0_87, %c0_88] : memref<18x18x128xf32, #tpu.memory_space<vmem>>, vector<16x16x128xf32>
    %78 = vector.shape_cast %77 : vector<16x16x128xf32> to vector<256x128xf32>
    %79 = arith.truncf %78 : vector<256x128xf32> to vector<256x128xbf16>
    %c0_89 = arith.constant 0 : index
    %c768_90 = arith.constant 768 : index
    %80 = vector.load %arg10[%c0_89, %c768_90] : memref<256x1152xbf16, #tpu.memory_space<vmem>>, vector<256x128xbf16>
    tpu.vector_store %arg10[%c0_89, %c768_90], %79 {strides = array<i32>} : memref<256x1152xbf16, #tpu.memory_space<vmem>>, vector<256x128xbf16>,
    %c2_91 = arith.constant 2 : index
    %c1_92 = arith.constant 1 : index
    %c0_93 = arith.constant 0 : index
    %81 = vector.load %arg9[%c2_91, %c1_92, %c0_93] : memref<18x18x128xf32, #tpu.memory_space<vmem>>, vector<16x16x128xf32>
    %82 = vector.shape_cast %81 : vector<16x16x128xf32> to vector<256x128xf32>
    %83 = arith.truncf %82 : vector<256x128xf32> to vector<256x128xbf16>
    %c0_94 = arith.constant 0 : index
    %c896_95 = arith.constant 896 : index
    %84 = vector.load %arg10[%c0_94, %c896_95] : memref<256x1152xbf16, #tpu.memory_space<vmem>>, vector<256x128xbf16>
    tpu.vector_store %arg10[%c0_94, %c896_95], %83 {strides = array<i32>} : memref<256x1152xbf16, #tpu.memory_space<vmem>>, vector<256x128xbf16>,
    %c2_96 = arith.constant 2 : index
    %c2_97 = arith.constant 2 : index
    %c0_98 = arith.constant 0 : index
    %85 = vector.load %arg9[%c2_96, %c2_97, %c0_98] : memref<18x18x128xf32, #tpu.memory_space<vmem>>, vector<16x16x128xf32>
    %86 = vector.shape_cast %85 : vector<16x16x128xf32> to vector<256x128xf32>
    %87 = arith.truncf %86 : vector<256x128xf32> to vector<256x128xbf16>
    %c0_99 = arith.constant 0 : index
    %c1024_100 = arith.constant 1024 : index
    %88 = vector.load %arg10[%c0_99, %c1024_100] : memref<256x1152xbf16, #tpu.memory_space<vmem>>, vector<256x128xbf16>
    tpu.vector_store %arg10[%c0_99, %c1024_100], %87 {strides = array<i32>} : memref<256x1152xbf16, #tpu.memory_space<vmem>>, vector<256x128xbf16>,
    %c0_101 = arith.constant 0 : index
    %c0_102 = arith.constant 0 : index
    %89 = vector.load %arg10[%c0_101, %c0_102] : memref<256x1152xbf16, #tpu.memory_space<vmem>>, vector<256x1152xbf16>
    %c0_103 = arith.constant 0 : index
    %c0_104 = arith.constant 0 : index
    %90 = vector.load %arg4[%c0_103, %c0_104] : memref<1152x128xbf16, #tpu.memory_space<vmem>>, vector<1152x128xbf16>
    %cst_105 = arith.constant dense<0.000000e+00> : vector<256x128xf32>
    %91 = tpu.matmul %89, %90, %cst_105 {dimension_numbers = #tpu.dot_dimension_numbers<[1], [0], [0], [1], [0, 0, 1, 1], [], []>} : vector<256x1152xbf16>, vector<1152x128xbf16>, vector<256x128xf32> -> vector<256x128xf32>
    %c0_106 = arith.constant 0 : index
    %c0_107 = arith.constant 0 : index
    %92 = vector.load %arg5[%c0_106, %c0_107] : memref<1x128xf32, #tpu.memory_space<vmem>>, vector<1x128xf32>
    %93 = vector.broadcast %92 : vector<1x128xf32> to vector<256x128xf32>
    %94 = arith.addf %91, %93 : vector<256x128xf32>
    %c0_108 = arith.constant 0 : index
    %c0_109 = arith.constant 0 : index
    %c0_110 = arith.constant 0 : index
    %c0_111 = arith.constant 0 : index
    %95 = vector.load %arg1[%c0_108, %c0_109, %c0_110, %c0_111] : memref<1x16x16x128xf32, #tpu.memory_space<vmem>>, vector<1x16x16x128xf32>
    %96 = vector.shape_cast %95 : vector<1x16x16x128xf32> to vector<16x16x128xf32>
    %97 = vector.shape_cast %96 : vector<16x16x128xf32> to vector<256x128xf32>
    %98 = arith.truncf %97 : vector<256x128xf32> to vector<256x128xbf16>
    %c0_112 = arith.constant 0 : index
    %c0_113 = arith.constant 0 : index
    %99 = vector.load %arg6[%c0_112, %c0_113] : memref<128x128xbf16, #tpu.memory_space<vmem>>, vector<128x128xbf16>
    %cst_114 = arith.constant dense<0.000000e+00> : vector<256x128xf32>
    %100 = tpu.matmul %98, %99, %cst_114 {dimension_numbers = #tpu.dot_dimension_numbers<[1], [0], [0], [1], [0, 0, 1, 1], [], []>} : vector<256x128xbf16>, vector<128x128xbf16>, vector<256x128xf32> -> vector<256x128xf32>
    %c0_115 = arith.constant 0 : index
    %c0_116 = arith.constant 0 : index
    %101 = vector.load %arg7[%c0_115, %c0_116] : memref<1x128xf32, #tpu.memory_space<vmem>>, vector<1x128xf32>
    %102 = vector.broadcast %101 : vector<1x128xf32> to vector<256x128xf32>
    %103 = arith.addf %100, %102 : vector<256x128xf32>
    %104 = vector.shape_cast %94 : vector<256x128xf32> to vector<8x2x16x128xf32>
    %105 = vector.extract_strided_slice %104 {offsets = [0, 0, 0, 0], sizes = [8, 1, 16, 128], strides = [1, 1, 1, 1]} : vector<8x2x16x128xf32> to vector<8x1x16x128xf32>
    %106 = vector.shape_cast %105 : vector<8x1x16x128xf32> to vector<8x16x128xf32>
    %107 = vector.extract_strided_slice %104 {offsets = [0, 1, 0, 0], sizes = [8, 1, 16, 128], strides = [1, 1, 1, 1]} : vector<8x2x16x128xf32> to vector<8x1x16x128xf32>
    %108 = vector.shape_cast %107 : vector<8x1x16x128xf32> to vector<8x16x128xf32>
    %109 = arith.addf %106, %108 : vector<8x16x128xf32>
    %110 = vector.shape_cast %109 : vector<8x16x128xf32> to vector<128x128xf32>
    %c0_117 = arith.constant 0 : index
    %c0_118 = arith.constant 0 : index
    %111 = vector.load %arg11[%c0_117, %c0_118] : memref<128x128xf32, #tpu.memory_space<vmem>>, vector<128x128xf32>
    tpu.vector_store %arg11[%c0_117, %c0_118], %110 {strides = array<i32>} : memref<128x128xf32, #tpu.memory_space<vmem>>, vector<128x128xf32>,
    %c0_119 = arith.constant 0 : index
    %c0_120 = arith.constant 0 : index
    %112 = tpu.strided_load %arg11[%c0_119, %c0_120] {strides = array<i32: 2, 1>} : memref<128x128xf32, #tpu.memory_space<vmem>>, vector<64x128xf32>
    %c1_121 = arith.constant 1 : index
    %c0_122 = arith.constant 0 : index
    %113 = tpu.strided_load %arg11[%c1_121, %c0_122] {strides = array<i32: 2, 1>} : memref<128x128xf32, #tpu.memory_space<vmem>>, vector<64x128xf32>
    %114 = arith.addf %112, %113 : vector<64x128xf32>
    %cst_123 = arith.constant 2.500000e-01 : f32
    %115 = vector.broadcast %cst_123 : f32 to vector<64x128xf32>
    %116 = arith.mulf %115, %114 : vector<64x128xf32>
    %117 = vector.shape_cast %103 : vector<256x128xf32> to vector<8x2x16x128xf32>
    %118 = vector.extract_strided_slice %117 {offsets = [0, 0, 0, 0], sizes = [8, 1, 16, 128], strides = [1, 1, 1, 1]} : vector<8x2x16x128xf32> to vector<8x1x16x128xf32>
    %119 = vector.shape_cast %118 : vector<8x1x16x128xf32> to vector<8x16x128xf32>
    %120 = vector.extract_strided_slice %117 {offsets = [0, 1, 0, 0], sizes = [8, 1, 16, 128], strides = [1, 1, 1, 1]} : vector<8x2x16x128xf32> to vector<8x1x16x128xf32>
    %121 = vector.shape_cast %120 : vector<8x1x16x128xf32> to vector<8x16x128xf32>
    %122 = arith.addf %119, %121 : vector<8x16x128xf32>
    %123 = vector.shape_cast %122 : vector<8x16x128xf32> to vector<128x128xf32>
    %c0_124 = arith.constant 0 : index
    %c0_125 = arith.constant 0 : index
    %124 = vector.load %arg11[%c0_124, %c0_125] : memref<128x128xf32, #tpu.memory_space<vmem>>, vector<128x128xf32>
    tpu.vector_store %arg11[%c0_124, %c0_125], %123 {strides = array<i32>} : memref<128x128xf32, #tpu.memory_space<vmem>>, vector<128x128xf32>,
    %c0_126 = arith.constant 0 : index
    %c0_127 = arith.constant 0 : index
    %125 = tpu.strided_load %arg11[%c0_126, %c0_127] {strides = array<i32: 2, 1>} : memref<128x128xf32, #tpu.memory_space<vmem>>, vector<64x128xf32>
    %c1_128 = arith.constant 1 : index
    %c0_129 = arith.constant 0 : index
    %126 = tpu.strided_load %arg11[%c1_128, %c0_129] {strides = array<i32: 2, 1>} : memref<128x128xf32, #tpu.memory_space<vmem>>, vector<64x128xf32>
    %127 = arith.addf %125, %126 : vector<64x128xf32>
    %cst_130 = arith.constant 2.500000e-01 : f32
    %128 = vector.broadcast %cst_130 : f32 to vector<64x128xf32>
    %129 = arith.mulf %128, %127 : vector<64x128xf32>
    %130 = arith.addf %116, %129 : vector<64x128xf32>
    %131 = vector.shape_cast %130 : vector<64x128xf32> to vector<8x8x128xf32>
    %c0_131 = arith.constant 0 : index
    %c0_132 = arith.constant 0 : index
    %c0_133 = arith.constant 0 : index
    %c0_134 = arith.constant 0 : index
    %132 = vector.load %arg8[%c0_131, %c0_132, %c0_133, %c0_134] : memref<1x8x8x128xf32, #tpu.memory_space<vmem>>, vector<1x8x8x128xf32>
    %133 = vector.shape_cast %132 : vector<1x8x8x128xf32> to vector<8x8x128xf32>
    %134 = vector.shape_cast %131 : vector<8x8x128xf32> to vector<1x8x8x128xf32>
    tpu.vector_store %arg8[%c0_131, %c0_132, %c0_133, %c0_134], %134 {strides = array<i32>} : memref<1x8x8x128xf32, #tpu.memory_space<vmem>>, vector<1x8x8x128xf32>,
    return
  }
  func.func @transform_0(%arg0: i32) -> (i32, i32, i32, i32) {
    %c0_i32 = arith.constant 0 : i32
    %c0_i32_0 = arith.constant 0 : i32
    %c0_i32_1 = arith.constant 0 : i32
    %c0_i32_2 = arith.constant 0 : i32
    return %arg0, %c0_i32, %c0_i32_0, %c0_i32_1 : i32, i32, i32, i32
  }
  func.func @transform_1(%arg0: i32) -> (i32, i32) {
    %c0_i32 = arith.constant 0 : i32
    %c0_i32_0 = arith.constant 0 : i32
    %c0_i32_1 = arith.constant 0 : i32
    return %c0_i32, %c0_i32_0 : i32, i32
  }
  func.func @transform_2(%arg0: i32) -> (i32, i32) {
    %c0_i32 = arith.constant 0 : i32
    %c0_i32_0 = arith.constant 0 : i32
    %c0_i32_1 = arith.constant 0 : i32
    return %c0_i32, %c0_i32_0 : i32, i32
  }
  func.func @transform_3(%arg0: i32) -> (i32, i32) {
    %c0_i32 = arith.constant 0 : i32
    %c0_i32_0 = arith.constant 0 : i32
    %c0_i32_1 = arith.constant 0 : i32
    return %c0_i32, %c0_i32_0 : i32, i32
  }
  func.func @transform_4(%arg0: i32) -> (i32, i32) {
    %c0_i32 = arith.constant 0 : i32
    %c0_i32_0 = arith.constant 0 : i32
    %c0_i32_1 = arith.constant 0 : i32
    return %c0_i32, %c0_i32_0 : i32, i32
  }
  func.func @transform_5(%arg0: i32) -> (i32, i32) {
    %c0_i32 = arith.constant 0 : i32
    %c0_i32_0 = arith.constant 0 : i32
    %c0_i32_1 = arith.constant 0 : i32
    return %c0_i32, %c0_i32_0 : i32, i32
  }
  func.func @transform_6(%arg0: i32) -> (i32, i32) {
    %c0_i32 = arith.constant 0 : i32
    %c0_i32_0 = arith.constant 0 : i32
    %c0_i32_1 = arith.constant 0 : i32
    return %c0_i32, %c0_i32_0 : i32, i32
  }
  func.func @transform_7(%arg0: i32) -> (i32, i32, i32, i32) {
    %c0_i32 = arith.constant 0 : i32
    %c0_i32_0 = arith.constant 0 : i32
    %c0_i32_1 = arith.constant 0 : i32
    %c0_i32_2 = arith.constant 0 : i32
    return %arg0, %c0_i32, %c0_i32_0, %c0_i32_1 : i32, i32, i32, i32
  }
}

</mosaic_0001>

<bundles_post_ra>
// kernel: tpu_custom_call.1
= control target key start
LH: loop header
LB: loop body
LE: loop exit
PB: predicated region body
PF: predicated region fallthrough
CT: control target
= control target key end

     0   :  { %12 = vsyncpa [#allocation6], 0  ;;  %s8633_s0 = inlined_call_operand.hbm [shape: f32[2,16,16,128], index: 0, kind: input, shape index: {}]   ;;  %s8634_s1 = inlined_call_operand.hbm [shape: bf16[1152,128], index: 1, kind: input, shape index: {}]   ;;  %s8635_s2 = inlined_call_operand.vmem [shape: f32[1,128], index: 2, kind: input, shape index: {}]   ;;  %s8636_s3 = inlined_call_operand.hbm [shape: bf16[1152,128], index: 3, kind: input, shape index: {}]   ;;  %s8637_s4 = inlined_call_operand.vmem [shape: f32[1,128], index: 4, kind: input, shape index: {}]   ;;  %s8638_s5 = inlined_call_operand.hbm [shape: bf16[128,128], index: 5, kind: input, shape index: {}]   ;;  %s8639_s6 = inlined_call_operand.vmem [shape: f32[1,128], index: 6, kind: input, shape index: {}]   ;;  %s8640_s7 = inlined_call_operand.hbm [shape: f32[2,8,8,128], index: 7, kind: output, shape index: {}]  }
   0x1   :  { %14 = vsyncpa [#allocation6 + $0x1], 0 }
   0x2   :  { %15 = vsyncpa [#allocation9], 0 }
   0x3   :  { %16 = vsyncpa [#allocation12], 0 }
   0x4   :  { %17 = vsyncpa [#allocation7], 0 }
   0x5   :  { %19 = vsyncpa [#allocation7 + $0x1], 0  ;;  %s7115_s24 = smov 0   ;;  %s7117_s25 = smov 0  }
   0x6   :  { %s7119_s26 = smov 0   ;;  %s7121_s27 = smov 0  }
   0x7 LB: > { %s7136_s28 = sadd.s32 4294967295, %s7060_s27   ;;  %s5329_s29 = sadd.s32 4294967294, %s7060_s27   ;;  %s7060_s27 = sphi %s7121_s27, %s8666_s27   ;;  %s7056_s26 = sphi %s7119_s26, %s8665_s26   ;;  %s7052_s25 = sphi %s7117_s25, %s8664_s25   ;;  %s7048_s24 = sphi %s7115_s24, %s8663_s24  }
   0x8   : > { %p45_p0 = scmp.ne.s32.totalorder %s7052_s25, %s7048_s24  ;;  %p8641_p1 = scmp.eq.s32.totalorder %s7136_s28, 0 }
   0x9   : > { %p201_p3 = scmp.eq.s32.totalorder %s5329_s29, 1  ;;  %p5330_p5 = scmp.ge.s32.totalorder %s7060_s27, 1 }
   0xa   : > { %p7145_p4 = por %p8641_p1, %p45_p0  ;;  %p208_p7 = scmp.lt.s32.totalorder %s7060_s27, 3 }
   0xb   : > { %p7150_p6 = por %p201_p3, %p45_p0  ;;  %s7062_s10 = smov [#allocation8]  }
   0xc   : > { %s8645_s30 = scalar_select %p7145_p4, 1, 0 }
   0xd   : > { %s8646_s8 = scalar_select %p7150_p6, 1, 0 }
   0xe   : > { %p7155_p8 = pnand %p5330_p5, %p208_p7  ;;  %s220_s11 = sshll.u32 %s7062_s10, 4  ;;  %s7159_s11 = int_to_ptr.vmem [resolvable:$true] %s220_s11 }
   0xf   : > { %8647 = sst [smem:[#allocation18_spill]] %s8646_s8  ;;  %s7063_s13 = smov [#allocation10]  }
  0x10   : > { %s8648_s9 = scalar_select %p7155_p8, 1, 0 }
  0x11   : > { %p6650_p9 = pneg %p7155_p8  ;;  %s236_s14 = sshll.u32 %s7063_s13, 4  ;;  %s7170_s14 = int_to_ptr.vmem [resolvable:$true] %s236_s14 }
  0x12   : > { %s7064_s15 = smov [#allocation11]   ;;  %s6872_s19 = scalar_lea.hbm %s8634_s1, 9216 }
  0x13   : > { %p7166_p11 = pnand %p6650_p9, %p8641_p1  ;;  %s7172_s16 = sshll.u32 %s7064_s15, 4  ;;  %s253_s16 = int_to_ptr.vmem [resolvable:$true] %s7172_s16 }
  0x14   : > { %p6873_p12 = scmp.ne.s32.totalorder %s8634_s1, %s6872_s19  ;;  %p6879_p5 = scmp.lt.u32.totalorder %s6872_s19, %s8634_s1 }
  0x15   : > { %p7182_p13 = pneg %p7166_p11 }
  0x17   : > { %p6875_p0 = pnand %p7182_p13, %p6873_p12 }
  0x19   : > { %p6876_p3 = pneg %p6875_p0 }
  0x1b   : > { %p6881_p7 = pnand %p6879_p5, %p6876_p3 }
  0x1d   : > { %6884 = shalt.err (!%p6881_p7)
}
  0x1e   : > { %s6885_s10 = scalar_lea.vmem %s7159_s11, 9216  ;;  %p6893_p2 = scmp.lt.s32.totalorder %s7159_s11, %s7159_s11 }
  0x1f   : > { %p6886_p9 = scmp.ne.s32.totalorder %s7159_s11, %s6885_s10  ;;  %p6894_p6 = scmp.lt.s32.totalorder %s6885_s10, %s6885_s10 }
  0x21   : > { %p6888_p10 = pnand %p6886_p9, %p7182_p13  ;;  %p6895_p12 = por %p6894_p6, %p6893_p2 }
  0x23   : > { %p6889_p1 = pneg %p6888_p10 }
  0x25   : > { %p6896_p0 = pnand %p6895_p12, %p6889_p1 }
  0x27   : > { %6899 = shalt.err (!%p6896_p0)
}
  0x28   : > { %s7065_s13 = smov 64   ;;  %s7066_s15 = smov 4  }
  0x29   : > { %6653 = dma.hbm_to_vmem [thread:$0]  (!%p7166_p11), %s8634_s1, 9216, %s7159_s11, [#allocation9], %s7065_s13, %s7065_s13, %s7066_s15  }
  0x2a   : > { %s6900_s21 = scalar_lea.hbm %s8636_s3, 9216 }
  0x2b   : > { %p6901_p1 = scmp.ne.s32.totalorder %s8636_s3, %s6900_s21  ;;  %p6907_p10 = scmp.lt.u32.totalorder %s6900_s21, %s8636_s3 }
  0x2d   : > { %p6903_p2 = pnand %p6901_p1, %p7182_p13 }
  0x2f   : > { %p6904_p6 = pneg %p6903_p2 }
  0x31   : > { %p6909_p3 = pnand %p6907_p10, %p6904_p6 }
  0x33   : > { %6912 = shalt.err (!%p6909_p3)
}
  0x34   : > { %s6913_s11 = scalar_lea.vmem %s7170_s14, 9216  ;;  %p6921_p12 = scmp.lt.s32.totalorder %s7170_s14, %s7170_s14 }
  0x35   : > { %p6914_p5 = scmp.ne.s32.totalorder %s7170_s14, %s6913_s11  ;;  %p6922_p0 = scmp.lt.s32.totalorder %s6913_s11, %s6913_s11 }
  0x37   : > { %p6916_p7 = pnand %p6914_p5, %p7182_p13  ;;  %p6923_p1 = por %p6922_p0, %p6921_p12 }
  0x39   : > { %p6917_p9 = pneg %p6916_p7 }
  0x3b   : > { %p6924_p2 = pnand %p6923_p1, %p6917_p9 }
  0x3d   : > { %6927 = shalt.err (!%p6924_p2)
}
  0x3e   : > { %6656 = dma.hbm_to_vmem [thread:$0]  (!%p7166_p11), %s8636_s3, 9216, %s7170_s14, [#allocation9], %s7065_s13, %s7065_s13, %s7066_s15  }
  0x3f   : > { %s6928_s20 = scalar_lea.hbm %s8638_s5, 1024 }
  0x40   : > { %p6929_p6 = scmp.ne.s32.totalorder %s8638_s5, %s6928_s20  ;;  %p6935_p5 = scmp.lt.u32.totalorder %s6928_s20, %s8638_s5 }
  0x42   : > { %p6931_p10 = pnand %p6929_p6, %p7182_p13 }
  0x44   : > { %p6932_p3 = pneg %p6931_p10 }
  0x46   : > { %p6937_p7 = pnand %p6935_p5, %p6932_p3 }
  0x48   : > { %6940 = shalt.err (!%p6937_p7)
}
  0x49   : > { %s6941_s11 = scalar_lea.vmem %s253_s16, 1024  ;;  %p6949_p1 = scmp.lt.s32.totalorder %s253_s16, %s253_s16 }
  0x4a   : > { %p6942_p9 = scmp.ne.s32.totalorder %s253_s16, %s6941_s11  ;;  %p6950_p2 = scmp.lt.s32.totalorder %s6941_s11, %s6941_s11 }
  0x4c   : > { %p6944_p12 = pnand %p6942_p9, %p7182_p13  ;;  %p6951_p4 = por %p6950_p2, %p6949_p1 }
  0x4e   : > { %p6945_p0 = pneg %p6944_p12 }
  0x50   : > { %p6952_p8 = pnand %p6951_p4, %p6945_p0 }
  0x52   : > { %6955 = shalt.err (!%p6952_p8)
}
  0x53   : > { %6659 = dma.hbm_to_vmem [thread:$0]  (!%p7166_p11), %s8638_s5, 1024, %s253_s16, [#allocation12], %s7065_s13, %s7065_s13, %s7066_s15  }
  0x54   : > { %s7255_s22 = sadd.s32 1, %s7060_s27   ;;  %s32_s17 = sadd.s32 1, %s7056_s26 }
  0x55   : > { %s29_s12 = ssub.s32 %s7060_s27, %s7255_s22  ;;  %p39_p8 = scmp.ne.s32.totalorder %s7056_s26, %s7052_s25 }
  0x56   : > { %p30_p4 = scmp.eq.s32.totalorder %s29_s12, 0  ;;  %p40_p13 = scmp.eq.s32.totalorder %s7060_s27, 0 }
  0x57   : > { %p6671_p6 = scmp.lt.s32.totalorder %s7060_s27, 2  ;;  %p8651_p3 = scmp.eq.s32.totalorder %s7136_s28, 1 }
  0x58   : > { %s7265_s18 = scalar_select %p30_p4, %s7056_s26, %s32_s17  }
  0x59   : > { %p41_p10 = por %p40_p13, %p39_p8  ;;  %p7269_p5 = por %p8651_p3, %p39_p8 }
  0x5a   : > { %s269_s20 = sand.u32 1, %s7056_s26   ;;  %s5504_s21 = sshll.u32 %s7060_s27, 12 }
  0x5b   : > { %s5335_s16 = sshll.u32 %s269_s20, 8  ;;  %s7278_s23 = scalar_lea.hbm %s8633_s0, %s5504_s21 }
  0x5c   : > { %s273_s29 = scalar_lea.vmem [#allocation5], %s5335_s16  ;;  %p7280_p11 = pnand %p6671_p6, %p41_p10 }
  0x5d   : > { %s280_s10 = sshll.u32 %s273_s29, 4  ;;  %s7286_s14 = scalar_lea.sflag [#allocation6], %s269_s20  ;;  %s7284_s10 = int_to_ptr.vmem [resolvable:$true] %s280_s10 }
  0x5e   : > { %s6956_s8 = scalar_lea.hbm %s7278_s23, 4096  ;;  %p6958_p9 = pneg %p7280_p11 }
  0x5f   : > { %p6957_p7 = scmp.ne.s32.totalorder %s7278_s23, %s6956_s8  ;;  %s6961_s21 = scalar_lea.hbm %s8633_s0, 8192 }
  0x60   : > { %p6962_p1 = scmp.lt.u32.totalorder %s7278_s23, %s8633_s0  ;;  %p6963_p2 = scmp.lt.u32.totalorder %s6961_s21, %s6956_s8 }
  0x61   : > { %p6959_p12 = pnand %p6958_p9, %p6957_p7  ;;  %p6965_p8 = scmp.lt.u32.totalorder %s6956_s8, %s7278_s23 }
  0x62   : > { %p6964_p4 = por %p6963_p2, %p6962_p1 }
  0x63   : > { %p6960_p0 = pneg %p6959_p12 }
  0x64   : > { %p6966_p13 = por %p6965_p8, %p6964_p4 }
  0x66   : > { %p6967_p6 = pnand %p6966_p13, %p6960_p0 }
  0x68   : > { %6970 = shalt.err (!%p6967_p6)
}
  0x69   : > { %s6971_s20 = scalar_lea.vmem %s7284_s10, 4096  ;;  %s7067_s15 = smov [#allocation5]  }
  0x6a   : > { %p6972_p10 = scmp.ne.s32.totalorder %s7284_s10, %s6971_s20  ;;  %s6976_s29 = sshll.u32 %s7067_s15, 4  ;;  %s6977_s29 = int_to_ptr.vmem [resolvable:$false] %s6976_s29 }
  0x6b   : > { %s6978_s12 = scalar_lea.vmem %s6977_s29, 8192  ;;  %p6979_p12 = scmp.lt.s32.totalorder %s7284_s10, %s6977_s29 }
  0x6c   : > { %p6974_p3 = pnand %p6972_p10, %p6958_p9  ;;  %p6980_p1 = scmp.lt.s32.totalorder %s6978_s12, %s6971_s20 }
  0x6e   : > { %p6975_p7 = pneg %p6974_p3  ;;  %p6981_p2 = por %p6980_p1, %p6979_p12 }
  0x70   : > { %p6982_p4 = pnand %p6981_p2, %p6975_p7 }
  0x72   : > { %6985 = shalt.err (!%p6982_p4)
}
  0x73   : > { %s7068_s8 = smov 128   ;;  %s7069_s17 = smov 8  }
  0x74   : > { %6663 = dma.hbm_to_vmem [thread:$0]  (!%p7280_p11), %s7278_s23, 4096, %s7284_s10, %s7286_s14, %s7068_s8, %s7068_s8, %s7069_s17  }
  0x75   : > { %p8654_p9 = scmp.ne.s32.totalorder %s8648_s9, 0 }
  0x76   : > { %s7317_s21 = sand.u32 (!%p8654_p9), 1, %s7052_s25   ;;  %p8655_p0 = scmp.ne.s32.totalorder (!%p8654_p9), %s8645_s30, 0 }
  0x77   : > { %292 = sbr.rel (%p8654_p9) target bundleno = 1182 (0x49e), region = 48  ;;  %s5339_s16 = sshll.u32 (!%p8654_p9), %s7317_s21, 8 }
  0x78   : > { %s295_s13 = scalar_lea.sflag (!%p8654_p9), [#allocation6], %s7317_s21  ;;  %s7321_s20 = scalar_lea.vmem (!%p8654_p9), [#allocation5], %s5339_s16 }
  0x7e   : > { %7031 = dma.done.wait (%p8655_p0), %s295_s13, 4096  }
  0x7f   : > { %7033 = vsyncadd (%p8655_p0), %s295_s13, 4294963200  ;;  %p8656_p11 = scmp.eq.s32.totalorder %s7136_s28, 0 }
  0x81   : > { %7035 = dma.done.wait (%p8656_p11), [#allocation9], 18432   ;;  %p8657_p8 = pmov %p8656_p11 }
  0x83   : > { %7037 = vsyncadd (%p8657_p8), [#allocation9], 4294948864  ;;  %p8658_p13 = pmov %p8657_p8 }
  0x84   : > { %p8659_p6 = pmov %p8657_p8 }
  0x85   : > { %7039 = dma.done.wait (%p8658_p13), [#allocation12], 1024  }
  0x86   : > { %7041 = vsyncadd (%p8659_p6), [#allocation12], 4294966272  ;;  %v7070_v0 = vmov 0.0   ;;  %v6718_v1 = vld [vmem:[#allocation8 + $0x40] sm:$0xff]   ;;  %v6720_v3 = vld [vmem:[#allocation8 + $0x48] sm:$0xff]   ;;  %v7071_v54 = vmov 0.0|0.0  }
  0x87   : > { %342 = vst [vmem:[#allocation2] sm:$0xff] %v7070_v0  ;;  %343 = vst [vmem:[#allocation2 + $0x8] sm:$0xff] %v7070_v0  ;;  %v6719_v2 = vld [vmem:[#allocation8] sm:$0xff]   ;;  %5506 = vmatprep.subr.bf16.mxu0 %v6718_v1  ;;  %6618 = vmatprep.subr.bf16.mxu1 %v6718_v1  ;;  %v6721_v4 = vld [vmem:[#allocation8 + $0x8] sm:$0xff]   ;;  %s5343_s15 = sshll.u32 %s7317_s21, 6  ;;  %s5505_s12 = sshll.u32 %s7136_s28, 10 }
  0x88   : > { %344 = vst [vmem:[#allocation2 + $0x10] sm:$0x3] %v7070_v0  ;;  %345 = vst [vmem:[#allocation2 + $0x18] sm:$0xff] %v7070_v0  ;;  %5507 = vmatpush3.bf16.msra.mxu0 %v6719_v2  ;;  %6626 = vmatpush3.bf16.msra.mxu1 %v6719_v2  ;;  %v6722_v5 = vld [vmem:[#allocation8 + $0x50] sm:$0xff]   ;;  %v6724_v7 = vld [vmem:[#allocation8 + $0x58] sm:$0xff]   ;;  %s8536_s29 = scalar_lea.vmem [#allocation13], %s5343_s15  ;;  %s8586_s13 = scalar_lea.hbm %s8640_s7, %s5505_s12 }
  0x89   : > { %346 = vst [vmem:[#allocation2 + $0x20] sm:$0xff] %v7070_v0  ;;  %347 = vst [vmem:[#allocation2 + $0x28] sm:$0x3] %v7070_v0  ;;  %5508 = vmatprep.subr.bf16.mxu0 %v6720_v3  ;;  %6619 = vmatprep.subr.bf16.mxu1 %v6720_v3  ;;  %v6723_v6 = vld [vmem:[#allocation8 + $0x10] sm:$0xff]   ;;  %v6725_v8 = vld [vmem:[#allocation8 + $0x18] sm:$0xff]   ;;  %s5227_s8 = sshll.u32 %s8536_s29, 4  ;;  %s8588_s8 = int_to_ptr.vmem [resolvable:$true] %s5227_s8 }
  0x8a   : > { %348 = vst [vmem:[#allocation2 + $0x30] sm:$0xff] %v7070_v0  ;;  %349 = vst [vmem:[#allocation2 + $0x38] sm:$0xff] %v7070_v0  ;;  %v6726_v9 = vld [vmem:[#allocation8 + $0x60] sm:$0xff]   ;;  %v6728_v11 = vld [vmem:[#allocation8 + $0x68] sm:$0xff]   ;;  %s6986_s30 = scalar_lea.vmem %s8588_s8, 1024  ;;  %s7072_s28 = smov [#allocation13]  }
  0x8b   : > { %350 = vst [vmem:[#allocation2 + $0x40] sm:$0x3] %v7070_v0  ;;  %351 = vst [vmem:[#allocation2 + $0x48] sm:$0xff] %v7070_v0  ;;  %v6727_v10 = vld [vmem:[#allocation8 + $0x20] sm:$0xff]   ;;  %v418_v14 = vld [vmem:[%s7321_s20 + $0xb0] sm:$0xff]  ;;  %p6987_p10 = scmp.ne.s32.totalorder %s8588_s8, %s6986_s30  ;;  %s6990_s9 = sshll.u32 %s7072_s28, 4  ;;  %s6991_s9 = int_to_ptr.vmem [resolvable:$false] %s6990_s9 }
  0x8c   : > { %352 = vst [vmem:[#allocation2 + $0x50] sm:$0xff] %v7070_v0  ;;  %353 = vst [vmem:[#allocation2 + $0x58] sm:$0x3] %v7070_v0  ;;  %5509 = vmatpush3.bf16.msra.mxu0 %v6721_v4  ;;  %6627 = vmatpush3.bf16.msra.mxu1 %v6721_v4  ;;  %v419_v16 = vld [vmem:[%s7321_s20 + $0xb8] sm:$0xff]  ;;  %v450_v17 = vmax.f32 %v418_v14, 0.0  ;;  %v6729_v19 = vld [vmem:[#allocation8 + $0x28] sm:$0xff]   ;;  %p6993_p12 = scmp.lt.s32.totalorder %s8588_s8, %s6991_s9 }
  0x8d   : > { %354 = vst [vmem:[#allocation2 + $0x60] sm:$0xff] %v7070_v0  ;;  %355 = vst [vmem:[#allocation2 + $0x68] sm:$0xff] %v7070_v0  ;;  %5510 = vmatprep.subr.bf16.mxu0 %v6722_v5  ;;  %6620 = vmatprep.subr.bf16.mxu1 %v6722_v5  ;;  %v451_v18 = vmax.f32 %v419_v16, 0.0  ;;  %v6730_v20 = vld [vmem:[#allocation8 + $0x70] sm:$0xff]   ;;  %v6732_v23 = vld [vmem:[#allocation8 + $0x78] sm:$0xff]   ;;  %p6988_p3 = pnand %p6987_p10, %p7269_p5  ;;  %s6992_s23 = scalar_lea.vmem %s6991_s9, 2048 }
  0x8e   : > { %356 = vst [vmem:[#allocation2 + $0x70] sm:$0x3] %v7070_v0  ;;  %357 = vst [vmem:[#allocation2 + $0x78] sm:$0xff] %v7070_v0  ;;  %v557_v12 = vld [vmem:[#allocation2 + $0x1] sm:$0xff]  ;;  %v396_v24 = vld [vmem:[%s7321_s20] sm:$0xff]  ;;  %p6994_p1 = scmp.lt.s32.totalorder %s6992_s23, %s6986_s30 }
  0x8f   : > { %358 = vst [vmem:[#allocation2 + $0x80] sm:$0xff] %v7070_v0  ;;  %359 = vst [vmem:[#allocation2 + $0x88] sm:$0x3] %v7070_v0  ;;  %v558_v13 = vld [vmem:[#allocation2 + $0x9] sm:$0xff]  ;;  %v601_v21 = vpack.c.bf16 %v451_v18, %v450_v17  ;;  %v6731_v22 = vld [vmem:[#allocation8 + $0x30] sm:$0xff]   ;;  %v428_v26 = vmax.f32 %v396_v24, 0.0  ;;  %p6989_p7 = pneg %p6988_p3 }
  0x90   : > { %360 = vst [vmem:[#allocation2 + $0x90] sm:$0xff] %v7070_v0  ;;  %361 = vst [vmem:[#allocation2 + $0x98] sm:$0xff] %v7070_v0  ;;  %5511 = vmatpush3.bf16.msra.mxu0 %v6723_v6  ;;  %6628 = vmatpush3.bf16.msra.mxu1 %v6723_v6  ;;  %v589_v15 = vpack.c.bf16 %v558_v13, %v557_v12  ;;  %v397_v25 = vld [vmem:[%s7321_s20 + $0x8] sm:$0xff]  ;;  %v420_v28 = vld [vmem:[%s7321_s20 + $0xc0] sm:$0xff]  ;;  %p6995_p2 = por %p6994_p1, %p6993_p12 }
  0x91   : > { %362 = vst [vmem:[#allocation2 + $0xa0] sm:$0x3] %v7070_v0  ;;  %363 = vst [vmem:[#allocation2 + $0xa8] sm:$0xff] %v7070_v0  ;;  %5512 = vmatprep.subr.bf16.mxu0 %v6724_v7  ;;  %6621 = vmatprep.subr.bf16.mxu1 %v6724_v7  ;;  %v429_v27 = vmax.f32 %v397_v25, 0.0  ;;  %v421_v29 = vld [vmem:[%s7321_s20 + $0xc8] sm:$0xff]  ;;  %v6733_v30 = vld [vmem:[#allocation8 + $0x38] sm:$0xff]  }
  0x92   : > { %364 = vst [vmem:[#allocation2 + $0xb0] sm:$0xff] %v7070_v0  ;;  %365 = vst [vmem:[#allocation2 + $0xb8] sm:$0x3] %v7070_v0  ;;  %1829 = vmatprep.mubr.bf16.mxu0 %v589_v15  ;;  %1925 = vmatprep.mubr.bf16.mxu1 %v601_v21  ;;  %v452_v31 = vmax.f32 %v420_v28, 0.0  ;;  %v453_v32 = vmax.f32 %v421_v29, 0.0  ;;  %v6734_v34 = vld [vmem:[#allocation8 + $0xc0] sm:$0xff]   ;;  %p6996_p4 = pnand %p6995_p2, %p6989_p7 }
  0x93   : > { %366 = vst [vmem:[#allocation2 + $0xc0] sm:$0xff] %v7070_v0  ;;  %367 = vst [vmem:[#allocation2 + $0xc8] sm:$0xff] %v7070_v0  ;;  %v6735_v36 = vld [vmem:[#allocation8 + $0x140] sm:$0xff]   ;;  %v6738_v40 = vld [vmem:[#allocation8 + $0xc8] sm:$0xff]   ;;  %v7345_v43 = vpack.c.bf16 %v429_v27, %v428_v26 }
  0x94   : > { %368 = vst [vmem:[#allocation2 + $0xd0] sm:$0x3] %v7070_v0  ;;  %369 = vst [vmem:[#allocation2 + $0xd8] sm:$0xff] %v7070_v0  ;;  %5513 = vmatpush3.bf16.msra.mxu0 %v6725_v8  ;;  %6629 = vmatpush3.bf16.msra.mxu1 %v6725_v8  ;;  %v6736_v37 = vld [vmem:[#allocation8 + $0x80] sm:$0xff]   ;;  %v398_v41 = vld [vmem:[%s7321_s20 + $0x10] sm:$0xff]  ;;  %v602_v49 = vpack.c.bf16 %v453_v32, %v452_v31 }
  0x95   : > { %370 = vst [vmem:[#allocation2 + $0xe0] sm:$0xff] %v7070_v0  ;;  %371 = vst [vmem:[#allocation2 + $0xe8] sm:$0x3] %v7070_v0  ;;  %5514 = vmatprep.subr.bf16.mxu0 %v6726_v9  ;;  %6622 = vmatprep.subr.bf16.mxu1 %v6726_v9  ;;  %v6737_v39 = vld [vmem:[#allocation8 + $0x100] sm:$0xff]   ;;  %v399_v42 = vld [vmem:[%s7321_s20 + $0x18] sm:$0xff]  ;;  %v430_v44 = vmax.f32 %v398_v41, 0.0 }
  0x96   : > { %372 = vst [vmem:[#allocation2 + $0xf0] sm:$0xff] %v7070_v0  ;;  %373 = vst [vmem:[#allocation2 + $0xf8] sm:$0xff] %v7070_v0  ;;  %v431_v45 = vmax.f32 %v399_v42, 0.0  ;;  %v422_v46 = vld [vmem:[%s7321_s20 + $0xd0] sm:$0xff]  ;;  %v423_v47 = vld [vmem:[%s7321_s20 + $0xd8] sm:$0xff] }
  0x97   : > { %374 = vst [vmem:[#allocation2 + $0x100] sm:$0x3] %v7070_v0  ;;  %375 = vst [vmem:[#allocation2 + $0x108] sm:$0xff] %v7070_v0  ;;  %v6739_v48 = vld [vmem:[#allocation8 + $0x88] sm:$0xff]   ;;  %v454_v52 = vmax.f32 %v422_v46, 0.0  ;;  %v455_v53 = vmax.f32 %v423_v47, 0.0 }
  0x98   : > { %376 = vst [vmem:[#allocation2 + $0x110] sm:$0xff] %v7070_v0  ;;  %377 = vst [vmem:[#allocation2 + $0x118] sm:$0x3] %v7070_v0  ;;  %5515 = vmatpush3.bf16.msra.mxu0 %v6727_v10  ;;  %6630 = vmatpush3.bf16.msra.mxu1 %v6727_v10  ;;  %v6743_v50 = vld [vmem:[#allocation8 + $0x148] sm:$0xff]   ;;  %v6740_v59 = vld [vmem:[#allocation8 + $0xd0] sm:$0xff]   ;;  %v7358_v2 = vpack.c.bf16 %v431_v45, %v430_v44 }
  0x99   : > { %378 = vst [vmem:[#allocation2 + $0x120] sm:$0xff] %v7070_v0  ;;  %379 = vst [vmem:[#allocation2 + $0x128] sm:$0xff] %v7070_v0  ;;  %5516 = vmatprep.subr.bf16.mxu0 %v6728_v11  ;;  %6623 = vmatprep.subr.bf16.mxu1 %v6728_v11  ;;  %v6745_v51 = vld [vmem:[#allocation8 + $0x108] sm:$0xff]   ;;  %v6741_v60 = vld [vmem:[#allocation8 + $0x90] sm:$0xff]   ;;  %v603_v8 = vpack.c.bf16 %v455_v53, %v454_v52 }
  0x9a   : > { %380 = vst [vmem:[#allocation2 + $0x130] sm:$0x3] %v7070_v0  ;;  %381 = vst [vmem:[#allocation2 + $0x138] sm:$0xff] %v7070_v0  ;;  %v400_v63 = vld [vmem:[%s7321_s20 + $0x20] sm:$0xff]  ;;  %v425_v5 = vld [vmem:[%s7321_s20 + $0xe8] sm:$0xff] }
  0x9b   : > { %382 = vst [vmem:[#allocation2 + $0x140] sm:$0xff] %v7070_v0  ;;  %383 = vst [vmem:[#allocation2 + $0x148] sm:$0x3] %v7070_v0  ;;  %v424_v1 = vld [vmem:[%s7321_s20 + $0xe0] sm:$0xff]  ;;  %v432_v3 = vmax.f32 %v400_v63, 0.0  ;;  %v6742_v7 = vld [vmem:[#allocation8 + $0xd8] sm:$0xff]  }
  0x9c   : > { %384 = vst [vmem:[#allocation2 + $0x150] sm:$0xff] %v7070_v0  ;;  %385 = vst [vmem:[#allocation2 + $0x158] sm:$0xff] %v7070_v0  ;;  %5517 = vmatpush3.bf16.msra.mxu0 %v6729_v19  ;;  %6631 = vmatpush3.bf16.msra.mxu1 %v6729_v19  ;;  %v456_v6 = vmax.f32 %v424_v1, 0.0  ;;  %v457_v9 = vmax.f32 %v425_v5, 0.0  ;;  %v6744_v10 = vld [vmem:[#allocation8 + $0x98] sm:$0xff]   ;;  %v6746_v14 = vld [vmem:[#allocation8 + $0xe0] sm:$0xff]  }
  0x9d   : > { %386 = vst [vmem:[#allocation2 + $0x160] sm:$0x3] %v7070_v0  ;;  %387 = vst [vmem:[#allocation2 + $0x168] sm:$0xff] %v7070_v0  ;;  %5518 = vmatprep.subr.bf16.mxu0 %v6730_v20  ;;  %6624 = vmatprep.subr.bf16.mxu1 %v6730_v20  ;;  %v6751_v15 = vld [vmem:[#allocation8 + $0x150] sm:$0xff]   ;;  %v6747_v20 = vld [vmem:[#allocation8 + $0xa0] sm:$0xff]  }
  0x9e   : > { %388 = vst [vmem:[#allocation2 + $0x170] sm:$0xff] %v7070_v0  ;;  %389 = vst [vmem:[#allocation2 + $0x178] sm:$0x3] %v7070_v0  ;;  %v6748_v24 = vld [vmem:[#allocation8 + $0xe8] sm:$0xff]   ;;  %v604_v25 = vpack.c.bf16 %v457_v9, %v456_v6  ;;  %v7378_v41 = vld [vmem:[%s7321_s20 + $0x50] sm:$0xff] }
  0x9f   : > { %390 = vst [vmem:[#allocation2 + $0x180] sm:$0xff] %v7070_v0  ;;  %391 = vst [vmem:[#allocation2 + $0x188] sm:$0xff] %v7070_v0  ;;  %v6749_v28 = vld [vmem:[#allocation8 + $0xa8] sm:$0xff]   ;;  %v7381_v42 = vld [vmem:[%s7321_s20 + $0x58] sm:$0xff]  ;;  %v438_v47 = vmax.f32 %v7378_v41, 0.0 }
  0xa0   : > { %392 = vst [vmem:[#allocation2 + $0x190] sm:$0x3] %v7070_v0  ;;  %393 = vst [vmem:[#allocation2 + $0x198] sm:$0xff] %v7070_v0  ;;  %5519 = vmatpush3.bf16.msra.mxu0 %v6731_v22  ;;  %6632 = vmatpush3.bf16.msra.mxu1 %v6731_v22  ;;  %v402_v22 = vld [vmem:[%s7321_s20 + $0x30] sm:$0xff]  ;;  %v7480_v41 = vld [vmem:[#allocation8 + $0x200] sm:$0xff]  }
  0xa1   : > { %394 = vst [vmem:[#allocation2 + $0x1a0] sm:$0xff] %v7070_v0  ;;  %395 = vst [vmem:[#allocation2 + $0x1a8] sm:$0x3] %v7070_v0  ;;  %5520 = vmatprep.subr.bf16.mxu0 %v6732_v23  ;;  %6625 = vmatprep.subr.bf16.mxu1 %v6732_v23  ;;  %v401_v0 = vld [vmem:[%s7321_s20 + $0x28] sm:$0xff]  ;;  %v403_v23 = vld [vmem:[%s7321_s20 + $0x38] sm:$0xff] }
  0xa2   : > { %483 = vst [vmem:[#allocation2 + $0x121] sm:$0xff] %v450_v17  ;;  %484 = vst [vmem:[#allocation2 + $0x129] sm:$0xff] %v451_v18  ;;  %v433_v4 = vmax.f32 %v401_v0, 0.0  ;;  %v6753_v17 = vld [vmem:[#allocation8 + $0x110] sm:$0xff]   ;;  %v6760_v0 = vld [vmem:[#allocation8 + $0x168] sm:$0xff]  }
  0xa3   : > { %461 = vst [vmem:[#allocation2 + $0x19] sm:$0xff] %v428_v26  ;;  %462 = vst [vmem:[#allocation2 + $0x21] sm:$0xff] %v429_v27  ;;  %v434_v26 = vmax.f32 %v402_v22, 0.0  ;;  %v435_v27 = vmax.f32 %v403_v23, 0.0  ;;  %v6752_v46 = vld [vmem:[#allocation8 + $0xb0] sm:$0xff]   ;;  %v7446_v23 = vld [vmem:[%s7321_s20 + $0x98] sm:$0xff] }
  0xa4   : > { %485 = vst [vmem:[#allocation2 + $0x139] sm:$0xff] %v452_v31  ;;  %486 = vst [vmem:[#allocation2 + $0x141] sm:$0xff] %v453_v32  ;;  %5521 = vmatpush3.bf16.msra.mxu0 %v6733_v30  ;;  %6633 = vmatpush3.bf16.msra.mxu1 %v6733_v30  ;;  %v7368_v21 = vpack.c.bf16 %v433_v4, %v432_v3  ;;  %v7412_v1 = vld [vmem:[%s7321_s20 + $0x70] sm:$0xff] }
  0xa5   : > { %5618 = vmatprep.subr.bf16.mxu1 %v6734_v34  ;;  %5730 = vmatprep.subr.bf16.mxu0 %v6735_v36  ;;  %463 = vst [vmem:[#allocation2 + $0x31] sm:$0xff] %v430_v44  ;;  %464 = vst [vmem:[#allocation2 + $0x39] sm:$0xff] %v431_v45  ;;  %v6757_v34 = vld [vmem:[#allocation8 + $0x118] sm:$0xff]   ;;  %v6750_v36 = vld [vmem:[#allocation8 + $0xf0] sm:$0xff]   ;;  %v442_v5 = vmax.f32 %v7412_v1, 0.0 }
  0xa6   : > { %487 = vst [vmem:[#allocation2 + $0x151] sm:$0xff] %v454_v52  ;;  %488 = vst [vmem:[#allocation2 + $0x159] sm:$0xff] %v455_v53  ;;  %v7396_v52 = vld [vmem:[%s7321_s20 + $0x60] sm:$0xff]  ;;  %v7399_v53 = vld [vmem:[%s7321_s20 + $0x68] sm:$0xff] }
  0xa7   : > { %1830 = vmatmul.mubr.bf16.vlgmr.msra.gmra.mrb[0].mxu0 %v7071_v54  ;;  %465 = vst [vmem:[#allocation2 + $0x49] sm:$0xff] %v432_v3  ;;  %466 = vst [vmem:[#allocation2 + $0x51] sm:$0xff] %v433_v4  ;;  %v6755_v54 = vld [vmem:[#allocation8 + $0xb8] sm:$0xff]   ;;  %v6761_v4 = vld [vmem:[#allocation8 + $0x128] sm:$0xff]  }
  0xa8   : > { %5731 = vmatpush3.bf16.msra.mxu0 %v6737_v39  ;;  %1837 = vmatprep.mubr.bf16.mxu0 %v7345_v43  ;;  %489 = vst [vmem:[#allocation2 + $0x169] sm:$0xff] %v456_v6  ;;  %490 = vst [vmem:[#allocation2 + $0x171] sm:$0xff] %v457_v9  ;;  %v7415_v3 = vld [vmem:[%s7321_s20 + $0x78] sm:$0xff]  ;;  %v7422_v9 = vld [vmem:[%s7321_s20 + $0x80] sm:$0xff] }
  0xa9   : > { %v517_v33 = vld [vmem:[#allocation2 + $0x120] sm:$0xff]  ;;  %v518_v35 = vld [vmem:[#allocation2 + $0x128] sm:$0xff]  ;;  %5732 = vmatprep.subr.bf16.mxu0 %v6743_v50  ;;  %467 = vst [vmem:[#allocation2 + $0x61] sm:$0xff] %v434_v26  ;;  %468 = vst [vmem:[#allocation2 + $0x69] sm:$0xff] %v435_v27  ;;  %v7389_v50 = vpack.c.bf16 %v435_v27, %v434_v26  ;;  %v443_v6 = vmax.f32 %v7415_v3, 0.0 }
  0xaa   : > { %v7341_v38 = vpack.c.bf16 %v518_v35, %v517_v33  ;;  %v495_v55 = vld [vmem:[#allocation2 + $0x18] sm:$0xff]  ;;  %v496_v56 = vld [vmem:[#allocation2 + $0x20] sm:$0xff]  ;;  %v6756_v33 = vld [vmem:[#allocation8 + $0x158] sm:$0xff]   ;;  %471 = vst [vmem:[#allocation2 + $0x91] sm:$0xff] %v438_v47 }
  0xab   : > { %v519_v57 = vld [vmem:[#allocation2 + $0x138] sm:$0xff]  ;;  %v520_v58 = vld [vmem:[#allocation2 + $0x140] sm:$0xff]  ;;  %v7351_v61 = vpack.c.bf16 %v496_v56, %v495_v55  ;;  %v404_v35 = vld [vmem:[%s7321_s20 + $0x40] sm:$0xff]  ;;  %475 = vst [vmem:[#allocation2 + $0xc1] sm:$0xff] %v442_v5 }
  0xac   : > { %1926 = vmatmul.mubr.bf16.vlgmr.msra.gmra.mrb[0].mxu1 %v7341_v38  ;;  %v7353_v62 = vpack.c.bf16 %v520_v58, %v519_v57  ;;  %5733 = vmatpush3.bf16.msra.mxu0 %v6745_v51  ;;  %v497_v11 = vld [vmem:[#allocation2 + $0x30] sm:$0xff]  ;;  %v498_v12 = vld [vmem:[#allocation2 + $0x38] sm:$0xff]  ;;  %v436_v39 = vmax.f32 %v404_v35, 0.0  ;;  %v6754_v51 = vld [vmem:[#allocation8 + $0xf8] sm:$0xff]   ;;  %476 = vst [vmem:[#allocation2 + $0xc9] sm:$0xff] %v443_v6 }
  0xad   : > { %5619 = vmatpush3.bf16.msra.mxu1 %v6736_v37  ;;  %1933 = vmatprep.mubr.bf16.mxu1 %v602_v49  ;;  %v521_v13 = vld [vmem:[#allocation2 + $0x150] sm:$0xff]  ;;  %v522_v16 = vld [vmem:[#allocation2 + $0x158] sm:$0xff]  ;;  %v7364_v18 = vpack.c.bf16 %v498_v12, %v497_v11  ;;  %v621_v56 = vld [vmem:[#allocation2 + $0x2] sm:$0xff]  ;;  %v444_v11 = vmax.f32 %v7422_v9, 0.0 }
  0xae   : > { %5620 = vmatprep.subr.bf16.mxu1 %v6738_v40  ;;  %5734 = vmatprep.subr.bf16.mxu0 %v6751_v15  ;;  %v7366_v19 = vpack.c.bf16 %v522_v16, %v521_v13  ;;  %v499_v29 = vld [vmem:[#allocation2 + $0x48] sm:$0xff]  ;;  %v500_v30 = vld [vmem:[#allocation2 + $0x50] sm:$0xff]  ;;  %v405_v37 = vld [vmem:[%s7321_s20 + $0x48] sm:$0xff]  ;;  %469 = vst [vmem:[#allocation2 + $0x79] sm:$0xff] %v436_v39 }
  0xaf   : > { %1838 = vmatmul.mubr.bf16.gmra.mrb[4].mxu0 %v7351_v61  ;;  %v523_v31 = vld [vmem:[#allocation2 + $0x168] sm:$0xff]  ;;  %v524_v32 = vld [vmem:[#allocation2 + $0x170] sm:$0xff]  ;;  %v437_v40 = vmax.f32 %v405_v37, 0.0  ;;  %v7383_v44 = vpack.c.bf16 %v500_v30, %v499_v29  ;;  %v623_v13 = vld [vmem:[#allocation2 + $0x1a] sm:$0xff]  ;;  %477 = vst [vmem:[#allocation2 + $0xd9] sm:$0xff] %v444_v11 }
  0xb0   : > { %1845 = vmatprep.mubr.bf16.mxu0 %v7358_v2  ;;  %5735 = vmatpush3.bf16.msra.mxu0 %v6753_v17  ;;  %v7385_v45 = vpack.c.bf16 %v524_v32, %v523_v31  ;;  %v6758_v49 = vld [vmem:[#allocation8 + $0x160] sm:$0xff]   ;;  %v501_v55 = vld [vmem:[#allocation2 + $0x60] sm:$0xff]  ;;  %v502_v63 = vld [vmem:[#allocation2 + $0x68] sm:$0xff] }
  0xb1   : > { %5621 = vmatpush3.bf16.msra.mxu1 %v6739_v48  ;;  %5736 = vmatprep.subr.bf16.mxu0 %v6756_v33  ;;  %v439_v48 = vmax.f32 %v7381_v42, 0.0  ;;  %470 = vst [vmem:[#allocation2 + $0x81] sm:$0xff] %v437_v40  ;;  %v622_v57 = vld [vmem:[#allocation2 + $0xa] sm:$0xff]  ;;  %v624_v16 = vld [vmem:[#allocation2 + $0x22] sm:$0xff]  ;;  %v7468_v31 = vld [vmem:[%s7321_s20 + $0xa8] sm:$0xff] }
  0xb2   : > { %5622 = vmatprep.subr.bf16.mxu1 %v6740_v59  ;;  %v6759_v58 = vld [vmem:[#allocation8 + $0x120] sm:$0xff]   ;;  %v440_v59 = vmax.f32 %v7396_v52, 0.0  ;;  %v6763_v17 = vld [vmem:[#allocation8 + $0x130] sm:$0xff]   ;;  %v6764_v26 = vld [vmem:[#allocation8 + $0x178] sm:$0xff]   ;;  %v449_v33 = vmax.f32 %v7468_v31, 0.0 }
  0xb3   : > { %472 = vst [vmem:[#allocation2 + $0x99] sm:$0xff] %v439_v48  ;;  %v7443_v22 = vld [vmem:[%s7321_s20 + $0x90] sm:$0xff]  ;;  %v7462_v29 = vpack.c.bf16 %v439_v48, %v438_v47  ;;  %v7465_v30 = vld [vmem:[%s7321_s20 + $0xa0] sm:$0xff]  ;;  %v6769_v47 = vld [vmem:[#allocation8 + $0x1c8] sm:$0xff]  }
  0xb4   : > { %1934 = vmatmul.mubr.bf16.gmra.mrb[4].mxu1 %v7353_v62  ;;  %5737 = vmatpush3.bf16.msra.mxu0 %v6757_v34  ;;  %473 = vst [vmem:[#allocation2 + $0xa9] sm:$0xff] %v440_v59  ;;  %v448_v32 = vmax.f32 %v7465_v30, 0.0  ;;  %v625_v34 = vld [vmem:[#allocation2 + $0x32] sm:$0xff]  ;;  %v626_v35 = vld [vmem:[#allocation2 + $0x3a] sm:$0xff]  ;;  %482 = vst [vmem:[#allocation2 + $0x111] sm:$0xff] %v449_v33 }
  0xb5   : > { %5623 = vmatpush3.bf16.msra.mxu1 %v6741_v60  ;;  %1941 = vmatprep.mubr.bf16.mxu1 %v603_v8  ;;  %v441_v60 = vmax.f32 %v7399_v53, 0.0  ;;  %v653_v8 = vpack.c.bf16 %v622_v57, %v621_v56  ;;  %v503_v15 = vld [vmem:[#allocation2 + $0x78] sm:$0xff]  ;;  %v6767_v37 = vld [vmem:[#allocation8 + $0x180] sm:$0xff]   ;;  %v6772_v52 = vld [vmem:[#allocation8 + $0x1d0] sm:$0xff]  }
  0xb6   : > { %5624 = vmatprep.subr.bf16.mxu1 %v6742_v7  ;;  %5738 = vmatprep.subr.bf16.mxu0 %v6758_v49  ;;  %v7419_v7 = vpack.c.bf16 %v502_v63, %v501_v55  ;;  %481 = vst [vmem:[#allocation2 + $0x109] sm:$0xff] %v448_v32  ;;  %v6770_v49 = vld [vmem:[#allocation8 + $0x188] sm:$0xff]   ;;  %v6773_v57 = vld [vmem:[#allocation8 + $0x190] sm:$0xff]   ;;  %v510_v1 = vld [vmem:[#allocation2 + $0xc8] sm:$0xff] }
  0xb7   : > { %1846 = vmatmul.mubr.bf16.gmra.mrb[8].mxu0 %v7364_v18  ;;  %474 = vst [vmem:[#allocation2 + $0xb1] sm:$0xff] %v441_v60  ;;  %v7491_v48 = vpack.c.bf16 %v441_v60, %v440_v59  ;;  %v628_v56 = vld [vmem:[#allocation2 + $0x52] sm:$0xff]  ;;  %v7505_v59 = vpack.c.bf16 %v443_v6, %v442_v5  ;;  %v6775_v60 = vld [vmem:[#allocation8 + $0x1d8] sm:$0xff]   ;;  %v509_v63 = vld [vmem:[#allocation2 + $0xc0] sm:$0xff] }
  0xb8   : > { %1853 = vmatprep.mubr.bf16.mxu0 %v7368_v21  ;;  %5739 = vmatpush3.bf16.msra.mxu0 %v6759_v58  ;;  %v6779_v3 = vld [vmem:[#allocation8 + $0x1a0] sm:$0xff]   ;;  %v7511_v5 = vpack.c.bf16 %v510_v1, %v509_v63  ;;  %v6782_v9 = vld [vmem:[#allocation8 + $0x1f0] sm:$0xff]  }
  0xb9   : > { %5625 = vmatpush3.bf16.msra.mxu1 %v6744_v10  ;;  %5740 = vmatprep.subr.bf16.mxu0 %v6760_v0  ;;  %v7425_v10 = vld [vmem:[%s7321_s20 + $0x88] sm:$0xff]  ;;  %v629_v0 = vld [vmem:[#allocation2 + $0x62] sm:$0xff] }
  0xba   : > { %5626 = vmatprep.subr.bf16.mxu1 %v6746_v14  ;;  %v445_v12 = vmax.f32 %v7425_v10, 0.0  ;;  %v6762_v14 = vld [vmem:[#allocation8 + $0x170] sm:$0xff]  }
  0xbb   : > { %v637_v31 = vld [vmem:[#allocation2 + $0xc2] sm:$0xff] }
  0xbc   : > { %1942 = vmatmul.mubr.bf16.gmra.mrb[8].mxu1 %v7366_v19  ;;  %5741 = vmatpush3.bf16.msra.mxu0 %v6761_v4  ;;  %478 = vst [vmem:[#allocation2 + $0xe1] sm:$0xff] %v445_v12  ;;  %v630_v4 = vld [vmem:[#allocation2 + $0x6a] sm:$0xff] }
  0xbd   : > { %5627 = vmatpush3.bf16.msra.mxu1 %v6747_v20  ;;  %1949 = vmatprep.mubr.bf16.mxu1 %v604_v25  ;;  %v504_v20 = vld [vmem:[#allocation2 + $0x80] sm:$0xff]  ;;  %v447_v25 = vmax.f32 %v7446_v23, 0.0  ;;  %v7513_v6 = vpack.c.bf16 %v630_v4, %v629_v0  ;;  %v6771_v0 = vld [vmem:[#allocation8 + $0x208] sm:$0xff]  }
  0xbe   : > { %5628 = vmatprep.subr.bf16.mxu1 %v6748_v24  ;;  %5742 = vmatprep.subr.bf16.mxu0 %v6762_v14  ;;  %v446_v24 = vmax.f32 %v7443_v22, 0.0  ;;  %v7450_v27 = vpack.c.bf16 %v504_v20, %v503_v15  ;;  %v508_v55 = vld [vmem:[#allocation2 + $0xb0] sm:$0xff]  ;;  %v7519_v14 = vpack.c.bf16 %v445_v12, %v444_v11  ;;  %v426_v15 = vld [vmem:[%s7321_s20 + $0xf0] sm:$0xff]  ;;  %v6781_v20 = vld [vmem:[#allocation8 + $0x1a8] sm:$0xff]  }
  0xbf   : > { %1854 = vmatmul.mubr.bf16.gmra.mrb[12].mxu0 %v7383_v44  ;;  %480 = vst [vmem:[#allocation2 + $0xf9] sm:$0xff] %v447_v25  ;;  %v6783_v11 = vld [vmem:[#allocation8 + $0x1b0] sm:$0xff]  }
  0xc0   : > { %1861 = vmatprep.mubr.bf16.mxu0 %v7389_v50  ;;  %5743 = vmatpush3.bf16.msra.mxu0 %v6763_v17  ;;  %479 = vst [vmem:[#allocation2 + $0xf1] sm:$0xff] %v446_v24  ;;  %v6780_v17 = vld [vmem:[#allocation8 + $0x1e8] sm:$0xff]  }
  0xc1   : > { %5629 = vmatpush3.bf16.msra.mxu1 %v6749_v28  ;;  %v7452_v28 = vpack.c.bf16 %v624_v16, %v623_v13  ;;  %5744 = vmatprep.subr.bf16.mxu0 %v6764_v26  ;;  %v6777_v13 = vld [vmem:[#allocation8 + $0x1e0] sm:$0xff]   ;;  %v427_v16 = vld [vmem:[%s7321_s20 + $0xf8] sm:$0xff]  ;;  %v458_v26 = vmax.f32 %v426_v15, 0.0 }
  0xc2   : > { %5630 = vmatprep.subr.bf16.mxu1 %v6750_v36  ;;  %v6766_v36 = vld [vmem:[#allocation8 + $0x1c0] sm:$0xff]  }
  0xc3   : > { %491 = vst [vmem:[#allocation2 + $0x181] sm:$0xff] %v458_v26  ;;  %v512_v10 = vld [vmem:[#allocation2 + $0xe0] sm:$0xff] }
  0xc4   : > { %1950 = vmatmul.mubr.bf16.gmra.mrb[12].mxu1 %v7385_v45  ;;  %v639_v4 = vld [vmem:[#allocation2 + $0xda] sm:$0xff] }
  0xc5   : > { %5631 = vmatpush3.bf16.msra.mxu1 %v6752_v46  ;;  %1990 = vmatprep.mubr.bf16.mxu1 %v7351_v61  ;;  %v7427_v61 = vpack.c.bf16 %v437_v40, %v436_v39  ;;  %v505_v39 = vld [vmem:[#allocation2 + $0x90] sm:$0xff]  ;;  %v506_v40 = vld [vmem:[#allocation2 + $0x98] sm:$0xff]  ;;  %v7484_v46 = vpack.c.bf16 %v626_v35, %v625_v34 }
  0xc6   : > { %5632 = vmatprep.subr.bf16.mxu1 %v6754_v51  ;;  %v7482_v42 = vpack.c.bf16 %v506_v40, %v505_v39  ;;  %v627_v51 = vld [vmem:[#allocation2 + $0x4a] sm:$0xff]  ;;  %v511_v34 = vld [vmem:[#allocation2 + $0xd8] sm:$0xff]  ;;  %v7535_v39 = vpack.c.bf16 %v447_v25, %v446_v24  ;;  %v7549_v24 = vpack.c.bf16 %v449_v33, %v448_v32 }
  0xc7   : > { %1862 = vmatmul.mubr.bf16.gmra.mrb[16].mxu0 %v7419_v7  ;;  %v7499_v58 = vpack.c.bf16 %v628_v56, %v627_v51  ;;  %v631_v35 = vld [vmem:[#allocation2 + $0x7a] sm:$0xff]  ;;  %v7527_v12 = vpack.c.bf16 %v512_v10, %v511_v34  ;;  %v6784_v40 = vld [vmem:[#allocation8 + $0x1f8] sm:$0xff]   ;;  %v513_v51 = vld [vmem:[#allocation2 + $0xf0] sm:$0xff] }
  0xc8   : > { %1869 = vmatprep.mubr.bf16.mxu0 %v7427_v61  ;;  %v515_v25 = vld [vmem:[#allocation2 + $0x108] sm:$0xff]  ;;  %v642_v15 = vld [vmem:[#allocation2 + $0xfa] sm:$0xff] }
  0xc9   : > { %5633 = vmatpush3.bf16.msra.mxu1 %v6755_v54  ;;  %v507_v54 = vld [vmem:[#allocation2 + $0xa8] sm:$0xff]  ;;  %v650_v10 = vld [vmem:[#allocation2 + $0x15a] sm:$0xff] }
  0xca   : > { %5842 = vmatprep.subr.bf16.mxu1 %v6766_v36  ;;  %v7497_v53 = vpack.c.bf16 %v508_v55, %v507_v54  ;;  %v632_v36 = vld [vmem:[#allocation2 + $0x82] sm:$0xff]  ;;  %v514_v54 = vld [vmem:[#allocation2 + $0xf8] sm:$0xff]  ;;  %v635_v56 = vld [vmem:[#allocation2 + $0xaa] sm:$0xff] }
  0xcb   : > { %v634_v55 = vld [vmem:[#allocation2 + $0x9a] sm:$0xff]  ;;  %v7541_v22 = vpack.c.bf16 %v514_v54, %v513_v51  ;;  %v638_v32 = vld [vmem:[#allocation2 + $0xca] sm:$0xff] }
  0xcc   : > { %1991 = vmatmul.mubr.bf16.vlgmr.msra.gmra.mrb[16].mxu1 %v653_v8  ;;  %v6776_v8 = vld [vmem:[#allocation8 + $0x198] sm:$0xff]   ;;  %v7565_v33 = vpack.c.bf16 %v638_v32, %v637_v31  ;;  %v942_v51 = vld [vmem:[#allocation2 + $0x31] sm:$0xff]  ;;  %v943_v54 = vld [vmem:[#allocation2 + $0x39] sm:$0xff] }
  0xcd   : > { %1998 = vmatprep.mubr.bf16.mxu1 %v7364_v18  ;;  %v6765_v18 = vld [vmem:[#allocation8 + $0x138] sm:$0xff]   ;;  %5843 = vmatpush3.bf16.msra.mxu1 %v6767_v37  ;;  %v7529_v37 = vpack.c.bf16 %v632_v36, %v631_v35  ;;  %v647_v35 = vld [vmem:[#allocation2 + $0x13a] sm:$0xff] }
  0xce   : > { %5745 = vmatpush3.bf16.msra.mxu0 %v6765_v18  ;;  %5844 = vmatprep.subr.bf16.mxu1 %v6769_v47  ;;  %v459_v18 = vmax.f32 %v427_v16, 0.0  ;;  %v6785_v47 = vld [vmem:[#allocation8 + $0x1b8] sm:$0xff]  }
  0xcf   : > { %1870 = vmatmul.mubr.bf16.gmra.mrb[20].mxu0 %v7450_v27  ;;  %6474 = vmatprep.subr.bf16.mxu0 %v7480_v41  ;;  %v643_v16 = vld [vmem:[#allocation2 + $0x10a] sm:$0xff]  ;;  %v648_v36 = vld [vmem:[#allocation2 + $0x142] sm:$0xff] }
  0xd0   : > { %1877 = vmatprep.mubr.bf16.mxu0 %v7462_v29  ;;  %492 = vst [vmem:[#allocation2 + $0x189] sm:$0xff] %v459_v18  ;;  %v7559_v30 = vpack.c.bf16 %v459_v18, %v458_v26  ;;  %v6789_v26 = vld [vmem:[#allocation8 + $0x238] sm:$0xff]  }
  0xd1   : > { %5845 = vmatpush3.bf16.msra.mxu1 %v6770_v49  ;;  %v633_v49 = vld [vmem:[#allocation2 + $0x92] sm:$0xff]  ;;  %v645_v18 = vld [vmem:[#allocation2 + $0x122] sm:$0xff]  ;;  %v646_v34 = vld [vmem:[#allocation2 + $0x12a] sm:$0xff] }
  0xd2   : > { %5846 = vmatprep.subr.bf16.mxu1 %v6772_v52  ;;  %v7543_v23 = vpack.c.bf16 %v634_v55, %v633_v49  ;;  %v636_v52 = vld [vmem:[#allocation2 + $0xb2] sm:$0xff]  ;;  %v771_v31 = vld [vmem:[#allocation2 + $0x121] sm:$0xff]  ;;  %v772_v32 = vld [vmem:[#allocation2 + $0x129] sm:$0xff] }
  0xd3   : > { %v7557_v63 = vpack.c.bf16 %v636_v52, %v635_v56  ;;  %v878_v56 = vld [vmem:[#allocation2 + $0x30] sm:$0xff]  ;;  %v879_v52 = vld [vmem:[#allocation2 + $0x38] sm:$0xff] }
  0xd4   : > { %1999 = vmatmul.mubr.bf16.gmra.mrb[20].mxu1 %v7452_v28 }
  0xd5   : > { %2006 = vmatprep.mubr.bf16.mxu1 %v7383_v44  ;;  %5847 = vmatpush3.bf16.msra.mxu1 %v6773_v57  ;;  %v516_v57 = vld [vmem:[#allocation2 + $0x110] sm:$0xff] }
  0xd6   : > { %5848 = vmatprep.subr.bf16.mxu1 %v6775_v60  ;;  %v7555_v60 = vpack.c.bf16 %v516_v57, %v515_v25  ;;  %v974_v25 = vpack.c.bf16 %v943_v54, %v942_v51  ;;  %v910_v57 = vpack.c.bf16 %v879_v52, %v878_v56 }
  0xd7   : > { %1878 = vmatmul.mubr.bf16.gmra.mrb[24].mxu0 %v7482_v42 }
  0xd8   : > { %1885 = vmatprep.mubr.bf16.mxu0 %v7491_v48 }
  0xd9   : > { %5849 = vmatpush3.bf16.msra.mxu1 %v6776_v8  ;;  %v640_v8 = vld [vmem:[#allocation2 + $0xe2] sm:$0xff] }
  0xda   : > { %5850 = vmatprep.subr.bf16.mxu1 %v6777_v13  ;;  %v6774_v13 = vld [vmem:[#allocation8 + $0x210] sm:$0xff]   ;;  %v7572_v1 = vpack.c.bf16 %v640_v8, %v639_v4  ;;  %v6790_v4 = vld [vmem:[#allocation10 + $0x40] sm:$0xff]  }
  0xdc   : > { %2007 = vmatmul.mubr.bf16.gmra.mrb[24].mxu1 %v7484_v46 }
  0xdd   : > { %2014 = vmatprep.mubr.bf16.mxu1 %v7419_v7  ;;  %5851 = vmatpush3.bf16.msra.mxu1 %v6779_v3  ;;  %v641_v3 = vld [vmem:[#allocation2 + $0xf2] sm:$0xff] }
  0xde   : > { %5852 = vmatprep.subr.bf16.mxu1 %v6780_v17  ;;  %v644_v17 = vld [vmem:[#allocation2 + $0x112] sm:$0xff] }
  0xdf   : > { %1886 = vmatmul.mubr.bf16.gmra.mrb[28].mxu0 %v7497_v53 }
  0xe0   : > { %1893 = vmatprep.mubr.bf16.mxu0 %v7505_v59 }
  0xe1   : > { %5853 = vmatpush3.bf16.msra.mxu1 %v6781_v20  ;;  %v7584_v20 = vpack.c.bf16 %v644_v17, %v643_v16 }
  0xe2   : > { %5854 = vmatprep.subr.bf16.mxu1 %v6782_v9  ;;  %v7596_v9 = vpack.c.bf16 %v648_v36, %v647_v35 }
  0xe4   : > { %2015 = vmatmul.mubr.bf16.gmra.mrb[28].mxu1 %v7499_v58 }
  0xe5   : > { %2022 = vmatprep.mubr.bf16.mxu1 %v7450_v27  ;;  %5855 = vmatpush3.bf16.msra.mxu1 %v6783_v11  ;;  %v715_v11 = vld [vmem:[#allocation2 + $0x180] sm:$0xff] }
  0xe6   : > { %5856 = vmatprep.subr.bf16.mxu1 %v6784_v40  ;;  %v716_v40 = vld [vmem:[#allocation2 + $0x188] sm:$0xff] }
  0xe7   : > { %1894 = vmatmul.mubr.bf16.gmra.mrb[32].mxu0 %v7511_v5  ;;  %v7604_v49 = vpack.c.bf16 %v716_v40, %v715_v11 }
  0xe8   : > { %1901 = vmatprep.mubr.bf16.mxu0 %v7519_v14 }
  0xe9   : > { %5857 = vmatpush3.bf16.msra.mxu1 %v6785_v47 }
  0xea   : > { %5978 = vmatprep.subr.bf16.mxu1 %v6790_v4 }
  0xec   : > { %2023 = vmatmul.mubr.bf16.gmra.mrb[32].mxu1 %v7513_v6 }
  0xed   : > { %2030 = vmatprep.mubr.bf16.mxu1 %v7482_v42 }
  0xef   : > { %1902 = vmatmul.mubr.bf16.gmra.mrb[36].mxu0 %v7527_v12 }
  0xf0   : > { %1909 = vmatprep.mubr.bf16.mxu0 %v7535_v39 }
  0xf4   : > { %2031 = vmatmul.mubr.bf16.gmra.mrb[36].mxu1 %v7529_v37 }
  0xf5   : > { %2038 = vmatprep.mubr.bf16.mxu1 %v7497_v53 }
  0xf7   : > { %1910 = vmatmul.mubr.bf16.gmra.mrb[40].mxu0 %v7541_v22 }
  0xf8   : > { %1917 = vmatprep.mubr.bf16.mxu0 %v7549_v24 }
  0xfc   : > { %2039 = vmatmul.mubr.bf16.gmra.mrb[40].mxu1 %v7543_v23 }
  0xfd   : > { %2046 = vmatprep.mubr.bf16.mxu1 %v7511_v5 }
  0xff   : > { %1918 = vmatmul.mubr.bf16.gmra.mrb[44].mxu0 %v7555_v60 }
 0x100   : > { %2151 = vmatprep.mubr.bf16.mxu0 %v7452_v28  ;;  %v6778_v28 = vld [vmem:[#allocation8 + $0x218] sm:$0xff]  }
 0x104   : > { %2047 = vmatmul.mubr.bf16.gmra.mrb[44].mxu1 %v7557_v63 }
 0x105   : > { %2054 = vmatprep.mubr.bf16.mxu1 %v7527_v12 }
 0x107   : > { %2152 = vmatmul.mubr.bf16.vlgmr.msra.gmra.mrb[48].mxu0 %v7345_v43  ;;  %v6786_v43 = vld [vmem:[#allocation8 + $0x220] sm:$0xff]  }
 0x108   : > { %6475 = vmatpush3.bf16.msra.mxu0 %v7480_v41  ;;  %2159 = vmatprep.mubr.bf16.mxu0 %v7484_v46  ;;  %v7578_v41 = vpack.c.bf16 %v642_v15, %v641_v3  ;;  %v6787_v46 = vld [vmem:[#allocation8 + $0x228] sm:$0xff]  }
 0x109   : > { %6476 = vmatprep.subr.bf16.mxu0 %v6771_v0  ;;  %v6793_v15 = vld [vmem:[#allocation10 + $0x8] sm:$0xff]  }
 0x10c   : > { %2055 = vmatmul.mubr.bf16.gmra.mrb[48].mxu1 %v7565_v33  ;;  %6477 = vmatpush3.bf16.msra.mxu0 %v6771_v0  ;;  %v7626_v0 = vpack.c.bf16 %v772_v32, %v771_v31 }
 0x10d   : > { %2062 = vmatprep.mubr.bf16.mxu1 %v7541_v22  ;;  %6478 = vmatprep.subr.bf16.mxu0 %v6774_v13 }
 0x10f   : > { %2160 = vmatmul.mubr.bf16.gmra.mrb[52].mxu0 %v7358_v2  ;;  %v6788_v2 = vld [vmem:[#allocation8 + $0x230] sm:$0xff]  }
 0x110   : > { %2167 = vmatprep.mubr.bf16.mxu0 %v7499_v58  ;;  %6479 = vmatpush3.bf16.msra.mxu0 %v6774_v13  ;;  %v843_v13 = vld [vmem:[#allocation2 + $0x182] sm:$0xff] }
 0x111   : > { %6480 = vmatprep.subr.bf16.mxu0 %v6778_v28 }
 0x114   : > { %2063 = vmatmul.mubr.bf16.gmra.mrb[52].mxu1 %v7572_v1  ;;  %6481 = vmatpush3.bf16.msra.mxu0 %v6778_v28  ;;  %v844_v28 = vld [vmem:[#allocation2 + $0x18a] sm:$0xff] }
 0x115   : > { %2070 = vmatprep.mubr.bf16.mxu1 %v7555_v60  ;;  %6482 = vmatprep.subr.bf16.mxu0 %v6786_v43  ;;  %v7646_v3 = vpack.c.bf16 %v844_v28, %v843_v13  ;;  %v899_v28 = vld [vmem:[#allocation2 + $0x128] sm:$0xff] }
 0x117   : > { %2168 = vmatmul.mubr.bf16.gmra.mrb[56].mxu0 %v7368_v21 }
 0x118   : > { %2175 = vmatprep.mubr.bf16.mxu0 %v7513_v6  ;;  %6483 = vmatpush3.bf16.msra.mxu0 %v6786_v43  ;;  %v1006_v43 = vld [vmem:[#allocation2 + $0x32] sm:$0xff] }
 0x119   : > { %6484 = vmatprep.subr.bf16.mxu0 %v6787_v46 }
 0x11c   : > { %2071 = vmatmul.mubr.bf16.gmra.mrb[56].mxu1 %v7578_v41  ;;  %6485 = vmatpush3.bf16.msra.mxu0 %v6787_v46 }
 0x11d   : > { %2078 = vmatprep.mubr.bf16.mxu1 %v7341_v38  ;;  %6486 = vmatprep.subr.bf16.mxu0 %v6788_v2  ;;  %v7590_v38 = vpack.c.bf16 %v646_v34, %v645_v18 }
 0x11f   : > { %2176 = vmatmul.mubr.bf16.gmra.mrb[60].mxu0 %v7389_v50 }
 0x120   : > { %2183 = vmatprep.mubr.bf16.mxu0 %v7529_v37  ;;  %6487 = vmatpush3.bf16.msra.mxu0 %v6788_v2 }
 0x121   : > { %6488 = vmatprep.subr.bf16.mxu0 %v6789_v26 }
 0x124   : > { %2079 = vmatmul.mubr.bf16.gmra.mrb[60].mxu1 %v7584_v20  ;;  %6489 = vmatpush3.bf16.msra.mxu0 %v6789_v26 }
 0x125   : > { %2086 = vmatprep.mubr.bf16.mxu1 %v7353_v62  ;;  %v649_v62 = vld [vmem:[#allocation2 + $0x152] sm:$0xff] }
 0x126   : > { %v7602_v47 = vpack.c.bf16 %v650_v10, %v649_v62 }
 0x127   : > { %2184 = vmatmul.mubr.bf16.gmra.mrb[64].mxu0 %v7427_v61 }
 0x128   : > { %2191 = vmatprep.mubr.bf16.mxu0 %v7543_v23 }
 0x12c   : > { %2087 = vmatmul.mubr.bf16.gmra.mrb[64].mxu1 %v7590_v38 }
 0x12d   : > { %2094 = vmatprep.mubr.bf16.mxu1 %v7366_v19  ;;  %v651_v19 = vld [vmem:[#allocation2 + $0x16a] sm:$0xff] }
 0x12f   : > { %2192 = vmatmul.mubr.bf16.gmra.mrb[68].mxu0 %v7462_v29 }
 0x130   : > { %2199 = vmatprep.mubr.bf16.mxu0 %v7557_v63 }
 0x134   : > { %2095 = vmatmul.mubr.bf16.gmra.mrb[68].mxu1 %v7596_v9 }
 0x135   : > { %2102 = vmatprep.mubr.bf16.mxu1 %v7385_v45  ;;  %v652_v45 = vld [vmem:[#allocation2 + $0x172] sm:$0xff] }
 0x136   : > { %v7610_v55 = vpack.c.bf16 %v652_v45, %v651_v19 }
 0x137   : > { %2200 = vmatmul.mubr.bf16.gmra.mrb[72].mxu0 %v7491_v48 }
 0x138   : > { %2207 = vmatprep.mubr.bf16.mxu0 %v7565_v33 }
 0x13c   : > { %2103 = vmatmul.mubr.bf16.gmra.mrb[72].mxu1 %v7602_v47 }
 0x13d   : > { %2110 = vmatprep.mubr.bf16.mxu1 %v7604_v49 }
 0x13f   : > { %2208 = vmatmul.mubr.bf16.gmra.mrb[76].mxu0 %v7505_v59 }
 0x140   : > { %2215 = vmatprep.mubr.bf16.mxu0 %v7572_v1 }
 0x144   : > { %2111 = vmatmul.mubr.bf16.gmra.mrb[76].mxu1 %v7610_v55 }
 0x145   : > { %2312 = vmatprep.mubr.bf16.mxu1 %v974_v25 }
 0x147   : > { %2216 = vmatmul.mubr.bf16.gmra.mrb[80].mxu0 %v7519_v14 }
 0x148   : > { %2223 = vmatprep.mubr.bf16.mxu0 %v7578_v41 }
 0x14c   : > { %2313 = vmatmul.mubr.bf16.vlgmr.msra.gmra.mrb[80].mxu1 %v910_v57 }
 0x14d   : > { %2320 = vmatprep.mubr.bf16.mxu1 %v7368_v21  ;;  %v773_v21 = vld [vmem:[#allocation2 + $0x139] sm:$0xff] }
 0x14f   : > { %2224 = vmatmul.mubr.bf16.gmra.mrb[84].mxu0 %v7535_v39 }
 0x150   : > { %2231 = vmatprep.mubr.bf16.mxu0 %v7584_v20 }
 0x154   : > { %2321 = vmatmul.mubr.bf16.gmra.mrb[84].mxu1 %v7383_v44  ;;  %v774_v44 = vld [vmem:[#allocation2 + $0x141] sm:$0xff] }
 0x155   : > { %2328 = vmatprep.mubr.bf16.mxu1 %v7389_v50  ;;  %v7632_v50 = vpack.c.bf16 %v774_v44, %v773_v21 }
 0x157   : > { %2232 = vmatmul.mubr.bf16.gmra.mrb[88].mxu0 %v7549_v24 }
 0x158   : > { %2239 = vmatprep.mubr.bf16.mxu0 %v7590_v38 }
 0x15c   : > { %2329 = vmatmul.mubr.bf16.gmra.mrb[88].mxu1 %v7419_v7  ;;  %v775_v7 = vld [vmem:[#allocation2 + $0x151] sm:$0xff] }
 0x15d   : > { %2336 = vmatprep.mubr.bf16.mxu1 %v7427_v61  ;;  %v776_v61 = vld [vmem:[#allocation2 + $0x159] sm:$0xff] }
 0x15e   : > { %v7638_v8 = vpack.c.bf16 %v776_v61, %v775_v7 }
 0x15f   : > { %2240 = vmatmul.mubr.bf16.gmra.mrb[92].mxu0 %v7626_v0 }
 0x160   : > { %2247 = vmatprep.mubr.bf16.mxu0 %v7596_v9 }
 0x164   : > { %2337 = vmatmul.mubr.bf16.gmra.mrb[92].mxu1 %v7450_v27  ;;  %v6791_v27 = vld [vmem:[#allocation10] sm:$0xff]  }
 0x165   : > { %2344 = vmatprep.mubr.bf16.mxu1 %v7462_v29  ;;  %5979 = vmatpush3.bf16.msra.mxu1 %v6791_v27  ;;  %v777_v29 = vld [vmem:[#allocation2 + $0x169] sm:$0xff] }
 0x167   : > { %2248 = vmatmul.mubr.bf16.gmra.mrb[96].mxu0 %v7632_v50 }
 0x168   : > { %2255 = vmatprep.mubr.bf16.mxu0 %v7602_v47 }
 0x16c   : > { %2345 = vmatmul.mubr.bf16.gmra.mrb[96].mxu1 %v7482_v42  ;;  %v778_v42 = vld [vmem:[#allocation2 + $0x171] sm:$0xff] }
 0x16d   : > { %2352 = vmatprep.mubr.bf16.mxu1 %v7491_v48  ;;  %v7644_v48 = vpack.c.bf16 %v778_v42, %v777_v29 }
 0x16f   : > { %2256 = vmatmul.mubr.bf16.gmra.mrb[100].mxu0 %v7638_v8 }
 0x170   : > { %2263 = vmatprep.mubr.bf16.mxu0 %v7610_v55 }
 0x174   : > { %2353 = vmatmul.mubr.bf16.gmra.mrb[100].mxu1 %v7497_v53  ;;  %v6792_v53 = vld [vmem:[#allocation10 + $0x48] sm:$0xff]  }
 0x175   : > { %2360 = vmatprep.mubr.bf16.mxu1 %v7505_v59  ;;  %v1007_v59 = vld [vmem:[#allocation2 + $0x3a] sm:$0xff]  ;;  %5980 = vmatprep.subr.bf16.mxu1 %v6792_v53 }
 0x176   : > { %5981 = vmatpush3.bf16.msra.mxu1 %v6793_v15  ;;  %v1038_v34 = vpack.c.bf16 %v1007_v59, %v1006_v43 }
 0x177   : > { %2264 = vmatmul.mubr.bf16.gmra.mrb[104].mxu0 %v7644_v48 }
 0x178   : > { %2271 = vmatprep.mubr.bf16.mxu0 %v7646_v3 }
 0x17a   : > { %v5522_v46 = vpop.f32.mrb[0].mxu0 }
 0x17b   : > { %v5523_v17 = vpop.f32.mrb[1].mxu0 }
 0x17c   : > { %2361 = vmatmul.mubr.bf16.gmra.mrb[104].mxu1 %v7511_v5  ;;  %v7652_v26 = vadd.f32 %v5523_v17, %v5522_v46  ;;  %v5525_v18 = vpop.f32.mrb[2].mxu0 }
 0x17d   : > { %2368 = vmatprep.mubr.bf16.mxu1 %v7519_v14  ;;  %v5526_v36 = vpop.f32.mrb[3].mxu0 }
 0x17e   : > { %v7656_v14 = vadd.f32 %v5526_v36, %v5525_v18  ;;  %v6796_v36 = vld [vmem:[#allocation10 + $0x58] sm:$0xff]  }
 0x17f   : > { %v5594_v16 = vpop.f32.mrb[0].mxu1  ;;  %2272 = vmatmul.mubr.bf16.gmra.mrb[108].mxu0 %v7559_v30 }
 0x180   : > { %v5595_v2 = vpop.f32.mrb[1].mxu1  ;;  %6490 = vmatprep.mubr.bf16.mxu0 %v1038_v34 }
 0x181   : > { %v7654_v35 = vadd.f32 %v5595_v2, %v5594_v16  ;;  %v5597_v5 = vpop.f32.mrb[2].mxu1 }
 0x182   : > { %v5598_v62 = vpop.f32.mrb[3].mxu1  ;;  %v5528_v11 = vpop.f32.mrb[4].mxu0 }
 0x183   : > { %v7658_v10 = vadd.f32 %v5598_v62, %v5597_v5  ;;  %v5529_v19 = vpop.f32.mrb[5].mxu0  ;;  %v901_v5 = vld [vmem:[#allocation2 + $0x140] sm:$0xff]  ;;  %v6797_v62 = vld [vmem:[#allocation10 + $0x18] sm:$0xff]  }
 0x184   : > { %2369 = vmatmul.mubr.bf16.gmra.mrb[108].mxu1 %v7527_v12  ;;  %v7663_v51 = vadd.f32 %v5529_v19, %v5528_v11  ;;  %v5531_v54 = vpop.f32.mrb[6].mxu0  ;;  %v6794_v12 = vld [vmem:[#allocation10 + $0x50] sm:$0xff]  }
 0x185   : > { %2376 = vmatprep.mubr.bf16.mxu1 %v7535_v39  ;;  %v5532_v52 = vpop.f32.mrb[7].mxu0  ;;  %v6795_v39 = vld [vmem:[#allocation10 + $0x10] sm:$0xff]   ;;  %5982 = vmatprep.subr.bf16.mxu1 %v6794_v12 }
 0x186   : > { %v7667_v31 = vadd.f32 %v5532_v52, %v5531_v54  ;;  %5983 = vmatpush3.bf16.msra.mxu1 %v6795_v39  ;;  %v7701_v11 = vld [vmem:[%s8635_s2] ss:$0 sm:$0xff] }
 0x187   : > { %v5600_v40 = vpop.f32.mrb[4].mxu1  ;;  %6491 = vmatmul.mubr.bf16.vlgmr.msra.gmra.mrb[112].mxu0 %v7499_v58  ;;  %5984 = vmatprep.subr.bf16.mxu1 %v6796_v36  ;;  %v6799_v36 = vld [vmem:[#allocation10 + $0x20] sm:$0xff]  }
 0x188   : > { %v5601_v45 = vpop.f32.mrb[5].mxu1  ;;  %6494 = vmatprep.mubr.bf16.mxu0 %v7513_v6  ;;  %v898_v6 = vld [vmem:[#allocation2 + $0x120] sm:$0xff] }
 0x189   : > { %v7665_v25 = vadd.f32 %v5601_v45, %v5600_v40  ;;  %v5603_v56 = vpop.f32.mrb[6].mxu1  ;;  %v920_v46 = vpack.c.bf16 %v899_v28, %v898_v6 }
 0x18a   : > { %v5604_v57 = vpop.f32.mrb[7].mxu1  ;;  %v5534_v21 = vpop.f32.mrb[8].mxu0  ;;  %5985 = vmatpush3.bf16.msra.mxu1 %v6797_v62 }
 0x18b   : > { %v7669_v32 = vadd.f32 %v5604_v57, %v5603_v56  ;;  %v5535_v7 = vpop.f32.mrb[9].mxu0 }
 0x18c   : > { %2377 = vmatmul.mubr.bf16.gmra.mrb[112].mxu1 %v7541_v22  ;;  %v7675_v4 = vadd.f32 %v5535_v7, %v5534_v21  ;;  %v5537_v27 = vpop.f32.mrb[10].mxu0  ;;  %v1835_v21 = vadd.f32 %v7656_v14, %v7701_v11 }
 0x18d   : > { %2384 = vmatprep.mubr.bf16.mxu1 %v7549_v24  ;;  %v5538_v42 = vpop.f32.mrb[11].mxu0 }
 0x18e   : > { %v7679_v13 = vadd.f32 %v5538_v42, %v5537_v27  ;;  %v903_v27 = vld [vmem:[#allocation2 + $0x158] sm:$0xff] }
 0x18f   : > { %v5606_v44 = vpop.f32.mrb[8].mxu1  ;;  %6495 = vmatmul.mubr.bf16.gmra.mrb[116].mxu0 %v7529_v37 }
 0x190   : > { %v5607_v61 = vpop.f32.mrb[9].mxu1  ;;  %6498 = vmatprep.mubr.bf16.mxu0 %v7543_v23  ;;  %v900_v23 = vld [vmem:[#allocation2 + $0x138] sm:$0xff] }
 0x191   : > { %v7677_v29 = vadd.f32 %v5607_v61, %v5606_v44  ;;  %v5609_v22 = vpop.f32.mrb[10].mxu1  ;;  %v921_v56 = vpack.c.bf16 %v901_v5, %v900_v23  ;;  %v6798_v5 = vld [vmem:[#allocation10 + $0x60] sm:$0xff]  }
 0x192   : > { %v5610_v58 = vpop.f32.mrb[11].mxu1  ;;  %v5540_v53 = vpop.f32.mrb[12].mxu0  ;;  %5986 = vmatprep.subr.bf16.mxu1 %v6798_v5  ;;  %v6803_v5 = vld [vmem:[#allocation10 + $0xc8] sm:$0xff]  }
 0x193   : > { %v7681_v24 = vadd.f32 %v5610_v58, %v5609_v22  ;;  %v5541_v43 = vpop.f32.mrb[13].mxu0  ;;  %5987 = vmatpush3.bf16.msra.mxu1 %v6799_v36  ;;  %v6804_v36 = vld [vmem:[#allocation10 + $0x28] sm:$0xff]  }
 0x194   : > { %2385 = vmatmul.mubr.bf16.gmra.mrb[116].mxu1 %v7555_v60  ;;  %v7687_v16 = vadd.f32 %v5541_v43, %v5540_v53  ;;  %v5543_v17 = vpop.f32.mrb[14].mxu0  ;;  %v1840_v53 = vadd.f32 %v7663_v51, %v7701_v11  ;;  %v905_v51 = vld [vmem:[#allocation2 + $0x170] sm:$0xff] }
 0x195   : > { %2392 = vmatprep.mubr.bf16.mxu1 %v7626_v0  ;;  %v5544_v60 = vpop.f32.mrb[15].mxu0 }
 0x196   : > { %v7691_v37 = vadd.f32 %v5544_v60, %v5543_v17 }
 0x197   : > { %v5612_v15 = vpop.f32.mrb[12].mxu1  ;;  %6499 = vmatmul.mubr.bf16.gmra.mrb[120].mxu0 %v7557_v63  ;;  %v1832_v63 = vadd.f32 %v7652_v26, %v7701_v11  ;;  %v902_v26 = vld [vmem:[#allocation2 + $0x150] sm:$0xff] }
 0x198   : > { %v5613_v59 = vpop.f32.mrb[13].mxu1  ;;  %6502 = vmatprep.mubr.bf16.mxu0 %v7565_v33  ;;  %v922_v28 = vpack.c.bf16 %v903_v27, %v902_v26  ;;  %v972_v26 = vld [vmem:[#allocation2 + $0x199] sm:$0xff]  ;;  %v973_v27 = vld [vmem:[#allocation2 + $0x1a1] sm:$0xff] }
 0x199   : > { %v7689_v2 = vadd.f32 %v5613_v59, %v5612_v15  ;;  %v5615_v18 = vpop.f32.mrb[14].mxu1 }
 0x19a   : > { %v5616_v34 = vpop.f32.mrb[15].mxu1  ;;  %v5546_v40 = vpop.f32.mrb[16].mxu0 }
 0x19b   : > { %v7693_v0 = vadd.f32 %v5616_v34, %v5615_v18  ;;  %v5547_v45 = vpop.f32.mrb[17].mxu0  ;;  %v904_v34 = vld [vmem:[#allocation2 + $0x168] sm:$0xff] }
 0x19c   : > { %2393 = vmatmul.mubr.bf16.gmra.mrb[120].mxu1 %v920_v46  ;;  %v5549_v52 = vpop.f32.mrb[18].mxu0 }
 0x19d   : > { %2400 = vmatprep.mubr.bf16.mxu1 %v7632_v50  ;;  %v7705_v50 = vadd.f32 %v5547_v45, %v5546_v40  ;;  %v5550_v12 = vpop.f32.mrb[19].mxu0  ;;  %v923_v45 = vpack.c.bf16 %v905_v51, %v904_v34  ;;  %v6802_v51 = vld [vmem:[#allocation10 + $0x68] sm:$0xff]  }
 0x19e   : > { %v7709_v44 = vadd.f32 %v5550_v12, %v5549_v52  ;;  %v1851_v52 = vadd.f32 %v7679_v13, %v7701_v11  ;;  %5988 = vmatprep.subr.bf16.mxu1 %v6802_v51  ;;  %v6808_v51 = vld [vmem:[#allocation10 + $0x70] sm:$0xff]  }
 0x19f   : > { %v5634_v19 = vpop.f32.mrb[16].mxu1  ;;  %6503 = vmatmul.mubr.bf16.gmra.mrb[124].mxu0 %v7572_v1  ;;  %5989 = vmatpush3.bf16.msra.mxu1 %v6804_v36  ;;  %v6811_v36 = vld [vmem:[#allocation10 + $0x98] sm:$0xff]  }
 0x1a0   : > { %v5635_v54 = vpop.f32.mrb[17].mxu1  ;;  %6506 = vmatprep.mubr.bf16.mxu0 %v7578_v41  ;;  %v1843_v41 = vadd.f32 %v7667_v31, %v7701_v11  ;;  %5990 = vmatprep.subr.bf16.mxu1 %v6808_v51 }
 0x1a1   : > { %v5636_v33 = vadd.f32 %v5635_v54, %v5634_v19  ;;  %v5637_v57 = vpop.f32.mrb[18].mxu1 }
 0x1a2   : > { %v5638_v39 = vpop.f32.mrb[19].mxu1  ;;  %v5552_v42 = vpop.f32.mrb[20].mxu0 }
 0x1a3   : > { %v5639_v7 = vadd.f32 %v5638_v39, %v5637_v57  ;;  %v7711_v61 = vadd.f32 %v5636_v33, %v1832_v63  ;;  %v5553_v6 = vpop.f32.mrb[21].mxu0 }
 0x1a4   : > { %2401 = vmatmul.mubr.bf16.gmra.mrb[124].mxu1 %v921_v56  ;;  %v7720_v15 = vadd.f32 %v5553_v6, %v5552_v42  ;;  %v5555_v1 = vpop.f32.mrb[22].mxu0 }
 0x1a5   : > { %2408 = vmatprep.mubr.bf16.mxu1 %v7638_v8  ;;  %v7716_v22 = vadd.f32 %v5639_v7, %v1835_v21  ;;  %v5556_v8 = vpop.f32.mrb[23].mxu0  ;;  %v6800_v21 = vld [vmem:[#allocation10 + $0xc0] sm:$0xff]  }
 0x1a6   : > { %v7724_v17 = vadd.f32 %v5556_v8, %v5555_v1  ;;  %v6801_v7 = vld [vmem:[#allocation10 + $0x80] sm:$0xff]   ;;  %6090 = vmatprep.subr.bf16.mxu0 %v6800_v21 }
 0x1a7   : > { %v5640_v58 = vpop.f32.mrb[20].mxu1  ;;  %6507 = vmatmul.mubr.bf16.gmra.mrb[128].mxu0 %v7584_v20  ;;  %v1848_v20 = vadd.f32 %v7675_v4, %v7701_v11 }
 0x1a8   : > { %v5641_v14 = vpop.f32.mrb[21].mxu1  ;;  %6510 = vmatprep.mubr.bf16.mxu0 %v7590_v38  ;;  %6091 = vmatpush3.bf16.msra.mxu0 %v6801_v7 }
 0x1a9   : > { %v5642_v43 = vadd.f32 %v5641_v14, %v5640_v58  ;;  %v5643_v59 = vpop.f32.mrb[22].mxu1  ;;  %v1856_v14 = vadd.f32 %v7687_v16, %v7701_v11  ;;  %v1036_v16 = vld [vmem:[#allocation2 + $0x19a] sm:$0xff]  ;;  %6092 = vmatprep.subr.bf16.mxu0 %v6803_v5  ;;  %v6809_v5 = vld [vmem:[#allocation10 + $0xd8] sm:$0xff]  }
 0x1aa   : > { %v5644_v46 = vpop.f32.mrb[23].mxu1  ;;  %v5558_v62 = vpop.f32.mrb[24].mxu0 }
 0x1ab   : > { %v5645_v18 = vadd.f32 %v5644_v46, %v5643_v59  ;;  %v7726_v60 = vadd.f32 %v5642_v43, %v1840_v53  ;;  %v5559_v40 = vpop.f32.mrb[25].mxu0  ;;  %v989_v53 = vpack.c.bf16 %v973_v27, %v972_v26  ;;  %v1859_v59 = vadd.f32 %v7691_v37, %v7701_v11  ;;  %v6805_v37 = vld [vmem:[#allocation10 + $0x88] sm:$0xff]   ;;  %v6807_v27 = vld [vmem:[#allocation10 + $0x90] sm:$0xff]  }
 0x1ac   : > { %2409 = vmatmul.mubr.bf16.gmra.mrb[128].mxu1 %v922_v28  ;;  %v7735_v54 = vadd.f32 %v5559_v40, %v5558_v62  ;;  %v5561_v56 = vpop.f32.mrb[26].mxu0  ;;  %6093 = vmatpush3.bf16.msra.mxu0 %v6805_v37 }
 0x1ad   : > { %2416 = vmatprep.mubr.bf16.mxu1 %v7644_v48  ;;  %v7731_v23 = vadd.f32 %v5645_v18, %v1843_v41  ;;  %v5562_v63 = vpop.f32.mrb[27].mxu0  ;;  %v1037_v18 = vld [vmem:[#allocation2 + $0x1a2] sm:$0xff] }
 0x1ae   : > { %v7739_v57 = vadd.f32 %v5562_v63, %v5561_v56 }
 0x1af   : > { %v5646_v31 = vpop.f32.mrb[24].mxu1  ;;  %6511 = vmatmul.mubr.bf16.gmra.mrb[132].mxu0 %v7596_v9 }
 0x1b0   : > { %v5647_v19 = vpop.f32.mrb[25].mxu1  ;;  %6514 = vmatprep.mubr.bf16.mxu0 %v7602_v47 }
 0x1b1   : > { %v5648_v48 = vadd.f32 %v5647_v19, %v5646_v31  ;;  %v5649_v38 = vpop.f32.mrb[26].mxu1 }
 0x1b2   : > { %v5650_v33 = vpop.f32.mrb[27].mxu1  ;;  %v5564_v42 = vpop.f32.mrb[28].mxu0 }
 0x1b3   : > { %v5651_v12 = vadd.f32 %v5650_v33, %v5649_v38  ;;  %v7741_v39 = vadd.f32 %v5648_v48, %v1848_v20  ;;  %v5565_v58 = vpop.f32.mrb[29].mxu0 }
 0x1b4   : > { %2417 = vmatmul.mubr.bf16.gmra.mrb[132].mxu1 %v923_v45  ;;  %v7750_v9 = vadd.f32 %v5565_v58, %v5564_v42  ;;  %v5567_v28 = vpop.f32.mrb[30].mxu0 }
 0x1b5   : > { %2424 = vmatprep.mubr.bf16.mxu1 %v7559_v30  ;;  %v7746_v4 = vadd.f32 %v5651_v12, %v1851_v52  ;;  %v5568_v43 = vpop.f32.mrb[31].mxu0  ;;  %v1867_v52 = vadd.f32 %v7709_v44, %v7701_v11  ;;  %v1872_v44 = vadd.f32 %v7720_v15, %v7701_v11  ;;  %v6810_v15 = vld [vmem:[#allocation10 + $0x30] sm:$0xff]  }
 0x1b6   : > { %v7754_v8 = vadd.f32 %v5568_v43, %v5567_v28  ;;  %5991 = vmatpush3.bf16.msra.mxu1 %v6810_v15  ;;  %v6814_v15 = vld [vmem:[#allocation10 + $0x78] sm:$0xff]  }
 0x1b7   : > { %v5652_v13 = vpop.f32.mrb[28].mxu1  ;;  %6515 = vmatmul.mubr.bf16.gmra.mrb[136].mxu0 %v7610_v55  ;;  %v1053_v55 = vpack.c.bf16 %v1037_v18, %v1036_v16  ;;  %5992 = vmatprep.subr.bf16.mxu1 %v6814_v15 }
 0x1b8   : > { %v5653_v6 = vpop.f32.mrb[29].mxu1  ;;  %6518 = vmatprep.mubr.bf16.mxu0 %v7646_v3  ;;  %v1864_v3 = vadd.f32 %v7705_v50, %v7701_v11  ;;  %v6806_v50 = vld [vmem:[#allocation10 + $0xd0] sm:$0xff]  }
 0x1b9   : > { %v5654_v30 = vadd.f32 %v5653_v6, %v5652_v13  ;;  %v5655_v47 = vpop.f32.mrb[30].mxu1  ;;  %6094 = vmatprep.subr.bf16.mxu0 %v6806_v50  ;;  %v6812_v50 = vld [vmem:[#allocation10 + $0xe0] sm:$0xff]  }
 0x1ba   : > { %v5656_v1 = vpop.f32.mrb[31].mxu1  ;;  %v5570_v62 = vpop.f32.mrb[32].mxu0  ;;  %6095 = vmatpush3.bf16.msra.mxu0 %v6807_v27  ;;  %v6813_v27 = vld [vmem:[#allocation10 + $0xa0] sm:$0xff]  }
 0x1bb   : > { %v5657_v46 = vadd.f32 %v5656_v1, %v5655_v47  ;;  %v7756_v41 = vadd.f32 %v5654_v30, %v1856_v14  ;;  %v5571_v40 = vpop.f32.mrb[33].mxu0  ;;  %v1875_v1 = vadd.f32 %v7724_v17, %v7701_v11  ;;  %6096 = vmatprep.subr.bf16.mxu0 %v6809_v5  ;;  %v1880_v17 = vadd.f32 %v7735_v54, %v7701_v11 }
 0x1bc   : > { %2425 = vmatmul.mubr.bf16.gmra.mrb[136].mxu1 %v7604_v49  ;;  %v6870_v49 = vld [vmem:[#allocation2] sm:$0xff]  ;;  %v7767_v20 = vadd.f32 %v5571_v40, %v5570_v62  ;;  %v5573_v56 = vpop.f32.mrb[34].mxu0 }
 0x1bd   : > { %2432 = vmatprep.mubr.bf16.mxu1 %v989_v53  ;;  %v7761_v34 = vadd.f32 %v5657_v46, %v1859_v59  ;;  %v7763_v45 = vpack.c.bf16 %v6870_v49, %v6870_v49  ;;  %v5574_v63 = vpop.f32.mrb[35].mxu0 }
 0x1be   : > { %v7771_v12 = vadd.f32 %v5574_v63, %v5573_v56  ;;  %6097 = vmatpush3.bf16.msra.mxu0 %v6811_v36  ;;  %v6815_v36 = vld [vmem:[#allocation10 + $0xe8] sm:$0xff]  }
 0x1bf   : > { %v5658_v31 = vpop.f32.mrb[32].mxu1  ;;  %6519 = vmatmul.mubr.bf16.gmra.mrb[140].mxu0 %v1053_v55  ;;  %6098 = vmatprep.subr.bf16.mxu0 %v6812_v50 }
 0x1c0   : > { %v5659_v19 = vpop.f32.mrb[33].mxu1 }
 0x1c1   : > { %v5660_v48 = vadd.f32 %v5659_v19, %v5658_v31  ;;  %v5661_v38 = vpop.f32.mrb[34].mxu1 }
 0x1c2   : > { %v5662_v33 = vpop.f32.mrb[35].mxu1  ;;  %v5576_v42 = vpop.f32.mrb[36].mxu0  ;;  %6099 = vmatpush3.bf16.msra.mxu0 %v6813_v27 }
 0x1c3   : > { %v5663_v21 = vadd.f32 %v5662_v33, %v5661_v38  ;;  %v7773_v7 = vadd.f32 %v5660_v48, %v1864_v3  ;;  %v5577_v58 = vpop.f32.mrb[37].mxu0  ;;  %v1883_v38 = vadd.f32 %v7739_v57, %v7701_v11  ;;  %6100 = vmatprep.subr.bf16.mxu0 %v6815_v36 }
 0x1c4   : > { %2433 = vmatmul.mubr.bf16.gmra.mrb[140].mxu1 %v7763_v45  ;;  %v7780_v14 = vadd.f32 %v5577_v58, %v5576_v42  ;;  %v5579_v28 = vpop.f32.mrb[38].mxu0 }
 0x1c5   : > { %v7776_v26 = vadd.f32 %v5663_v21, %v1867_v52  ;;  %v5580_v53 = vpop.f32.mrb[39].mxu0 }
 0x1c6   : > { %v7784_v59 = vadd.f32 %v5580_v53, %v5579_v28 }
 0x1c7   : > { %v5664_v13 = vpop.f32.mrb[36].mxu1 }
 0x1c8   : > { %v5665_v6 = vpop.f32.mrb[37].mxu1 }
 0x1c9   : > { %v5666_v30 = vadd.f32 %v5665_v6, %v5664_v13  ;;  %v5667_v47 = vpop.f32.mrb[38].mxu1  ;;  %v1888_v6 = vadd.f32 %v7750_v9, %v7701_v11  ;;  %v6816_v9 = vld [vmem:[#allocation10 + $0x38] sm:$0xff]  }
 0x1ca   : > { %v5668_v43 = vpop.f32.mrb[39].mxu1  ;;  %v5582_v37 = vpop.f32.mrb[40].mxu0  ;;  %5993 = vmatpush3.bf16.msra.mxu1 %v6816_v9 }
 0x1cb   : > { %v5669_v46 = vadd.f32 %v5668_v43, %v5667_v47  ;;  %v7786_v16 = vadd.f32 %v5666_v30, %v1872_v44  ;;  %v5583_v31 = vpop.f32.mrb[41].mxu0  ;;  %v1891_v43 = vadd.f32 %v7754_v8, %v7701_v11  ;;  %v1896_v8 = vadd.f32 %v7767_v20, %v7701_v11 }
 0x1cc   : > { %v7792_v19 = vadd.f32 %v5583_v31, %v5582_v37  ;;  %v5585_v55 = vpop.f32.mrb[42].mxu0  ;;  %v6817_v37 = vld [vmem:[#allocation10 + $0xa8] sm:$0xff]  }
 0x1cd   : > { %v7788_v18 = vadd.f32 %v5669_v46, %v1875_v1  ;;  %v5586_v48 = vpop.f32.mrb[43].mxu0  ;;  %6101 = vmatpush3.bf16.msra.mxu0 %v6817_v37 }
 0x1ce   : > { %v7796_v63 = vadd.f32 %v5586_v48, %v5585_v55 }
 0x1cf   : > { %v5670_v62 = vpop.f32.mrb[40].mxu1 }
 0x1d0   : > { %v5671_v40 = vpop.f32.mrb[41].mxu1 }
 0x1d1   : > { %v5672_v49 = vadd.f32 %v5671_v40, %v5670_v62  ;;  %v5673_v3 = vpop.f32.mrb[42].mxu1 }
 0x1d2   : > { %v5674_v56 = vpop.f32.mrb[43].mxu1  ;;  %v5588_v54 = vpop.f32.mrb[44].mxu0 }
 0x1d3   : > { %v5675_v33 = vadd.f32 %v5674_v56, %v5673_v3  ;;  %v7798_v52 = vadd.f32 %v5672_v49, %v1880_v17  ;;  %v5589_v13 = vpop.f32.mrb[45].mxu0  ;;  %v1899_v56 = vadd.f32 %v7771_v12, %v7701_v11 }
 0x1d4   : > { %v7804_v44 = vadd.f32 %v5589_v13, %v5588_v54  ;;  %v5591_v30 = vpop.f32.mrb[46].mxu0  ;;  %v2730_v13 = vld [vmem:[#allocation2 + $0x1] sm:$0xff] }
 0x1d5   : > { %v7800_v21 = vadd.f32 %v5675_v33, %v1883_v38  ;;  %v5592_v47 = vpop.f32.mrb[47].mxu0 }
 0x1d6   : > { %v7808_v1 = vadd.f32 %v5592_v47, %v5591_v30  ;;  %v6819_v47 = vld [vmem:[#allocation10 + $0xb0] sm:$0xff]  }
 0x1d7   : > { %v5676_v42 = vpop.f32.mrb[44].mxu1 }
 0x1d8   : > { %v5677_v58 = vpop.f32.mrb[45].mxu1 }
 0x1d9   : > { %v5678_v57 = vadd.f32 %v5677_v58, %v5676_v42  ;;  %v5679_v28 = vpop.f32.mrb[46].mxu1  ;;  %v2731_v58 = vld [vmem:[#allocation2 + $0x9] sm:$0xff] }
 0x1da   : > { %v5680_v53 = vpop.f32.mrb[47].mxu1  ;;  %v5746_v31 = vpop.f32.mrb[48].mxu0 }
 0x1db   : > { %v5681_v46 = vadd.f32 %v5680_v53, %v5679_v28  ;;  %v7810_v51 = vadd.f32 %v5678_v57, %v1888_v6  ;;  %v5747_v17 = vpop.f32.mrb[49].mxu0  ;;  %v2762_v6 = vpack.c.bf16 %v2731_v58, %v2730_v13  ;;  %v6818_v28 = vld [vmem:[#allocation10 + $0xf0] sm:$0xff]  }
 0x1dc   : > { %v5748_v55 = vadd.f32 %v5747_v17, %v5746_v31  ;;  %v5749_v48 = vpop.f32.mrb[50].mxu0  ;;  %6102 = vmatprep.subr.bf16.mxu0 %v6818_v28 }
 0x1dd   : > { %v7812_v5 = vadd.f32 %v5681_v46, %v1891_v43  ;;  %v5750_v33 = vpop.f32.mrb[51].mxu0  ;;  %4001 = vmatprep.mubr.bf16.mxu1 %v2762_v6  ;;  %v1904_v43 = vadd.f32 %v7780_v14, %v7701_v11  ;;  %6103 = vmatpush3.bf16.msra.mxu0 %v6819_v47 }
 0x1de   : > { %v7821_v27 = vadd.f32 %v5748_v55, %v7711_v61  ;;  %v5751_v42 = vadd.f32 %v5750_v33, %v5749_v48  ;;  %4002 = vmatmul.mubr.bf16.vlgmr.msra.gmra.mrb[144].mxu1 %v7763_v45  ;;  %v6822_v55 = vld [vmem:[#allocation10 + $0xb8] sm:$0xff]   ;;  %v6821_v48 = vld [vmem:[#allocation10 + $0x140] sm:$0xff]  }
 0x1df   : > { %v5682_v62 = vpop.f32.mrb[48].mxu1  ;;  %6202 = vmatprep.subr.bf16.mxu1 %v6821_v48 }
 0x1e0   : > { %v5683_v40 = vpop.f32.mrb[49].mxu1  ;;  %v7826_v57 = vadd.f32 %v5751_v42, %v7716_v22  ;;  %v1907_v22 = vadd.f32 %v7784_v59, %v7701_v11 }
 0x1e1   : > { %v5684_v49 = vadd.f32 %v5683_v40, %v5682_v62  ;;  %v5685_v3 = vpop.f32.mrb[50].mxu1 }
 0x1e2   : > { %v5686_v38 = vpop.f32.mrb[51].mxu1  ;;  %v5752_v12 = vpop.f32.mrb[52].mxu0 }
 0x1e3   : > { %v7818_v50 = vadd.f32 %v5684_v49, %v1896_v8  ;;  %v5687_v54 = vadd.f32 %v5686_v38, %v5685_v3  ;;  %v5753_v61 = vpop.f32.mrb[53].mxu0  ;;  %v6820_v8 = vld [vmem:[#allocation10 + $0xf8] sm:$0xff]  }
 0x1e4   : > { %v5754_v15 = vadd.f32 %v5753_v61, %v5752_v12  ;;  %v5755_v9 = vpop.f32.mrb[54].mxu0  ;;  %6104 = vmatprep.subr.bf16.mxu0 %v6820_v8 }
 0x1e5   : > { %v7823_v20 = vadd.f32 %v5687_v54, %v1899_v56  ;;  %v5756_v62 = vpop.f32.mrb[55].mxu0  ;;  %6105 = vmatpush3.bf16.msra.mxu0 %v6822_v55  ;;  %v6823_v56 = vld [vmem:[#allocation10 + $0x100] sm:$0xff]  }
 0x1e6   : > { %v7836_v45 = vadd.f32 %v5754_v15, %v7726_v60  ;;  %v5757_v17 = vadd.f32 %v5756_v62, %v5755_v9  ;;  %v1912_v60 = vadd.f32 %v7792_v19, %v7701_v11  ;;  %6203 = vmatpush3.bf16.msra.mxu1 %v6823_v56  ;;  %v6824_v15 = vld [vmem:[#allocation10 + $0x1c0] sm:$0xff]   ;;  %v1920_v9 = vadd.f32 %v7804_v44, %v7701_v11 }
 0x1e7   : > { %v5688_v30 = vpop.f32.mrb[52].mxu1  ;;  %6314 = vmatprep.subr.bf16.mxu0 %v6824_v15 }
 0x1e8   : > { %v5689_v53 = vpop.f32.mrb[53].mxu1  ;;  %v7841_v49 = vadd.f32 %v5757_v17, %v7731_v23  ;;  %v1915_v23 = vadd.f32 %v7796_v63, %v7701_v11 }
 0x1e9   : > { %v5690_v46 = vadd.f32 %v5689_v53, %v5688_v30  ;;  %v5691_v36 = vpop.f32.mrb[54].mxu1 }
 0x1ea   : > { %v5692_v37 = vpop.f32.mrb[55].mxu1  ;;  %v5758_v59 = vpop.f32.mrb[56].mxu0 }
 0x1eb   : > { %v7833_v31 = vadd.f32 %v5690_v46, %v1904_v43  ;;  %v5693_v40 = vadd.f32 %v5692_v37, %v5691_v36  ;;  %v5759_v33 = vpop.f32.mrb[57].mxu0 }
 0x1ec   : > { %v5760_v42 = vadd.f32 %v5759_v33, %v5758_v59  ;;  %v5761_v58 = vpop.f32.mrb[58].mxu0  ;;  %v6826_v33 = vld [vmem:[#allocation10 + $0x148] sm:$0xff]  }
 0x1ed   : > { %v7838_v14 = vadd.f32 %v5693_v40, %v1907_v22  ;;  %v5762_v30 = vpop.f32.mrb[59].mxu0  ;;  %v1923_v40 = vadd.f32 %v7808_v1, %v7701_v11  ;;  %6204 = vmatprep.subr.bf16.mxu1 %v6826_v33 }
 0x1ee   : > { %v7850_v28 = vadd.f32 %v5760_v42, %v7741_v39  ;;  %v5763_v53 = vadd.f32 %v5762_v30, %v5761_v58  ;;  %v1928_v42 = vadd.f32 %v7654_v35, %v7701_v11 }
 0x1ef   : > { %v5694_v3 = vpop.f32.mrb[56].mxu1 }
 0x1f0   : > { %v5695_v38 = vpop.f32.mrb[57].mxu1  ;;  %v7855_v19 = vadd.f32 %v5763_v53, %v7746_v4 }
 0x1f1   : > { %v5696_v54 = vadd.f32 %v5695_v38, %v5694_v3  ;;  %v5697_v13 = vpop.f32.mrb[58].mxu1 }
 0x1f2   : > { %v5698_v6 = vpop.f32.mrb[59].mxu1  ;;  %v5764_v46 = vpop.f32.mrb[60].mxu0 }
 0x1f3   : > { %v7847_v12 = vadd.f32 %v5696_v54, %v1912_v60  ;;  %v5699_v47 = vadd.f32 %v5698_v6, %v5697_v13  ;;  %v5765_v63 = vpop.f32.mrb[61].mxu0  ;;  %v6827_v60 = vld [vmem:[#allocation10 + $0x108] sm:$0xff]   ;;  %v1931_v6 = vadd.f32 %v7658_v10, %v7701_v11  ;;  %v1936_v10 = vadd.f32 %v7665_v25, %v7701_v11 }
 0x1f4   : > { %v5766_v37 = vadd.f32 %v5765_v63, %v5764_v46  ;;  %v5767_v39 = vpop.f32.mrb[62].mxu0  ;;  %6205 = vmatpush3.bf16.msra.mxu1 %v6827_v60 }
 0x1f5   : > { %v7852_v61 = vadd.f32 %v5699_v47, %v1915_v23  ;;  %v5768_v8 = vpop.f32.mrb[63].mxu0 }
 0x1f6   : > { %v7864_v55 = vadd.f32 %v5766_v37, %v7756_v41  ;;  %v5769_v59 = vadd.f32 %v5768_v8, %v5767_v39 }
 0x1f7   : > { %v5700_v43 = vpop.f32.mrb[60].mxu1 }
 0x1f8   : > { %v5701_v36 = vpop.f32.mrb[61].mxu1  ;;  %v7869_v44 = vadd.f32 %v5769_v59, %v7761_v34 }
 0x1f9   : > { %v5702_v22 = vadd.f32 %v5701_v36, %v5700_v43  ;;  %v5703_v62 = vpop.f32.mrb[62].mxu1 }
 0x1fa   : > { %v5704_v17 = vpop.f32.mrb[63].mxu1  ;;  %v5770_v38 = vpop.f32.mrb[64].mxu0 }
 0x1fb   : > { %v7861_v4 = vadd.f32 %v5702_v22, %v1920_v9  ;;  %v5705_v3 = vadd.f32 %v5704_v17, %v5703_v62  ;;  %v5771_v1 = vpop.f32.mrb[65].mxu0 }
 0x1fc   : > { %v5772_v58 = vadd.f32 %v5771_v1, %v5770_v38  ;;  %v5773_v23 = vpop.f32.mrb[66].mxu0  ;;  %v6831_v1 = vld [vmem:[#allocation10 + $0x110] sm:$0xff]  }
 0x1fd   : > { %v7866_v48 = vadd.f32 %v5705_v3, %v1923_v40  ;;  %v5774_v34 = vpop.f32.mrb[67].mxu0 }
 0x1fe   : > { %v7878_v53 = vadd.f32 %v5772_v58, %v7773_v7  ;;  %v5775_v46 = vadd.f32 %v5774_v34, %v5773_v23  ;;  %v1939_v7 = vadd.f32 %v7669_v32, %v7701_v11 }
 0x1ff   : > { %v5706_v56 = vpop.f32.mrb[64].mxu1 }
 0x200   : > { %v5707_v54 = vpop.f32.mrb[65].mxu1  ;;  %v7883_v35 = vadd.f32 %v5775_v46, %v7776_v26 }
 0x201   : > { %v5708_v13 = vadd.f32 %v5707_v54, %v5706_v56  ;;  %v5709_v41 = vpop.f32.mrb[66].mxu1  ;;  %v6830_v54 = vld [vmem:[#allocation10 + $0x150] sm:$0xff]  }
 0x202   : > { %v5710_v30 = vpop.f32.mrb[67].mxu1  ;;  %v5776_v63 = vpop.f32.mrb[68].mxu0  ;;  %6206 = vmatprep.subr.bf16.mxu1 %v6830_v54 }
 0x203   : > { %v7875_v47 = vadd.f32 %v5708_v13, %v1928_v42  ;;  %v5711_v43 = vadd.f32 %v5710_v30, %v5709_v41  ;;  %v5777_v22 = vpop.f32.mrb[69].mxu0  ;;  %v1944_v13 = vadd.f32 %v7677_v29, %v7701_v11  ;;  %6207 = vmatpush3.bf16.msra.mxu1 %v6831_v1 }
 0x204   : > { %v5778_v62 = vadd.f32 %v5777_v22, %v5776_v63  ;;  %v5779_v40 = vpop.f32.mrb[70].mxu0 }
 0x205   : > { %v7880_v15 = vadd.f32 %v5711_v43, %v1931_v6  ;;  %v5780_v8 = vpop.f32.mrb[71].mxu0  ;;  %v1947_v6 = vadd.f32 %v7681_v24, %v7701_v11  ;;  %v1952_v24 = vadd.f32 %v7689_v2, %v7701_v11 }
 0x206   : > { %v7892_v26 = vadd.f32 %v5778_v62, %v7786_v16  ;;  %v5781_v56 = vadd.f32 %v5780_v8, %v5779_v40 }
 0x207   : > { %v5712_v36 = vpop.f32.mrb[68].mxu1 }
 0x208   : > { %v5713_v9 = vpop.f32.mrb[69].mxu1  ;;  %v7897_v25 = vadd.f32 %v5781_v56, %v7788_v18 }
 0x209   : > { %v5714_v37 = vadd.f32 %v5713_v9, %v5712_v36  ;;  %v5715_v39 = vpop.f32.mrb[70].mxu1 }
 0x20a   : > { %v5716_v17 = vpop.f32.mrb[71].mxu1  ;;  %v5782_v60 = vpop.f32.mrb[72].mxu0 }
 0x20b   : > { %v7889_v3 = vadd.f32 %v5714_v37, %v1936_v10  ;;  %v5717_v59 = vadd.f32 %v5716_v17, %v5715_v39  ;;  %v5783_v32 = vpop.f32.mrb[73].mxu0 }
 0x20c   : > { %v5784_v41 = vadd.f32 %v5783_v32, %v5782_v60  ;;  %v5785_v23 = vpop.f32.mrb[74].mxu0 }
 0x20d   : > { %v7894_v38 = vadd.f32 %v5717_v59, %v1939_v7  ;;  %v5786_v18 = vpop.f32.mrb[75].mxu0 }
 0x20e   : > { %v7906_v43 = vadd.f32 %v5784_v41, %v7798_v52  ;;  %v5787_v36 = vadd.f32 %v5786_v18, %v5785_v23  ;;  %v1955_v52 = vadd.f32 %v7693_v0, %v7701_v11  ;;  %v6835_v18 = vld [vmem:[#allocation10 + $0x118] sm:$0xff]  }
 0x20f   : > { %v5718_v33 = vpop.f32.mrb[72].mxu1 }
 0x210   : > { %v5719_v42 = vpop.f32.mrb[73].mxu1  ;;  %v7911_v29 = vadd.f32 %v5787_v36, %v7800_v21 }
 0x211   : > { %v5720_v58 = vadd.f32 %v5719_v42, %v5718_v33  ;;  %v5721_v16 = vpop.f32.mrb[74].mxu1 }
 0x212   : > { %v5722_v30 = vpop.f32.mrb[75].mxu1  ;;  %v5788_v22 = vpop.f32.mrb[76].mxu0 }
 0x213   : > { %v7903_v34 = vadd.f32 %v5720_v58, %v1944_v13  ;;  %v5723_v46 = vadd.f32 %v5722_v30, %v5721_v16  ;;  %v5789_v37 = vpop.f32.mrb[77].mxu0 }
 0x214   : > { %v5790_v39 = vadd.f32 %v5789_v37, %v5788_v22  ;;  %v5791_v7 = vpop.f32.mrb[78].mxu0 }
 0x215   : > { %v7908_v63 = vadd.f32 %v5723_v46, %v1947_v6  ;;  %v5792_v8 = vpop.f32.mrb[79].mxu0 }
 0x216   : > { %v7920_v21 = vadd.f32 %v5790_v39, %v7810_v51  ;;  %v5793_v33 = vadd.f32 %v5792_v8, %v5791_v7  ;;  %v6838_v7 = vld [vmem:[#allocation10 + $0x160] sm:$0xff]  }
 0x217   : > { %v5724_v9 = vpop.f32.mrb[76].mxu1  ;;  %v6839_v8 = vld [vmem:[#allocation10 + $0x120] sm:$0xff]  }
 0x218   : > { %v5725_v10 = vpop.f32.mrb[77].mxu1  ;;  %v7925_v2 = vadd.f32 %v5793_v33, %v7812_v5  ;;  %v6834_v5 = vld [vmem:[#allocation10 + $0x158] sm:$0xff]  }
 0x219   : > { %v5726_v62 = vadd.f32 %v5725_v10, %v5724_v9  ;;  %v5727_v40 = vpop.f32.mrb[78].mxu1  ;;  %6208 = vmatprep.subr.bf16.mxu1 %v6834_v5 }
 0x21a   : > { %v5728_v17 = vpop.f32.mrb[79].mxu1  ;;  %v5794_v54 = vpop.f32.mrb[80].mxu0  ;;  %6209 = vmatpush3.bf16.msra.mxu1 %v6835_v18 }
 0x21b   : > { %v7917_v59 = vadd.f32 %v5726_v62, %v1952_v24  ;;  %v5729_v56 = vadd.f32 %v5728_v17, %v5727_v40  ;;  %v5795_v42 = vpop.f32.mrb[81].mxu0  ;;  %6210 = vmatprep.subr.bf16.mxu1 %v6838_v7 }
 0x21c   : > { %v5796_v13 = vadd.f32 %v5795_v42, %v5794_v54  ;;  %v5797_v11 = vpop.f32.mrb[82].mxu0 }
 0x21d   : > { %v7922_v60 = vadd.f32 %v5729_v56, %v1955_v52  ;;  %v5798_v41 = vpop.f32.mrb[83].mxu0 }
 0x21e   : > { %v7928_v51 = vadd.f32 %v5796_v13, %v7818_v50  ;;  %v5799_v23 = vadd.f32 %v5798_v41, %v5797_v11  ;;  %6211 = vmatpush3.bf16.msra.mxu1 %v6839_v8 }
 0x21f   : > { %v5858_v1 = vpop.f32.mrb[80].mxu1 }
 0x220   : > { %v5859_v32 = vpop.f32.mrb[81].mxu1  ;;  %v7934_v46 = vadd.f32 %v5799_v23, %v7823_v20 }
 0x221   : > { %v5860_v0 = vadd.f32 %v5859_v32, %v5858_v1  ;;  %v5861_v58 = vpop.f32.mrb[82].mxu1 }
 0x222   : > { %v5862_v16 = vpop.f32.mrb[83].mxu1  ;;  %v5800_v9 = vpop.f32.mrb[84].mxu0 }
 0x223   : > { %v5863_v6 = vadd.f32 %v5862_v16, %v5861_v58  ;;  %v7931_v30 = vadd.f32 %v5860_v0, %v7821_v27  ;;  %v5801_v10 = vpop.f32.mrb[85].mxu0 }
 0x224   : > { %v5802_v37 = vadd.f32 %v5801_v10, %v5800_v9  ;;  %v5803_v62 = vpop.f32.mrb[86].mxu0 }
 0x225   : > { %v7937_v36 = vadd.f32 %v5863_v6, %v7826_v57  ;;  %v5804_v27 = vpop.f32.mrb[87].mxu0 }
 0x226   : > { %v7940_v52 = vadd.f32 %v5802_v37, %v7833_v31  ;;  %v5805_v20 = vadd.f32 %v5804_v27, %v5803_v62 }
 0x227   : > { %v5864_v22 = vpop.f32.mrb[84].mxu1 }
 0x228   : > { %v5865_v50 = vpop.f32.mrb[85].mxu1  ;;  %v7946_v56 = vadd.f32 %v5805_v20, %v7838_v14 }
 0x229   : > { %v5866_v24 = vadd.f32 %v5865_v50, %v5864_v22  ;;  %v5867_v39 = vpop.f32.mrb[86].mxu1 }
 0x22a   : > { %v5868_v40 = vpop.f32.mrb[87].mxu1  ;;  %v5806_v54 = vpop.f32.mrb[88].mxu0 }
 0x22b   : > { %v5869_v17 = vadd.f32 %v5868_v40, %v5867_v39  ;;  %v7943_v57 = vadd.f32 %v5866_v24, %v7836_v45  ;;  %v5807_v42 = vpop.f32.mrb[89].mxu0  ;;  %v6842_v39 = vld [vmem:[#allocation10 + $0x168] sm:$0xff]  }
 0x22c   : > { %v5808_v31 = vadd.f32 %v5807_v42, %v5806_v54  ;;  %v5809_v0 = vpop.f32.mrb[90].mxu0  ;;  %6212 = vmatprep.subr.bf16.mxu1 %v6842_v39 }
 0x22d   : > { %v7949_v33 = vadd.f32 %v5869_v17, %v7841_v49  ;;  %v5810_v58 = vpop.f32.mrb[91].mxu0 }
 0x22e   : > { %v7952_v41 = vadd.f32 %v5808_v31, %v7847_v12  ;;  %v5811_v16 = vadd.f32 %v5810_v58, %v5809_v0 }
 0x22f   : > { %v5870_v1 = vpop.f32.mrb[88].mxu1 }
 0x230   : > { %v5871_v32 = vpop.f32.mrb[89].mxu1  ;;  %v7958_v49 = vadd.f32 %v5811_v16, %v7852_v61 }
 0x231   : > { %v5872_v13 = vadd.f32 %v5871_v32, %v5870_v1  ;;  %v5873_v11 = vpop.f32.mrb[90].mxu1 }
 0x232   : > { %v5874_v45 = vpop.f32.mrb[91].mxu1  ;;  %v5812_v5 = vpop.f32.mrb[92].mxu0 }
 0x233   : > { %v5875_v14 = vadd.f32 %v5874_v45, %v5873_v11  ;;  %v7955_v23 = vadd.f32 %v5872_v13, %v7850_v28  ;;  %v5813_v9 = vpop.f32.mrb[93].mxu0 }
 0x234   : > { %v5814_v10 = vadd.f32 %v5813_v9, %v5812_v5  ;;  %v5815_v37 = vpop.f32.mrb[94].mxu0 }
 0x235   : > { %v7961_v6 = vadd.f32 %v5875_v14, %v7855_v19  ;;  %v5816_v24 = vpop.f32.mrb[95].mxu0  ;;  %v6843_v19 = vld [vmem:[#allocation10 + $0x128] sm:$0xff]  }
 0x236   : > { %v7964_v28 = vadd.f32 %v5814_v10, %v7861_v4  ;;  %v5817_v27 = vadd.f32 %v5816_v24, %v5815_v37  ;;  %6213 = vmatpush3.bf16.msra.mxu1 %v6843_v19 }
 0x237   : > { %v5876_v18 = vpop.f32.mrb[92].mxu1 }
 0x238   : > { %v5877_v22 = vpop.f32.mrb[93].mxu1  ;;  %v7970_v7 = vadd.f32 %v5817_v27, %v7866_v48 }
 0x239   : > { %v5878_v50 = vadd.f32 %v5877_v22, %v5876_v18  ;;  %v5879_v12 = vpop.f32.mrb[94].mxu1 }
 0x23a   : > { %v5880_v62 = vpop.f32.mrb[95].mxu1  ;;  %v5818_v17 = vpop.f32.mrb[96].mxu0 }
 0x23b   : > { %v5881_v61 = vadd.f32 %v5880_v62, %v5879_v12  ;;  %v7967_v40 = vadd.f32 %v5878_v50, %v7864_v55  ;;  %v5819_v54 = vpop.f32.mrb[97].mxu0  ;;  %v6846_v12 = vld [vmem:[#allocation10 + $0x170] sm:$0xff]  }
 0x23c   : > { %v5820_v4 = vadd.f32 %v5819_v54, %v5818_v17  ;;  %v5821_v32 = vpop.f32.mrb[98].mxu0  ;;  %6214 = vmatprep.subr.bf16.mxu1 %v6846_v12 }
 0x23d   : > { %v7973_v20 = vadd.f32 %v5881_v61, %v7869_v44  ;;  %v5822_v13 = vpop.f32.mrb[99].mxu0 }
 0x23e   : > { %v7976_v0 = vadd.f32 %v5820_v4, %v7875_v47  ;;  %v5823_v11 = vadd.f32 %v5822_v13, %v5821_v32 }
 0x23f   : > { %v5882_v8 = vpop.f32.mrb[96].mxu1 }
 0x240   : > { %v5883_v1 = vpop.f32.mrb[97].mxu1  ;;  %v7982_v44 = vadd.f32 %v5823_v11, %v7880_v15 }
 0x241   : > { %v5884_v42 = vadd.f32 %v5883_v1, %v5882_v8  ;;  %v5885_v31 = vpop.f32.mrb[98].mxu1 }
 0x242   : > { %v5886_v55 = vpop.f32.mrb[99].mxu1  ;;  %v5824_v16 = vpop.f32.mrb[100].mxu0 }
 0x243   : > { %v5887_v48 = vadd.f32 %v5886_v55, %v5885_v31  ;;  %v7979_v58 = vadd.f32 %v5884_v42, %v7878_v53  ;;  %v5825_v5 = vpop.f32.mrb[101].mxu0 }
 0x244   : > { %v5826_v9 = vadd.f32 %v5825_v5, %v5824_v16  ;;  %v5827_v10 = vpop.f32.mrb[102].mxu0 }
 0x245   : > { %v7985_v45 = vadd.f32 %v5887_v48, %v7883_v35  ;;  %v5828_v50 = vpop.f32.mrb[103].mxu0  ;;  %v6847_v35 = vld [vmem:[#allocation10 + $0x130] sm:$0xff]  }
 0x246   : > { %v7988_v53 = vadd.f32 %v5826_v9, %v7889_v3  ;;  %v5829_v24 = vadd.f32 %v5828_v50, %v5827_v10  ;;  %6215 = vmatpush3.bf16.msra.mxu1 %v6847_v35 }
 0x247   : > { %v5888_v14 = vpop.f32.mrb[100].mxu1 }
 0x248   : > { %v5889_v18 = vpop.f32.mrb[101].mxu1  ;;  %v7994_v39 = vadd.f32 %v5829_v24, %v7894_v38 }
 0x249   : > { %v5890_v22 = vadd.f32 %v5889_v18, %v5888_v14  ;;  %v5891_v47 = vpop.f32.mrb[102].mxu1 }
 0x24a   : > { %v5892_v37 = vpop.f32.mrb[103].mxu1  ;;  %v5830_v61 = vpop.f32.mrb[104].mxu0 }
 0x24b   : > { %v5893_v15 = vadd.f32 %v5892_v37, %v5891_v47  ;;  %v7991_v62 = vadd.f32 %v5890_v22, %v7892_v26  ;;  %v5831_v17 = vpop.f32.mrb[105].mxu0  ;;  %v6850_v47 = vld [vmem:[#allocation10 + $0x178] sm:$0xff]  }
 0x24c   : > { %v5832_v3 = vadd.f32 %v5831_v17, %v5830_v61  ;;  %v5833_v1 = vpop.f32.mrb[106].mxu0  ;;  %6216 = vmatprep.subr.bf16.mxu1 %v6850_v47 }
 0x24d   : > { %v7997_v27 = vadd.f32 %v5893_v15, %v7897_v25  ;;  %v5834_v42 = vpop.f32.mrb[107].mxu0 }
 0x24e   : > { %v8000_v32 = vadd.f32 %v5832_v3, %v7903_v34  ;;  %v5835_v31 = vadd.f32 %v5834_v42, %v5833_v1 }
 0x24f   : > { %v5894_v19 = vpop.f32.mrb[104].mxu1 }
 0x250   : > { %v5895_v8 = vpop.f32.mrb[105].mxu1  ;;  %v8006_v25 = vadd.f32 %v5835_v31, %v7908_v63 }
 0x251   : > { %v5896_v54 = vadd.f32 %v5895_v8, %v5894_v19  ;;  %v5897_v4 = vpop.f32.mrb[106].mxu1 }
 0x252   : > { %v5898_v26 = vpop.f32.mrb[107].mxu1  ;;  %v5836_v11 = vpop.f32.mrb[108].mxu0 }
 0x253   : > { %v5899_v38 = vadd.f32 %v5898_v26, %v5897_v4  ;;  %v8003_v13 = vadd.f32 %v5896_v54, %v7906_v43  ;;  %v5837_v16 = vpop.f32.mrb[109].mxu0 }
 0x254   : > { %v5838_v5 = vadd.f32 %v5837_v16, %v5836_v11  ;;  %v5839_v9 = vpop.f32.mrb[110].mxu0 }
 0x255   : > { %v8009_v55 = vadd.f32 %v5899_v38, %v7911_v29  ;;  %v5840_v22 = vpop.f32.mrb[111].mxu0  ;;  %v6851_v29 = vld [vmem:[#allocation10 + $0x138] sm:$0xff]  }
 0x256   : > { %v8012_v43 = vadd.f32 %v5838_v5, %v7917_v59  ;;  %v5841_v50 = vadd.f32 %v5840_v22, %v5839_v9  ;;  %6217 = vmatpush3.bf16.msra.mxu1 %v6851_v29 }
 0x257   : > { %v5900_v48 = vpop.f32.mrb[108].mxu1 }
 0x258   : > { %v5901_v14 = vpop.f32.mrb[109].mxu1  ;;  %v8018_v12 = vadd.f32 %v5841_v50, %v7922_v60  ;;  %v8036_v50 = vld [vmem:[#allocation10 + $0x200] sm:$0xff]  }
 0x259   : > { %v5902_v18 = vadd.f32 %v5901_v14, %v5900_v48  ;;  %v5903_v34 = vpop.f32.mrb[110].mxu1  ;;  %6522 = vmatprep.subr.bf16.mxu1 %v8036_v50 }
 0x25a   : > { %v5904_v10 = vpop.f32.mrb[111].mxu1  ;;  %v6492_v35 = vpop.f32.mrb[112].mxu0 }
 0x25b   : > { %v5905_v63 = vadd.f32 %v5904_v10, %v5903_v34  ;;  %v8015_v37 = vadd.f32 %v5902_v18, %v7920_v21  ;;  %v2484_v61 = vadd.f32 %v6492_v35, %v7943_v57  ;;  %v2475_v19 = vpop.f32.mrb[113].mxu0  ;;  %v2795_v35 = vld [vmem:[#allocation2 + $0xa] sm:$0xff] }
 0x25c   : > { %v2476_v8 = vadd.f32 %v2475_v19, %v7931_v30  ;;  %v6493_v3 = vpop.f32.mrb[114].mxu0 }
 0x25d   : > { %v8021_v24 = vadd.f32 %v5905_v63, %v7925_v2  ;;  %v2604_v54 = vmax.f32 %v2484_v61, 0.0  ;;  %v2487_v1 = vadd.f32 %v6493_v3, %v7949_v33  ;;  %v2478_v4 = vpop.f32.mrb[115].mxu0 }
 0x25e   : > { %v2602_v42 = vmax.f32 %v2476_v8, 0.0  ;;  %v2479_v26 = vadd.f32 %v2478_v4, %v7937_v36 }
 0x25f   : > { %v5906_v15 = vpop.f32.mrb[112].mxu1  ;;  %2636 = vst [vmem:[#allocation2 + $0x31] sm:$0xff] %v2604_v54  ;;  %v2605_v57 = vmax.f32 %v2487_v1, 0.0  ;;  %v6825_v1 = vld [vmem:[#allocation10 + $0x180] sm:$0xff]  }
 0x260   : > { %v5907_v59 = vpop.f32.mrb[113].mxu1  ;;  %2634 = vst [vmem:[#allocation2 + $0x19] sm:$0xff] %v2602_v42  ;;  %v2603_v38 = vmax.f32 %v2479_v26, 0.0 }
 0x261   : > { %v5908_v17 = vadd.f32 %v5907_v59, %v5906_v15  ;;  %v5909_v21 = vpop.f32.mrb[114].mxu1  ;;  %2637 = vst [vmem:[#allocation2 + $0x39] sm:$0xff] %v2605_v57  ;;  %v2764_v11 = vpack.c.bf16 %v2605_v57, %v2604_v54 }
 0x262   : > { %v5910_v60 = vpop.f32.mrb[115].mxu1  ;;  %2635 = vst [vmem:[#allocation2 + $0x21] sm:$0xff] %v2603_v38  ;;  %v6496_v48 = vpop.f32.mrb[116].mxu0  ;;  %v2763_v16 = vpack.c.bf16 %v2603_v38, %v2602_v42 }
 0x263   : > { %v5911_v2 = vadd.f32 %v5910_v60, %v5909_v21  ;;  %v8028_v31 = vadd.f32 %v5908_v17, %v7928_v51  ;;  %v2500_v14 = vadd.f32 %v6496_v48, %v7967_v40  ;;  %v2491_v36 = vpop.f32.mrb[117].mxu0  ;;  %v2794_v40 = vld [vmem:[#allocation2 + $0x2] sm:$0xff] }
 0x264   : > { %v2492_v51 = vadd.f32 %v2491_v36, %v7955_v23  ;;  %v6497_v34 = vpop.f32.mrb[118].mxu0  ;;  %4009 = vmatprep.mubr.bf16.mxu1 %v2763_v16  ;;  %v2826_v8 = vpack.c.bf16 %v2795_v35, %v2794_v40  ;;  %v6833_v40 = vld [vmem:[#allocation10 + $0x190] sm:$0xff]  }
 0x265   : > { %v8031_v30 = vadd.f32 %v5911_v2, %v7934_v46  ;;  %v2608_v22 = vmax.f32 %v2500_v14, 0.0  ;;  %v2503_v46 = vadd.f32 %v6497_v34, %v7973_v20  ;;  %v2494_v47 = vpop.f32.mrb[119].mxu0 }
 0x266   : > { %v2606_v63 = vmax.f32 %v2492_v51, 0.0  ;;  %v2495_v15 = vadd.f32 %v2494_v47, %v7961_v6  ;;  %v2860_v26 = vld [vmem:[#allocation2 + $0x30] sm:$0xff] }
 0x267   : > { %v5912_v33 = vpop.f32.mrb[116].mxu1  ;;  %2640 = vst [vmem:[#allocation2 + $0x61] sm:$0xff] %v2608_v22  ;;  %v2609_v23 = vmax.f32 %v2503_v46, 0.0  ;;  %v2858_v19 = vld [vmem:[#allocation2 + $0x18] sm:$0xff]  ;;  %v6832_v46 = vld [vmem:[#allocation10 + $0x1d0] sm:$0xff]  }
 0x268   : > { %v5913_v5 = vpop.f32.mrb[117].mxu1  ;;  %2638 = vst [vmem:[#allocation2 + $0x49] sm:$0xff] %v2606_v63  ;;  %v2607_v59 = vmax.f32 %v2495_v15, 0.0  ;;  %v2861_v21 = vld [vmem:[#allocation2 + $0x38] sm:$0xff] }
 0x269   : > { %v5914_v18 = vadd.f32 %v5913_v5, %v5912_v33  ;;  %v5915_v9 = vpop.f32.mrb[118].mxu1  ;;  %2641 = vst [vmem:[#allocation2 + $0x69] sm:$0xff] %v2609_v23  ;;  %v2859_v17 = vld [vmem:[#allocation2 + $0x20] sm:$0xff]  ;;  %v8046_v6 = vpack.c.bf16 %v2609_v23, %v2608_v22  ;;  %v8050_v16 = vpack.c.bf16 %v2861_v21, %v2860_v26 }
 0x26a   : > { %v5916_v10 = vpop.f32.mrb[119].mxu1  ;;  %2639 = vst [vmem:[#allocation2 + $0x51] sm:$0xff] %v2607_v59  ;;  %v2890_v54 = vpack.c.bf16 %v2859_v17, %v2858_v19  ;;  %v2765_v60 = vpack.c.bf16 %v2607_v59, %v2606_v63  ;;  %v2797_v47 = vld [vmem:[#allocation2 + $0x22] sm:$0xff] }
 0x26b   : > { %v5917_v29 = vadd.f32 %v5916_v10, %v5915_v9  ;;  %v8040_v61 = vadd.f32 %v5914_v18, %v7940_v52  ;;  %v6500_v52 = vpop.f32.mrb[120].mxu0  ;;  %v2796_v10 = vld [vmem:[#allocation2 + $0x1a] sm:$0xff] }
 0x26c   : > { %v2516_v4 = vadd.f32 %v6500_v52, %v7991_v62  ;;  %v2507_v2 = vpop.f32.mrb[121].mxu0  ;;  %4162 = vmatprep.mubr.bf16.mxu0 %v2890_v54  ;;  %4010 = vmatmul.mubr.bf16.gmra.mrb[148].mxu1 %v2890_v54  ;;  %v8066_v19 = vpack.c.bf16 %v2797_v47, %v2796_v10 }
 0x26d   : > { %v8044_v20 = vadd.f32 %v5917_v29, %v7946_v56  ;;  %v6828_v56 = vld [vmem:[#allocation10 + $0x1c8] sm:$0xff]   ;;  %v2508_v38 = vadd.f32 %v2507_v2, %v7979_v58  ;;  %v6501_v48 = vpop.f32.mrb[122].mxu0  ;;  %4163 = vmatmul.mubr.bf16.vlgmr.msra.gmra.mrb[144].mxu0 %v2826_v8  ;;  %4017 = vmatprep.mubr.bf16.mxu1 %v2764_v11 }
 0x26e   : > { %v2612_v14 = vmax.f32 %v2516_v4, 0.0  ;;  %v2519_v5 = vadd.f32 %v6501_v48, %v7997_v27  ;;  %v2510_v18 = vpop.f32.mrb[123].mxu0  ;;  %4170 = vmatprep.mubr.bf16.mxu0 %v8050_v16  ;;  %6315 = vmatpush3.bf16.msra.mxu0 %v6825_v1  ;;  %v6829_v58 = vld [vmem:[#allocation10 + $0x188] sm:$0xff]  }
 0x26f   : > { %v5918_v3 = vpop.f32.mrb[120].mxu1  ;;  %v2610_v62 = vmax.f32 %v2508_v38, 0.0  ;;  %v2511_v9 = vadd.f32 %v2510_v18, %v7985_v45  ;;  %6316 = vmatprep.subr.bf16.mxu0 %v6828_v56  ;;  %v2862_v17 = vld [vmem:[#allocation2 + $0x48] sm:$0xff]  ;;  %v2798_v48 = vld [vmem:[#allocation2 + $0x32] sm:$0xff] }
 0x270   : > { %v5919_v42 = vpop.f32.mrb[121].mxu1  ;;  %2644 = vst [vmem:[#allocation2 + $0x91] sm:$0xff] %v2612_v14  ;;  %v2613_v22 = vmax.f32 %v2519_v5, 0.0 }
 0x271   : > { %v5920_v57 = vadd.f32 %v5919_v42, %v5918_v3  ;;  %v5921_v33 = vpop.f32.mrb[122].mxu1  ;;  %2642 = vst [vmem:[#allocation2 + $0x79] sm:$0xff] %v2610_v62  ;;  %v2611_v27 = vmax.f32 %v2511_v9, 0.0  ;;  %v2863_v45 = vld [vmem:[#allocation2 + $0x50] sm:$0xff] }
 0x272   : > { %v5922_v36 = vpop.f32.mrb[123].mxu1  ;;  %2645 = vst [vmem:[#allocation2 + $0x99] sm:$0xff] %v2613_v22  ;;  %v8061_v63 = vpack.c.bf16 %v2613_v22, %v2612_v14  ;;  %v6504_v15 = vpop.f32.mrb[124].mxu0  ;;  %6317 = vmatpush3.bf16.msra.mxu0 %v6829_v58  ;;  %v8070_v54 = vpack.c.bf16 %v2863_v45, %v2862_v17  ;;  %v2799_v14 = vld [vmem:[#allocation2 + $0x3a] sm:$0xff] }
 0x273   : > { %v5923_v51 = vadd.f32 %v5922_v36, %v5921_v33  ;;  %v8056_v34 = vadd.f32 %v5920_v57, %v7952_v41  ;;  %2643 = vst [vmem:[#allocation2 + $0x81] sm:$0xff] %v2611_v27  ;;  %v8063_v41 = vpack.c.bf16 %v2611_v27, %v2610_v62  ;;  %v2532_v35 = vadd.f32 %v6504_v15, %v8015_v37  ;;  %v2523_v59 = vpop.f32.mrb[125].mxu0  ;;  %v6837_v57 = vld [vmem:[#allocation10 + $0x198] sm:$0xff]   ;;  %v6841_v62 = vld [vmem:[#allocation10 + $0x1a0] sm:$0xff]  }
 0x274   : > { %6318 = vmatprep.subr.bf16.mxu0 %v6832_v46  ;;  %v2524_v21 = vadd.f32 %v2523_v59, %v8003_v13  ;;  %v6505_v52 = vpop.f32.mrb[126].mxu0  ;;  %4018 = vmatmul.mubr.bf16.gmra.mrb[152].mxu1 %v8050_v16  ;;  %v8087_v22 = vpack.c.bf16 %v2799_v14, %v2798_v48  ;;  %v2864_v46 = vld [vmem:[#allocation2 + $0x60] sm:$0xff] }
 0x275   : > { %v8059_v11 = vadd.f32 %v5923_v51, %v7958_v49  ;;  %v6836_v49 = vld [vmem:[#allocation10 + $0x1d8] sm:$0xff]   ;;  %v2616_v1 = vmax.f32 %v2532_v35, 0.0  ;;  %v2535_v4 = vadd.f32 %v6505_v52, %v8021_v24  ;;  %v2526_v42 = vpop.f32.mrb[127].mxu0  ;;  %4171 = vmatmul.mubr.bf16.gmra.mrb[148].mxu0 %v8066_v19  ;;  %4025 = vmatprep.mubr.bf16.mxu1 %v2765_v60  ;;  %v6840_v24 = vld [vmem:[#allocation10 + $0x1e0] sm:$0xff]  }
 0x276   : > { %v2614_v2 = vmax.f32 %v2524_v21, 0.0  ;;  %v2527_v56 = vadd.f32 %v2526_v42, %v8009_v55  ;;  %4178 = vmatprep.mubr.bf16.mxu0 %v8070_v54  ;;  %6319 = vmatpush3.bf16.msra.mxu0 %v6833_v40  ;;  %v2865_v55 = vld [vmem:[#allocation2 + $0x68] sm:$0xff]  ;;  %v2801_v52 = vld [vmem:[#allocation2 + $0x52] sm:$0xff]  ;;  %v6849_v42 = vld [vmem:[#allocation10 + $0x1b0] sm:$0xff]  }
 0x277   : > { %v5924_v29 = vpop.f32.mrb[124].mxu1  ;;  %2648 = vst [vmem:[#allocation2 + $0xc1] sm:$0xff] %v2616_v1  ;;  %v2617_v38 = vmax.f32 %v2535_v4, 0.0  ;;  %6320 = vmatprep.subr.bf16.mxu0 %v6836_v49  ;;  %v6845_v49 = vld [vmem:[#allocation10 + $0x1a8] sm:$0xff]  }
 0x278   : > { %v5925_v23 = vpop.f32.mrb[125].mxu1  ;;  %2646 = vst [vmem:[#allocation2 + $0xa9] sm:$0xff] %v2614_v2  ;;  %v2615_v33 = vmax.f32 %v2527_v56, 0.0 }
 0x279   : > { %v5926_v8 = vadd.f32 %v5925_v23, %v5924_v29  ;;  %v5927_v3 = vpop.f32.mrb[126].mxu1  ;;  %2649 = vst [vmem:[#allocation2 + $0xc9] sm:$0xff] %v2617_v38  ;;  %v8082_v5 = vpack.c.bf16 %v2617_v38, %v2616_v1  ;;  %v8091_v29 = vpack.c.bf16 %v2865_v55, %v2864_v46  ;;  %v2866_v38 = vld [vmem:[#allocation2 + $0x78] sm:$0xff]  ;;  %v6853_v46 = vld [vmem:[#allocation10 + $0x1b8] sm:$0xff]  }
 0x27a   : > { %v5928_v37 = vpop.f32.mrb[127].mxu1  ;;  %2647 = vst [vmem:[#allocation2 + $0xb1] sm:$0xff] %v2615_v33  ;;  %v6508_v36 = vpop.f32.mrb[128].mxu0  ;;  %v8084_v18 = vpack.c.bf16 %v2615_v33, %v2614_v2  ;;  %6321 = vmatpush3.bf16.msra.mxu0 %v6837_v57 }
 0x27b   : > { %v5929_v26 = vadd.f32 %v5928_v37, %v5927_v3  ;;  %v8077_v13 = vadd.f32 %v5926_v8, %v7964_v28  ;;  %v2548_v51 = vadd.f32 %v6508_v36, %v8040_v61  ;;  %v2539_v58 = vpop.f32.mrb[129].mxu0  ;;  %6322 = vmatprep.subr.bf16.mxu0 %v6840_v24  ;;  %v2800_v3 = vld [vmem:[#allocation2 + $0x4a] sm:$0xff] }
 0x27c   : > { %v2540_v10 = vadd.f32 %v2539_v58, %v8028_v31  ;;  %v6509_v45 = vpop.f32.mrb[130].mxu0  ;;  %4026 = vmatmul.mubr.bf16.gmra.mrb[156].mxu1 %v8070_v54  ;;  %v8109_v57 = vpack.c.bf16 %v2801_v52, %v2800_v3 }
 0x27d   : > { %v8080_v60 = vadd.f32 %v5929_v26, %v7970_v7  ;;  %v6844_v7 = vld [vmem:[#allocation10 + $0x1e8] sm:$0xff]   ;;  %v2620_v15 = vmax.f32 %v2548_v51, 0.0  ;;  %v2551_v40 = vadd.f32 %v6509_v45, %v8044_v20  ;;  %v2542_v35 = vpop.f32.mrb[131].mxu0  ;;  %4179 = vmatmul.mubr.bf16.gmra.mrb[152].mxu0 %v8087_v22  ;;  %4033 = vmatprep.mubr.bf16.mxu1 %v8046_v6  ;;  %v6848_v20 = vld [vmem:[#allocation10 + $0x1f0] sm:$0xff]  }
 0x27e   : > { %v2618_v23 = vmax.f32 %v2540_v10, 0.0  ;;  %v2543_v17 = vadd.f32 %v2542_v35, %v8031_v30  ;;  %4186 = vmatprep.mubr.bf16.mxu0 %v8091_v29  ;;  %6323 = vmatpush3.bf16.msra.mxu0 %v6841_v62  ;;  %v2867_v30 = vld [vmem:[#allocation2 + $0x80] sm:$0xff]  ;;  %v2869_v45 = vld [vmem:[#allocation2 + $0x98] sm:$0xff] }
 0x27f   : > { %v5930_v28 = vpop.f32.mrb[128].mxu1  ;;  %2652 = vst [vmem:[#allocation2 + $0xf1] sm:$0xff] %v2620_v15  ;;  %v2621_v8 = vmax.f32 %v2551_v40, 0.0  ;;  %6324 = vmatprep.subr.bf16.mxu0 %v6844_v7  ;;  %v8113_v55 = vpack.c.bf16 %v2867_v30, %v2866_v38 }
 0x280   : > { %v5931_v9 = vpop.f32.mrb[129].mxu1  ;;  %2650 = vst [vmem:[#allocation2 + $0xd9] sm:$0xff] %v2618_v23  ;;  %v2619_v21 = vmax.f32 %v2543_v17, 0.0  ;;  %v2868_v17 = vld [vmem:[#allocation2 + $0x90] sm:$0xff] }
 0x281   : > { %v5932_v27 = vadd.f32 %v5931_v9, %v5930_v28  ;;  %v5933_v47 = vpop.f32.mrb[130].mxu1  ;;  %2653 = vst [vmem:[#allocation2 + $0xf9] sm:$0xff] %v2621_v8  ;;  %v8104_v1 = vpack.c.bf16 %v2621_v8, %v2620_v15 }
 0x282   : > { %v5934_v61 = vpop.f32.mrb[131].mxu1  ;;  %2651 = vst [vmem:[#allocation2 + $0xe1] sm:$0xff] %v2619_v21  ;;  %v6512_v4 = vpop.f32.mrb[132].mxu0  ;;  %v8106_v37 = vpack.c.bf16 %v2619_v21, %v2618_v23  ;;  %6325 = vmatpush3.bf16.msra.mxu0 %v6845_v49  ;;  %v8133_v21 = vpack.c.bf16 %v2869_v45, %v2868_v17 }
 0x283   : > { %v5935_v59 = vadd.f32 %v5934_v61, %v5933_v47  ;;  %v8099_v31 = vadd.f32 %v5932_v27, %v7976_v0  ;;  %v2564_v2 = vadd.f32 %v6512_v4, %v8077_v13  ;;  %v2555_v56 = vpop.f32.mrb[133].mxu0  ;;  %6326 = vmatprep.subr.bf16.mxu0 %v6848_v20  ;;  %v2803_v47 = vld [vmem:[#allocation2 + $0x6a] sm:$0xff] }
 0x284   : > { %v2556_v33 = vadd.f32 %v2555_v56, %v8056_v34  ;;  %v6513_v14 = vpop.f32.mrb[134].mxu0  ;;  %4034 = vmatmul.mubr.bf16.gmra.mrb[160].mxu1 %v8091_v29 }
 0x285   : > { %v8102_v6 = vadd.f32 %v5935_v59, %v7982_v44  ;;  %v6852_v44 = vld [vmem:[#allocation10 + $0x1f8] sm:$0xff]   ;;  %v2624_v28 = vmax.f32 %v2564_v2, 0.0  ;;  %v2567_v36 = vadd.f32 %v6513_v14, %v8080_v60  ;;  %v2558_v62 = vpop.f32.mrb[135].mxu0  ;;  %4187 = vmatmul.mubr.bf16.gmra.mrb[156].mxu0 %v8109_v57  ;;  %4041 = vmatprep.mubr.bf16.mxu1 %v8063_v41  ;;  %v8121_v60 = vld [vmem:[#allocation11] sm:$0xff]  }
 0x286   : > { %v2622_v51 = vmax.f32 %v2556_v33, 0.0  ;;  %v2559_v58 = vadd.f32 %v2558_v62, %v8059_v11  ;;  %4194 = vmatprep.mubr.bf16.mxu0 %v8113_v55  ;;  %6327 = vmatpush3.bf16.msra.mxu0 %v6849_v42  ;;  %v2802_v41 = vld [vmem:[#allocation2 + $0x62] sm:$0xff]  ;;  %v2871_v33 = vld [vmem:[#allocation2 + $0xb0] sm:$0xff] }
 0x287   : > { %v5936_v0 = vpop.f32.mrb[132].mxu1  ;;  %2656 = vst [vmem:[#allocation2 + $0x121] sm:$0xff] %v2624_v28  ;;  %v2625_v7 = vmax.f32 %v2567_v36, 0.0  ;;  %6328 = vmatprep.subr.bf16.mxu0 %v6852_v44  ;;  %v8128_v59 = vpack.c.bf16 %v2803_v47, %v2802_v41  ;;  %v2804_v44 = vld [vmem:[#allocation2 + $0x7a] sm:$0xff] }
 0x288   : > { %v5937_v26 = vpop.f32.mrb[133].mxu1  ;;  %2654 = vst [vmem:[#allocation2 + $0x109] sm:$0xff] %v2622_v51  ;;  %v2623_v27 = vmax.f32 %v2559_v58, 0.0 }
 0x289   : > { %v5938_v24 = vadd.f32 %v5937_v26, %v5936_v0  ;;  %v5939_v48 = vpop.f32.mrb[134].mxu1  ;;  %2657 = vst [vmem:[#allocation2 + $0x129] sm:$0xff] %v2625_v7  ;;  %v8124_v11 = vpack.c.bf16 %v2625_v7, %v2624_v28 }
 0x28a   : > { %v5940_v13 = vpop.f32.mrb[135].mxu1  ;;  %2655 = vst [vmem:[#allocation2 + $0x111] sm:$0xff] %v2623_v27  ;;  %v8126_v40 = vpack.c.bf16 %v2623_v27, %v2622_v51  ;;  %6329 = vmatpush3.bf16.msra.mxu0 %v6853_v46 }
 0x28b   : > { %v5941_v9 = vadd.f32 %v5940_v13, %v5939_v48  ;;  %v2419_v34 = vadd.f32 %v5938_v24, %v7988_v53  ;;  %v6516_v53 = vpop.f32.mrb[136].mxu0  ;;  %6570 = vmatprep.subr.bf16.mxu0 %v8121_v60  ;;  %v2805_v24 = vld [vmem:[#allocation2 + $0x82] sm:$0xff] }
 0x28c   : > { %v2571_v23 = vpop.f32.mrb[137].mxu0  ;;  %4042 = vmatmul.mubr.bf16.gmra.mrb[164].mxu1 %v8113_v55  ;;  %v2870_v13 = vld [vmem:[#allocation2 + $0xa8] sm:$0xff] }
 0x28d   : > { %v2422_v10 = vadd.f32 %v5941_v9, %v7994_v39  ;;  %v2580_v61 = vadd.f32 %v6516_v53, %v2419_v34  ;;  %v2572_v49 = vadd.f32 %v2571_v23, %v8099_v31  ;;  %v6517_v20 = vpop.f32.mrb[138].mxu0  ;;  %4195 = vmatmul.mubr.bf16.gmra.mrb[160].mxu0 %v8128_v59  ;;  %4049 = vmatprep.mubr.bf16.mxu1 %v8061_v63  ;;  %v2806_v53 = vld [vmem:[#allocation2 + $0x92] sm:$0xff] }
 0x28e   : > { %v2574_v0 = vpop.f32.mrb[139].mxu0  ;;  %4202 = vmatprep.mubr.bf16.mxu0 %v8133_v21  ;;  %v8148_v58 = vpack.c.bf16 %v2871_v33, %v2870_v13  ;;  %v2815_v13 = vld [vmem:[#allocation2 + $0xfa] sm:$0xff] }
 0x28f   : > { %v5942_v15 = vpop.f32.mrb[136].mxu1  ;;  %v2628_v3 = vmax.f32 %v2580_v61, 0.0  ;;  %v2583_v52 = vadd.f32 %v6517_v20, %v2422_v10  ;;  %v2626_v4 = vmax.f32 %v2572_v49, 0.0  ;;  %v2575_v2 = vadd.f32 %v2574_v0, %v8102_v6  ;;  %v2807_v61 = vld [vmem:[#allocation2 + $0x9a] sm:$0xff]  ;;  %v2809_v20 = vld [vmem:[#allocation2 + $0xb2] sm:$0xff] }
 0x290   : > { %v5943_v35 = vpop.f32.mrb[137].mxu1 }
 0x291   : > { %v5944_v39 = vadd.f32 %v5943_v35, %v5942_v15  ;;  %v5945_v8 = vpop.f32.mrb[138].mxu1  ;;  %2660 = vst [vmem:[#allocation2 + $0x151] sm:$0xff] %v2628_v3  ;;  %v2629_v26 = vmax.f32 %v2583_v52, 0.0  ;;  %2658 = vst [vmem:[#allocation2 + $0x139] sm:$0xff] %v2626_v4  ;;  %v2627_v56 = vmax.f32 %v2575_v2, 0.0  ;;  %v2873_v35 = vld [vmem:[#allocation2 + $0xc8] sm:$0xff] }
 0x292   : > { %v5946_v30 = vpop.f32.mrb[139].mxu1  ;;  %v6520_v14 = vpop.f32.mrb[140].mxu0 }
 0x293   : > { %v5947_v42 = vadd.f32 %v5946_v30, %v5945_v8  ;;  %v2427_v31 = vadd.f32 %v5944_v39, %v8000_v32  ;;  %2661 = vst [vmem:[#allocation2 + $0x159] sm:$0xff] %v2629_v26  ;;  %v8141_v48 = vpack.c.bf16 %v2629_v26, %v2628_v3  ;;  %2659 = vst [vmem:[#allocation2 + $0x141] sm:$0xff] %v2627_v56  ;;  %v2587_v36 = vpop.f32.mrb[141].mxu0  ;;  %v2875_v3 = vld [vmem:[#allocation2 + $0xe0] sm:$0xff]  ;;  %v2874_v30 = vld [vmem:[#allocation2 + $0xd8] sm:$0xff] }
 0x294   : > { %v8143_v6 = vpack.c.bf16 %v2627_v56, %v2626_v4  ;;  %v8145_v32 = vpack.c.bf16 %v2805_v24, %v2804_v44  ;;  %4050 = vmatmul.mubr.bf16.gmra.mrb[168].mxu1 %v8133_v21  ;;  %v8155_v39 = vpack.c.bf16 %v2807_v61, %v2806_v53  ;;  %v8168_v0 = vpack.c.bf16 %v2875_v3, %v2874_v30  ;;  %v2811_v4 = vld [vmem:[#allocation2 + $0xca] sm:$0xff]  ;;  %v2812_v56 = vld [vmem:[#allocation2 + $0xda] sm:$0xff] }
 0x295   : > { %v2430_v38 = vadd.f32 %v5947_v42, %v8006_v25  ;;  %v2588_v51 = vadd.f32 %v2587_v36, %v2427_v31  ;;  %v6521_v25 = vpop.f32.mrb[142].mxu0  ;;  %4057 = vmatprep.mubr.bf16.mxu1 %v8084_v18  ;;  %v2872_v18 = vld [vmem:[#allocation2 + $0xc0] sm:$0xff]  ;;  %v2877_v42 = vld [vmem:[#allocation2 + $0xf8] sm:$0xff]  ;;  %v2876_v31 = vld [vmem:[#allocation2 + $0xf0] sm:$0xff] }
 0x296   : > { %v2590_v46 = vpop.f32.mrb[143].mxu0  ;;  %4203 = vmatmul.mubr.bf16.gmra.mrb[164].mxu0 %v8145_v32  ;;  %v8160_v8 = vpack.c.bf16 %v2873_v35, %v2872_v18  ;;  %v8176_v26 = vpack.c.bf16 %v2877_v42, %v2876_v31  ;;  %v2878_v24 = vld [vmem:[#allocation2 + $0x108] sm:$0xff]  ;;  %v2814_v36 = vld [vmem:[#allocation2 + $0xf2] sm:$0xff] }
 0x297   : > { %v5948_v63 = vpop.f32.mrb[140].mxu1  ;;  %v2630_v27 = vmax.f32 %v2588_v51, 0.0  ;;  %v2591_v41 = vadd.f32 %v2590_v46, %v2430_v38  ;;  %4210 = vmatprep.mubr.bf16.mxu0 %v8148_v58  ;;  %v2879_v38 = vld [vmem:[#allocation2 + $0x110] sm:$0xff]  ;;  %v2881_v51 = vld [vmem:[#allocation2 + $0x128] sm:$0xff] }
 0x298   : > { %v5949_v28 = vpop.f32.mrb[141].mxu1  ;;  %v8184_v33 = vpack.c.bf16 %v2879_v38, %v2878_v24  ;;  %v2884_v61 = vld [vmem:[#allocation2 + $0x150] sm:$0xff]  ;;  %v2923_v42 = vld [vmem:[#allocation2 + $0x21] sm:$0xff] }
 0x299   : > { %v5950_v62 = vadd.f32 %v5949_v28, %v5948_v63  ;;  %v5951_v9 = vpop.f32.mrb[142].mxu1  ;;  %2662 = vst [vmem:[#allocation2 + $0x169] sm:$0xff] %v2630_v27  ;;  %v2631_v15 = vmax.f32 %v2591_v41, 0.0  ;;  %v2882_v41 = vld [vmem:[#allocation2 + $0x138] sm:$0xff] }
 0x29a   : > { %v5952_v34 = vpop.f32.mrb[143].mxu1 }
 0x29b   : > { %v2435_v7 = vadd.f32 %v5950_v62, %v8012_v43  ;;  %v5953_v10 = vadd.f32 %v5952_v34, %v5951_v9  ;;  %2663 = vst [vmem:[#allocation2 + $0x171] sm:$0xff] %v2631_v15  ;;  %v8157_v43 = vpack.c.bf16 %v2631_v15, %v2630_v27  ;;  %v2880_v34 = vld [vmem:[#allocation2 + $0x120] sm:$0xff]  ;;  %v2885_v15 = vld [vmem:[#allocation2 + $0x158] sm:$0xff] }
 0x29c   : > { %4058 = vmatmul.mubr.bf16.gmra.mrb[172].mxu1 %v8148_v58  ;;  %v8196_v46 = vpack.c.bf16 %v2881_v51, %v2880_v34  ;;  %v2883_v27 = vld [vmem:[#allocation2 + $0x140] sm:$0xff]  ;;  %v8212_v35 = vpack.c.bf16 %v2885_v15, %v2884_v61  ;;  %v6860_v34 = vld [vmem:[#allocation10 + $0x218] sm:$0xff]   ;;  %v6865_v15 = vld [vmem:[#allocation11 + $0x28] sm:$0xff]  }
 0x29d   : > { %v2596_v47 = vadd.f32 %v6520_v14, %v2435_v7  ;;  %v2438_v45 = vadd.f32 %v5953_v10, %v8018_v12  ;;  %4065 = vmatprep.mubr.bf16.mxu1 %v8082_v5  ;;  %v2808_v12 = vld [vmem:[#allocation2 + $0xaa] sm:$0xff]  ;;  %v2810_v5 = vld [vmem:[#allocation2 + $0xc2] sm:$0xff]  ;;  %v2817_v7 = vld [vmem:[#allocation2 + $0x112] sm:$0xff] }
 0x29e   : > { %4211 = vmatmul.mubr.bf16.gmra.mrb[168].mxu0 %v8155_v39  ;;  %v8165_v52 = vpack.c.bf16 %v2809_v20, %v2808_v12  ;;  %v8173_v2 = vpack.c.bf16 %v2811_v4, %v2810_v5  ;;  %v2822_v20 = vld [vmem:[#allocation2 + $0x152] sm:$0xff] }
 0x29f   : > { %v2632_v23 = vmax.f32 %v2596_v47, 0.0  ;;  %v2599_v17 = vadd.f32 %v6521_v25, %v2438_v45  ;;  %4218 = vmatprep.mubr.bf16.mxu0 %v8160_v8  ;;  %v8193_v25 = vpack.c.bf16 %v2815_v13, %v2814_v36  ;;  %v8204_v47 = vpack.c.bf16 %v2883_v27, %v2882_v41  ;;  %v2818_v45 = vld [vmem:[#allocation2 + $0x122] sm:$0xff]  ;;  %v3117_v36 = vld [vmem:[#allocation2 + $0x51] sm:$0xff] }
 0x2a0   : > { %v3116_v13 = vld [vmem:[#allocation2 + $0x49] sm:$0xff] }
 0x2a1   : > { %2664 = vst [vmem:[#allocation2 + $0x181] sm:$0xff] %v2632_v23  ;;  %v2633_v49 = vmax.f32 %v2599_v17, 0.0  ;;  %v2820_v23 = vld [vmem:[#allocation2 + $0x13a] sm:$0xff]  ;;  %v3147_v51 = vpack.c.bf16 %v3117_v36, %v3116_v13  ;;  %v6861_v27 = vld [vmem:[#allocation11 + $0x18] sm:$0xff]  }
 0x2a2   : > { %v2887_v17 = vld [vmem:[#allocation2 + $0x170] sm:$0xff] }
 0x2a3   : > { %2665 = vst [vmem:[#allocation2 + $0x189] sm:$0xff] %v2633_v49  ;;  %v2886_v49 = vld [vmem:[#allocation2 + $0x168] sm:$0xff]  ;;  %v2825_v31 = vld [vmem:[#allocation2 + $0x172] sm:$0xff] }
 0x2a4   : > { %4066 = vmatmul.mubr.bf16.gmra.mrb[176].mxu1 %v8160_v8  ;;  %v8220_v12 = vpack.c.bf16 %v2887_v17, %v2886_v49  ;;  %v6869_v17 = vld [vmem:[#allocation11 + $0x38] sm:$0xff]  }
 0x2a5   : > { %4073 = vmatprep.mubr.bf16.mxu1 %v8106_v37  ;;  %v2813_v37 = vld [vmem:[#allocation2 + $0xe2] sm:$0xff] }
 0x2a6   : > { %4219 = vmatmul.mubr.bf16.gmra.mrb[172].mxu0 %v8165_v52  ;;  %v8181_v44 = vpack.c.bf16 %v2813_v37, %v2812_v56  ;;  %v2922_v56 = vld [vmem:[#allocation2 + $0x19] sm:$0xff] }
 0x2a7   : > { %4226 = vmatprep.mubr.bf16.mxu0 %v8168_v0  ;;  %v3115_v37 = vld [vmem:[#allocation2 + $0x39] sm:$0xff]  ;;  %v2954_v38 = vpack.c.bf16 %v2923_v42, %v2922_v56 }
 0x2a8   : > { %v2888_v5 = vld [vmem:[#allocation2 + $0x180] sm:$0xff] }
 0x2aa   : > { %v2889_v3 = vld [vmem:[#allocation2 + $0x188] sm:$0xff] }
 0x2ab   : > { %v8228_v4 = vpack.c.bf16 %v2889_v3, %v2888_v5  ;;  %v3126_v3 = vld [vmem:[#allocation2 + $0xc1] sm:$0xff] }
 0x2ac   : > { %4074 = vmatmul.mubr.bf16.gmra.mrb[180].mxu1 %v8168_v0 }
 0x2ad   : > { %4081 = vmatprep.mubr.bf16.mxu1 %v8104_v1 }
 0x2ae   : > { %4227 = vmatmul.mubr.bf16.gmra.mrb[176].mxu0 %v8173_v2 }
 0x2af   : > { %4234 = vmatprep.mubr.bf16.mxu0 %v8176_v26 }
 0x2b1   : > { %v5994_v63 = vpop.f32.mrb[144].mxu1 }
 0x2b2   : > { %v5995_v1 = vpop.f32.mrb[145].mxu1 }
 0x2b3   : > { %v8189_v14 = vadd.f32 %v5995_v1, %v5994_v63  ;;  %v5997_v28 = vpop.f32.mrb[146].mxu1  ;;  %v3114_v63 = vld [vmem:[#allocation2 + $0x31] sm:$0xff] }
 0x2b4   : > { %4082 = vmatmul.mubr.bf16.gmra.mrb[184].mxu1 %v8176_v26  ;;  %v5998_v62 = vpop.f32.mrb[147].mxu1  ;;  %v6856_v1 = vld [vmem:[#allocation10 + $0x208] sm:$0xff]  }
 0x2b5   : > { %4089 = vmatprep.mubr.bf16.mxu1 %v8126_v40  ;;  %v8191_v9 = vadd.f32 %v5998_v62, %v5997_v28  ;;  %v2816_v40 = vld [vmem:[#allocation2 + $0x10a] sm:$0xff]  ;;  %v3146_v28 = vpack.c.bf16 %v3115_v37, %v3114_v63  ;;  %v6857_v62 = vld [vmem:[#allocation11 + $0x8] sm:$0xff]  }
 0x2b6   : > { %4235 = vmatmul.mubr.bf16.gmra.mrb[180].mxu0 %v8181_v44  ;;  %v8201_v10 = vpack.c.bf16 %v2817_v7, %v2816_v40  ;;  %v3119_v40 = vld [vmem:[#allocation2 + $0x69] sm:$0xff]  ;;  %v3118_v7 = vld [vmem:[#allocation2 + $0x61] sm:$0xff] }
 0x2b7   : > { %4242 = vmatprep.mubr.bf16.mxu0 %v8184_v33  ;;  %v3148_v41 = vpack.c.bf16 %v3119_v40, %v3118_v7 }
 0x2bc   : > { %4090 = vmatmul.mubr.bf16.gmra.mrb[188].mxu1 %v8184_v33 }
 0x2bd   : > { %4097 = vmatprep.mubr.bf16.mxu1 %v8124_v11  ;;  %v2819_v11 = vld [vmem:[#allocation2 + $0x12a] sm:$0xff] }
 0x2be   : > { %4243 = vmatmul.mubr.bf16.gmra.mrb[184].mxu0 %v8193_v25  ;;  %v8209_v53 = vpack.c.bf16 %v2819_v11, %v2818_v45  ;;  %v3121_v45 = vld [vmem:[#allocation2 + $0x81] sm:$0xff]  ;;  %v3120_v11 = vld [vmem:[#allocation2 + $0x79] sm:$0xff] }
 0x2bf   : > { %4250 = vmatprep.mubr.bf16.mxu0 %v8196_v46  ;;  %v3149_v61 = vpack.c.bf16 %v3121_v45, %v3120_v11  ;;  %v3141_v45 = vld [vmem:[#allocation2 + $0x171] sm:$0xff] }
 0x2c4   : > { %4098 = vmatmul.mubr.bf16.gmra.mrb[192].mxu1 %v8196_v46 }
 0x2c5   : > { %4105 = vmatprep.mubr.bf16.mxu1 %v8143_v6  ;;  %v2821_v6 = vld [vmem:[#allocation2 + $0x142] sm:$0xff] }
 0x2c6   : > { %4251 = vmatmul.mubr.bf16.gmra.mrb[188].mxu0 %v8201_v10  ;;  %v8217_v18 = vpack.c.bf16 %v2821_v6, %v2820_v23  ;;  %v6868_v23 = vld [vmem:[#allocation10 + $0x238] sm:$0xff]   ;;  %v3122_v6 = vld [vmem:[#allocation2 + $0x91] sm:$0xff] }
 0x2c7   : > { %4258 = vmatprep.mubr.bf16.mxu0 %v8204_v47 }
 0x2cc   : > { %4106 = vmatmul.mubr.bf16.gmra.mrb[196].mxu1 %v8204_v47 }
 0x2cd   : > { %4113 = vmatprep.mubr.bf16.mxu1 %v8141_v48  ;;  %v2823_v48 = vld [vmem:[#allocation2 + $0x15a] sm:$0xff] }
 0x2ce   : > { %4259 = vmatmul.mubr.bf16.gmra.mrb[192].mxu0 %v8209_v53  ;;  %v8225_v30 = vpack.c.bf16 %v2823_v48, %v2822_v20  ;;  %v3127_v48 = vld [vmem:[#allocation2 + $0xc9] sm:$0xff] }
 0x2cf   : > { %4266 = vmatprep.mubr.bf16.mxu0 %v8212_v35  ;;  %v3152_v5 = vpack.c.bf16 %v3127_v48, %v3126_v3  ;;  %v3016_v48 = vld [vmem:[#allocation2 + $0x182] sm:$0xff]  ;;  %v3017_v3 = vld [vmem:[#allocation2 + $0x18a] sm:$0xff] }
 0x2d4   : > { %4114 = vmatmul.mubr.bf16.gmra.mrb[200].mxu1 %v8212_v35 }
 0x2d5   : > { %4121 = vmatprep.mubr.bf16.mxu1 %v8157_v43  ;;  %v2824_v43 = vld [vmem:[#allocation2 + $0x16a] sm:$0xff] }
 0x2d6   : > { %4267 = vmatmul.mubr.bf16.gmra.mrb[196].mxu0 %v8217_v18  ;;  %v8233_v24 = vpack.c.bf16 %v2825_v31, %v2824_v43 }
 0x2d7   : > { %4274 = vmatprep.mubr.bf16.mxu0 %v8220_v12 }
 0x2dc   : > { %4122 = vmatmul.mubr.bf16.gmra.mrb[204].mxu1 %v8220_v12 }
 0x2dd   : > { %4323 = vmatprep.mubr.bf16.mxu1 %v8066_v19  ;;  %v6858_v19 = vld [vmem:[#allocation10 + $0x210] sm:$0xff]  }
 0x2de   : > { %4275 = vmatmul.mubr.bf16.gmra.mrb[200].mxu0 %v8225_v30 }
 0x2df   : > { %4282 = vmatprep.mubr.bf16.mxu0 %v8228_v4 }
 0x2e4   : > { %4324 = vmatmul.mubr.bf16.vlgmr.msra.gmra.mrb[208].mxu1 %v2954_v38 }
 0x2e5   : > { %4331 = vmatprep.mubr.bf16.mxu1 %v8087_v22  ;;  %6523 = vmatpush3.bf16.msra.mxu1 %v8036_v50  ;;  %v6859_v50 = vld [vmem:[#allocation11 + $0x10] sm:$0xff]   ;;  %v6862_v22 = vld [vmem:[#allocation10 + $0x220] sm:$0xff]  }
 0x2e6   : > { %4283 = vmatmul.mubr.bf16.gmra.mrb[204].mxu0 %v8233_v24  ;;  %6524 = vmatprep.subr.bf16.mxu1 %v6856_v1 }
 0x2e7   : > { %4484 = vmatprep.mubr.bf16.mxu0 %v3146_v28 }
 0x2e9   : > { %6525 = vmatpush3.bf16.msra.mxu1 %v6856_v1 }
 0x2ea   : > { %6526 = vmatprep.subr.bf16.mxu1 %v6858_v19 }
 0x2ec   : > { %4332 = vmatmul.mubr.bf16.gmra.mrb[212].mxu1 %v3146_v28  ;;  %v3139_v28 = vld [vmem:[#allocation2 + $0x159] sm:$0xff] }
 0x2ed   : > { %4339 = vmatprep.mubr.bf16.mxu1 %v8109_v57  ;;  %6527 = vmatpush3.bf16.msra.mxu1 %v6858_v19  ;;  %v6863_v57 = vld [vmem:[#allocation11 + $0x20] sm:$0xff]  }
 0x2ee   : > { %4485 = vmatmul.mubr.bf16.vlgmr.msra.gmra.mrb[208].mxu0 %v8050_v16  ;;  %6528 = vmatprep.subr.bf16.mxu1 %v6860_v34  ;;  %v6864_v16 = vld [vmem:[#allocation10 + $0x228] sm:$0xff]  }
 0x2ef   : > { %4492 = vmatprep.mubr.bf16.mxu0 %v3147_v51  ;;  %6571 = vmatpush3.bf16.msra.mxu0 %v8121_v60  ;;  %v6866_v60 = vld [vmem:[#allocation10 + $0x230] sm:$0xff]  }
 0x2f0   : > { %6572 = vmatprep.subr.bf16.mxu0 %v6857_v62 }
 0x2f1   : > { %6529 = vmatpush3.bf16.msra.mxu1 %v6860_v34 }
 0x2f2   : > { %6530 = vmatprep.subr.bf16.mxu1 %v6862_v22 }
 0x2f3   : > { %6573 = vmatpush3.bf16.msra.mxu0 %v6857_v62 }
 0x2f4   : > { %6574 = vmatprep.subr.bf16.mxu0 %v6859_v50  ;;  %4340 = vmatmul.mubr.bf16.gmra.mrb[216].mxu1 %v3147_v51  ;;  %v3138_v51 = vld [vmem:[#allocation2 + $0x151] sm:$0xff] }
 0x2f5   : > { %4347 = vmatprep.mubr.bf16.mxu1 %v8128_v59  ;;  %6531 = vmatpush3.bf16.msra.mxu1 %v6862_v22  ;;  %v3123_v59 = vld [vmem:[#allocation2 + $0x99] sm:$0xff]  ;;  %v3158_v40 = vpack.c.bf16 %v3139_v28, %v3138_v51 }
 0x2f6   : > { %4493 = vmatmul.mubr.bf16.gmra.mrb[212].mxu0 %v8070_v54  ;;  %6532 = vmatprep.subr.bf16.mxu1 %v6864_v16  ;;  %v6867_v54 = vld [vmem:[#allocation11 + $0x30] sm:$0xff]   ;;  %v3150_v49 = vpack.c.bf16 %v3123_v59, %v3122_v6 }
 0x2f7   : > { %4500 = vmatprep.mubr.bf16.mxu0 %v3148_v41  ;;  %6575 = vmatpush3.bf16.msra.mxu0 %v6859_v50 }
 0x2f8   : > { %6576 = vmatprep.subr.bf16.mxu0 %v6861_v27 }
 0x2f9   : > { %6533 = vmatpush3.bf16.msra.mxu1 %v6864_v16 }
 0x2fa   : > { %6534 = vmatprep.subr.bf16.mxu1 %v6866_v60 }
 0x2fb   : > { %6577 = vmatpush3.bf16.msra.mxu0 %v6861_v27 }
 0x2fc   : > { %6578 = vmatprep.subr.bf16.mxu0 %v6863_v57  ;;  %4348 = vmatmul.mubr.bf16.gmra.mrb[220].mxu1 %v3148_v41 }
 0x2fd   : > { %4355 = vmatprep.mubr.bf16.mxu1 %v8145_v32  ;;  %6535 = vmatpush3.bf16.msra.mxu1 %v6866_v60  ;;  %v3124_v32 = vld [vmem:[#allocation2 + $0xa9] sm:$0xff] }
 0x2fe   : > { %4501 = vmatmul.mubr.bf16.gmra.mrb[216].mxu0 %v8091_v29  ;;  %6536 = vmatprep.subr.bf16.mxu1 %v6868_v23  ;;  %v3125_v29 = vld [vmem:[#allocation2 + $0xb1] sm:$0xff] }
 0x2ff   : > { %4508 = vmatprep.mubr.bf16.mxu0 %v3149_v61  ;;  %6579 = vmatpush3.bf16.msra.mxu0 %v6863_v57  ;;  %v3151_v20 = vpack.c.bf16 %v3125_v29, %v3124_v32 }
 0x300   : > { %6580 = vmatprep.subr.bf16.mxu0 %v6865_v15 }
 0x301   : > { %6537 = vmatpush3.bf16.msra.mxu1 %v6868_v23 }
 0x303   : > { %6581 = vmatpush3.bf16.msra.mxu0 %v6865_v15 }
 0x304   : > { %6582 = vmatprep.subr.bf16.mxu0 %v6867_v54  ;;  %4356 = vmatmul.mubr.bf16.gmra.mrb[224].mxu1 %v3149_v61 }
 0x305   : > { %4363 = vmatprep.mubr.bf16.mxu1 %v8155_v39  ;;  %v3128_v39 = vld [vmem:[#allocation2 + $0xd9] sm:$0xff] }
 0x306   : > { %4509 = vmatmul.mubr.bf16.gmra.mrb[220].mxu0 %v8113_v55  ;;  %v3129_v55 = vld [vmem:[#allocation2 + $0xe1] sm:$0xff] }
 0x307   : > { %4516 = vmatprep.mubr.bf16.mxu0 %v3150_v49  ;;  %6583 = vmatpush3.bf16.msra.mxu0 %v6867_v54  ;;  %v3153_v42 = vpack.c.bf16 %v3129_v55, %v3128_v39 }
 0x308   : > { %6584 = vmatprep.subr.bf16.mxu0 %v6869_v17 }
 0x30b   : > { %6585 = vmatpush3.bf16.msra.mxu0 %v6869_v17 }
 0x30c   : > { %4364 = vmatmul.mubr.bf16.gmra.mrb[228].mxu1 %v3150_v49 }
 0x30d   : > { %4371 = vmatprep.mubr.bf16.mxu1 %v8165_v52  ;;  %v3130_v52 = vld [vmem:[#allocation2 + $0xf1] sm:$0xff] }
 0x30e   : > { %4517 = vmatmul.mubr.bf16.gmra.mrb[224].mxu0 %v8133_v21  ;;  %v3131_v21 = vld [vmem:[#allocation2 + $0xf9] sm:$0xff] }
 0x30f   : > { %4524 = vmatprep.mubr.bf16.mxu0 %v3151_v20  ;;  %v3154_v43 = vpack.c.bf16 %v3131_v21, %v3130_v52 }
 0x314   : > { %4372 = vmatmul.mubr.bf16.gmra.mrb[232].mxu1 %v3151_v20 }
 0x315   : > { %4379 = vmatprep.mubr.bf16.mxu1 %v8173_v2  ;;  %v3132_v2 = vld [vmem:[#allocation2 + $0x109] sm:$0xff] }
 0x316   : > { %4525 = vmatmul.mubr.bf16.gmra.mrb[228].mxu0 %v8148_v58  ;;  %v3133_v58 = vld [vmem:[#allocation2 + $0x111] sm:$0xff] }
 0x317   : > { %4532 = vmatprep.mubr.bf16.mxu0 %v3152_v5  ;;  %v3155_v31 = vpack.c.bf16 %v3133_v58, %v3132_v2 }
 0x31c   : > { %4380 = vmatmul.mubr.bf16.gmra.mrb[236].mxu1 %v3152_v5 }
 0x31d   : > { %4387 = vmatprep.mubr.bf16.mxu1 %v8181_v44  ;;  %v3134_v44 = vld [vmem:[#allocation2 + $0x121] sm:$0xff] }
 0x31e   : > { %4533 = vmatmul.mubr.bf16.gmra.mrb[232].mxu0 %v8160_v8  ;;  %v3135_v8 = vld [vmem:[#allocation2 + $0x129] sm:$0xff] }
 0x31f   : > { %4540 = vmatprep.mubr.bf16.mxu0 %v3153_v42  ;;  %v3156_v56 = vpack.c.bf16 %v3135_v8, %v3134_v44 }
 0x324   : > { %4388 = vmatmul.mubr.bf16.gmra.mrb[240].mxu1 %v3153_v42  ;;  %v3143_v42 = vld [vmem:[#allocation2 + $0x189] sm:$0xff] }
 0x325   : > { %4395 = vmatprep.mubr.bf16.mxu1 %v8193_v25  ;;  %v3136_v25 = vld [vmem:[#allocation2 + $0x139] sm:$0xff] }
 0x326   : > { %4541 = vmatmul.mubr.bf16.gmra.mrb[236].mxu0 %v8168_v0  ;;  %v3137_v0 = vld [vmem:[#allocation2 + $0x141] sm:$0xff] }
 0x327   : > { %4548 = vmatprep.mubr.bf16.mxu0 %v3154_v43  ;;  %v3157_v37 = vpack.c.bf16 %v3137_v0, %v3136_v25 }
 0x32c   : > { %4396 = vmatmul.mubr.bf16.gmra.mrb[244].mxu1 %v3154_v43 }
 0x32d   : > { %4403 = vmatprep.mubr.bf16.mxu1 %v8201_v10 }
 0x32e   : > { %4549 = vmatmul.mubr.bf16.gmra.mrb[240].mxu0 %v8176_v26  ;;  %v8264_v26 = vld [vmem:[%s8637_s4] ss:$0 sm:$0xff] }
 0x32f   : > { %4556 = vmatprep.mubr.bf16.mxu0 %v3155_v31  ;;  %v4004_v19 = vadd.f32 %v8189_v14, %v8264_v26  ;;  %v4007_v34 = vadd.f32 %v8191_v9, %v8264_v26 }
 0x334   : > { %4404 = vmatmul.mubr.bf16.gmra.mrb[248].mxu1 %v3155_v31  ;;  %v3142_v31 = vld [vmem:[#allocation2 + $0x181] sm:$0xff] }
 0x335   : > { %4411 = vmatprep.mubr.bf16.mxu1 %v8209_v53  ;;  %v3160_v0 = vpack.c.bf16 %v3143_v42, %v3142_v31 }
 0x336   : > { %4557 = vmatmul.mubr.bf16.gmra.mrb[244].mxu0 %v8184_v33 }
 0x337   : > { %4564 = vmatprep.mubr.bf16.mxu0 %v3156_v56 }
 0x33c   : > { %4412 = vmatmul.mubr.bf16.gmra.mrb[252].mxu1 %v3156_v56 }
 0x33d   : > { %4419 = vmatprep.mubr.bf16.mxu1 %v8217_v18 }
 0x33e   : > { %4565 = vmatmul.mubr.bf16.gmra.mrb[248].mxu0 %v8196_v46 }
 0x33f   : > { %4572 = vmatprep.mubr.bf16.mxu0 %v3157_v37  ;;  %v6000_v10 = vpop.f32.mrb[148].mxu1 }
 0x340   : > { %v6106_v38 = vpop.f32.mrb[144].mxu0  ;;  %v6001_v33 = vpop.f32.mrb[149].mxu1 }
 0x341   : > { %v6002_v63 = vadd.f32 %v6001_v33, %v6000_v10  ;;  %v6107_v53 = vpop.f32.mrb[145].mxu0  ;;  %v6003_v1 = vpop.f32.mrb[150].mxu1  ;;  %v3144_v10 = vld [vmem:[#allocation2 + $0x199] sm:$0xff] }
 0x342   : > { %v6108_v36 = vadd.f32 %v6107_v53, %v6106_v38  ;;  %v6109_v46 = vpop.f32.mrb[146].mxu0  ;;  %v6004_v13 = vpop.f32.mrb[151].mxu1  ;;  %v3145_v38 = vld [vmem:[#allocation2 + $0x1a1] sm:$0xff]  ;;  %v3178_v53 = vld [vmem:[#allocation2 + $0x32] sm:$0xff] }
 0x343   : > { %v6005_v18 = vadd.f32 %v6004_v13, %v6003_v1  ;;  %v6110_v62 = vpop.f32.mrb[147].mxu0  ;;  %v4012_v9 = vadd.f32 %v6002_v63, %v8264_v26  ;;  %v3179_v1 = vld [vmem:[#allocation2 + $0x3a] sm:$0xff] }
 0x344   : > { %v8270_v50 = vadd.f32 %v6108_v36, %v4004_v19  ;;  %v6111_v22 = vadd.f32 %v6110_v62, %v6109_v46  ;;  %4420 = vmatmul.mubr.bf16.gmra.mrb[0].mxu1 %v3157_v37  ;;  %v3161_v62 = vpack.c.bf16 %v3145_v38, %v3144_v10  ;;  %v3186_v38 = vld [vmem:[#allocation2 + $0x92] sm:$0xff] }
 0x345   : > { %4427 = vmatprep.mubr.bf16.mxu1 %v8225_v30  ;;  %v4015_v30 = vadd.f32 %v6005_v18, %v8264_v26 }
 0x346   : > { %4573 = vmatmul.mubr.bf16.gmra.mrb[252].mxu0 %v8204_v47  ;;  %v8274_v7 = vadd.f32 %v6111_v22, %v4007_v34  ;;  %v3140_v47 = vld [vmem:[#allocation2 + $0x169] sm:$0xff]  ;;  %v3210_v22 = vpack.c.bf16 %v3179_v1, %v3178_v53 }
 0x347   : > { %4580 = vmatprep.mubr.bf16.mxu0 %v3158_v40  ;;  %v6006_v14 = vpop.f32.mrb[152].mxu1  ;;  %v3159_v17 = vpack.c.bf16 %v3141_v45, %v3140_v47  ;;  %v4774_v45 = vld [vmem:[%s7321_s20] sm:$0xff] }
 0x348   : > { %v6112_v27 = vpop.f32.mrb[148].mxu0  ;;  %v6007_v41 = vpop.f32.mrb[153].mxu1 }
 0x349   : > { %v6008_v16 = vadd.f32 %v6007_v41, %v6006_v14  ;;  %v6113_v57 = vpop.f32.mrb[149].mxu0  ;;  %v6009_v60 = vpop.f32.mrb[154].mxu1 }
 0x34a   : > { %v6114_v11 = vadd.f32 %v6113_v57, %v6112_v27  ;;  %v6115_v15 = vpop.f32.mrb[150].mxu0  ;;  %v6010_v61 = vpop.f32.mrb[155].mxu1 }
 0x34b   : > { %v6011_v23 = vadd.f32 %v6010_v61, %v6009_v60  ;;  %v6116_v54 = vpop.f32.mrb[151].mxu0  ;;  %v4020_v21 = vadd.f32 %v6008_v16, %v8264_v26  ;;  %v3180_v16 = vld [vmem:[#allocation2 + $0x4a] sm:$0xff]  ;;  %v3181_v60 = vld [vmem:[#allocation2 + $0x52] sm:$0xff]  ;;  %v3182_v61 = vld [vmem:[#allocation2 + $0x62] sm:$0xff] }
 0x34c   : > { %v8278_v59 = vadd.f32 %v6114_v11, %v4012_v9  ;;  %v6117_v6 = vadd.f32 %v6116_v54, %v6115_v15  ;;  %4428 = vmatmul.mubr.bf16.gmra.mrb[4].mxu1 %v3158_v40  ;;  %v4775_v9 = vld [vmem:[%s7321_s20 + $0x8] sm:$0xff] }
 0x34d   : > { %4435 = vmatprep.mubr.bf16.mxu1 %v8233_v24  ;;  %v8285_v24 = vpack.c.bf16 %v3017_v3, %v3016_v48  ;;  %v4023_v8 = vadd.f32 %v6011_v23, %v8264_v26  ;;  %v3183_v23 = vld [vmem:[#allocation2 + $0x6a] sm:$0xff]  ;;  %v3211_v48 = vpack.c.bf16 %v3181_v60, %v3180_v16  ;;  %v4806_v3 = vpack.c.bf16 %v4775_v9, %v4774_v45  ;;  %v4780_v60 = vld [vmem:[%s7321_s20 + $0x30] sm:$0xff] }
 0x34e   : > { %4581 = vmatmul.mubr.bf16.gmra.mrb[0].mxu0 %v8212_v35  ;;  %v8282_v49 = vadd.f32 %v6117_v6, %v4015_v30  ;;  %v6871_v6 = vld [vmem:[#allocation2] sm:$0xff]  ;;  %v4781_v45 = vld [vmem:[%s7321_s20 + $0x38] sm:$0xff] }
 0x34f   : > { %4588 = vmatprep.mubr.bf16.mxu0 %v3159_v17  ;;  %v6012_v29 = vpop.f32.mrb[156].mxu1 }
 0x350   : > { %v6118_v32 = vpop.f32.mrb[152].mxu0  ;;  %v6013_v20 = vpop.f32.mrb[157].mxu1 }
 0x351   : > { %v6014_v5 = vadd.f32 %v6013_v20, %v6012_v29  ;;  %v6119_v55 = vpop.f32.mrb[153].mxu0  ;;  %v6015_v39 = vpop.f32.mrb[158].mxu1 }
 0x352   : > { %v6120_v52 = vadd.f32 %v6119_v55, %v6118_v32  ;;  %v6121_v43 = vpop.f32.mrb[154].mxu0  ;;  %v6016_v58 = vpop.f32.mrb[159].mxu1 }
 0x353   : > { %v6017_v35 = vadd.f32 %v6016_v58, %v6015_v39  ;;  %v6122_v2 = vpop.f32.mrb[155].mxu0  ;;  %v4028_v46 = vadd.f32 %v6014_v5, %v8264_v26  ;;  %v3212_v39 = vpack.c.bf16 %v3183_v23, %v3182_v61  ;;  %v3184_v58 = vld [vmem:[#allocation2 + $0x7a] sm:$0xff] }
 0x354   : > { %v8288_v44 = vadd.f32 %v6120_v52, %v4020_v21  ;;  %v6123_v56 = vadd.f32 %v6122_v2, %v6121_v43  ;;  %4436 = vmatmul.mubr.bf16.gmra.mrb[8].mxu1 %v3159_v17  ;;  %v3097_v17 = vpack.c.bf16 %v6871_v6, %v6871_v6  ;;  %v4777_v2 = vld [vmem:[%s7321_s20 + $0x18] sm:$0xff]  ;;  %v4783_v61 = vld [vmem:[%s7321_s20 + $0x48] sm:$0xff] }
 0x355   : > { %4443 = vmatprep.mubr.bf16.mxu1 %v8285_v24  ;;  %v4031_v40 = vadd.f32 %v6017_v35, %v8264_v26  ;;  %v4776_v35 = vld [vmem:[%s7321_s20 + $0x10] sm:$0xff] }
 0x356   : > { %4589 = vmatmul.mubr.bf16.gmra.mrb[4].mxu0 %v8220_v12  ;;  %v8292_v25 = vadd.f32 %v6123_v56, %v4023_v8  ;;  %v3185_v8 = vld [vmem:[#allocation2 + $0x82] sm:$0xff]  ;;  %v4778_v56 = vld [vmem:[%s7321_s20 + $0x20] sm:$0xff] }
 0x357   : > { %4596 = vmatprep.mubr.bf16.mxu0 %v3160_v0  ;;  %v6018_v37 = vpop.f32.mrb[160].mxu1 }
 0x358   : > { %v6124_v33 = vpop.f32.mrb[156].mxu0  ;;  %v6019_v63 = vpop.f32.mrb[161].mxu1 }
 0x359   : > { %v6020_v28 = vadd.f32 %v6019_v63, %v6018_v37  ;;  %v6125_v19 = vpop.f32.mrb[157].mxu0  ;;  %v6021_v36 = vpop.f32.mrb[162].mxu1 }
 0x35a   : > { %v6126_v13 = vadd.f32 %v6125_v19, %v6124_v33  ;;  %v6127_v18 = vpop.f32.mrb[158].mxu0  ;;  %v6022_v12 = vpop.f32.mrb[163].mxu1  ;;  %v3187_v33 = vld [vmem:[#allocation2 + $0x9a] sm:$0xff] }
 0x35b   : > { %v6023_v51 = vadd.f32 %v6022_v12, %v6021_v36  ;;  %v6128_v34 = vpop.f32.mrb[159].mxu0 }
 0x35c   : > { %v8296_v14 = vadd.f32 %v6126_v13, %v4028_v46  ;;  %v6129_v27 = vadd.f32 %v6128_v34, %v6127_v18  ;;  %4444 = vmatmul.mubr.bf16.gmra.mrb[12].mxu1 %v3160_v0  ;;  %v4779_v0 = vld [vmem:[%s7321_s20 + $0x28] sm:$0xff]  ;;  %v3213_v18 = vpack.c.bf16 %v3185_v8, %v3184_v58  ;;  %v3214_v34 = vpack.c.bf16 %v3187_v33, %v3186_v38  ;;  %v4786_v38 = vld [vmem:[%s7321_s20 + $0x60] sm:$0xff] }
 0x35d   : > { %6538 = vmatprep.mubr.bf16.mxu1 %v3210_v22  ;;  %v4039_v42 = vadd.f32 %v6023_v51, %v8264_v26  ;;  %v4808_v12 = vpack.c.bf16 %v4779_v0, %v4778_v56  ;;  %v3192_v8 = vld [vmem:[#allocation2 + $0xda] sm:$0xff]  ;;  %v4785_v0 = vld [vmem:[%s7321_s20 + $0x58] sm:$0xff] }
 0x35e   : > { %4597 = vmatmul.mubr.bf16.gmra.mrb[8].mxu0 %v8228_v4  ;;  %v8299_v41 = vadd.f32 %v6129_v27, %v4031_v40  ;;  %v4036_v4 = vadd.f32 %v6020_v28, %v8264_v26  ;;  %v4807_v28 = vpack.c.bf16 %v4777_v2, %v4776_v35  ;;  %v4784_v56 = vld [vmem:[%s7321_s20 + $0x50] sm:$0xff]  ;;  %v4787_v33 = vld [vmem:[%s7321_s20 + $0x68] sm:$0xff] }
 0x35f   : > { %4604 = vmatprep.mubr.bf16.mxu0 %v3161_v62  ;;  %v6024_v57 = vpop.f32.mrb[164].mxu1 }
 0x360   : > { %v6130_v11 = vpop.f32.mrb[160].mxu0  ;;  %v6025_v15 = vpop.f32.mrb[165].mxu1 }
 0x361   : > { %v6026_v54 = vadd.f32 %v6025_v15, %v6024_v57  ;;  %v6131_v47 = vpop.f32.mrb[161].mxu0  ;;  %v6027_v30 = vpop.f32.mrb[166].mxu1  ;;  %v3188_v57 = vld [vmem:[#allocation2 + $0xaa] sm:$0xff] }
 0x362   : > { %v6132_v29 = vadd.f32 %v6131_v47, %v6130_v11  ;;  %v6133_v32 = vpop.f32.mrb[162].mxu0  ;;  %v6028_v20 = vpop.f32.mrb[167].mxu1  ;;  %v3189_v11 = vld [vmem:[#allocation2 + $0xb2] sm:$0xff]  ;;  %v3190_v47 = vld [vmem:[#allocation2 + $0xc2] sm:$0xff] }
 0x363   : > { %v6029_v5 = vadd.f32 %v6028_v20, %v6027_v30  ;;  %v6134_v55 = vpop.f32.mrb[163].mxu0  ;;  %v4044_v19 = vadd.f32 %v6026_v54, %v8264_v26  ;;  %v4782_v15 = vld [vmem:[%s7321_s20 + $0x40] sm:$0xff] }
 0x364   : > { %v8305_v21 = vadd.f32 %v6132_v29, %v4036_v4  ;;  %v6135_v52 = vadd.f32 %v6134_v55, %v6133_v32  ;;  %6539 = vmatmul.mubr.bf16.vlgmr.msra.gmra.mrb[16].mxu1 %v3211_v48  ;;  %v3191_v30 = vld [vmem:[#allocation2 + $0xca] sm:$0xff]  ;;  %v4809_v29 = vpack.c.bf16 %v4781_v45, %v4780_v60  ;;  %v4810_v55 = vpack.c.bf16 %v4783_v61, %v4782_v15 }
 0x365   : > { %6542 = vmatprep.mubr.bf16.mxu1 %v3212_v39  ;;  %v4047_v22 = vadd.f32 %v6029_v5, %v8264_v26  ;;  %v3215_v5 = vpack.c.bf16 %v3189_v11, %v3188_v57  ;;  %v3196_v61 = vld [vmem:[#allocation2 + $0x10a] sm:$0xff] }
 0x366   : > { %4605 = vmatmul.mubr.bf16.gmra.mrb[12].mxu0 %v3097_v17  ;;  %v8307_v43 = vadd.f32 %v6135_v52, %v4039_v42  ;;  %v3216_v52 = vpack.c.bf16 %v3191_v30, %v3190_v47  ;;  %v3197_v30 = vld [vmem:[#allocation2 + $0x112] sm:$0xff] }
 0x367   : > { %6586 = vmatprep.mubr.bf16.mxu0 %v4806_v3  ;;  %v6030_v31 = vpop.f32.mrb[168].mxu1 }
 0x368   : > { %v6031_v10 = vpop.f32.mrb[169].mxu1 }
 0x369   : > { %v6136_v37 = vpop.f32.mrb[164].mxu0  ;;  %v6032_v63 = vadd.f32 %v6031_v10, %v6030_v31  ;;  %v6033_v1 = vpop.f32.mrb[170].mxu1  ;;  %v3193_v10 = vld [vmem:[#allocation2 + $0xe2] sm:$0xff] }
 0x36a   : > { %v6137_v53 = vpop.f32.mrb[165].mxu0  ;;  %v6034_v13 = vpop.f32.mrb[171].mxu1 }
 0x36b   : > { %v6138_v36 = vadd.f32 %v6137_v53, %v6136_v37  ;;  %v6139_v46 = vpop.f32.mrb[166].mxu0  ;;  %v6035_v62 = vadd.f32 %v6034_v13, %v6033_v1  ;;  %v4052_v32 = vadd.f32 %v6032_v63, %v8264_v26  ;;  %v3194_v1 = vld [vmem:[#allocation2 + $0xf2] sm:$0xff]  ;;  %v4811_v13 = vpack.c.bf16 %v4785_v0, %v4784_v56 }
 0x36c   : > { %v6140_v51 = vpop.f32.mrb[167].mxu0  ;;  %6543 = vmatmul.mubr.bf16.gmra.mrb[20].mxu1 %v3213_v18 }
 0x36d   : > { %v8315_v40 = vadd.f32 %v6138_v36, %v4044_v19  ;;  %v6141_v27 = vadd.f32 %v6140_v51, %v6139_v46  ;;  %6546 = vmatprep.mubr.bf16.mxu1 %v3214_v34  ;;  %v4055_v58 = vadd.f32 %v6035_v62, %v8264_v26  ;;  %v3217_v34 = vpack.c.bf16 %v3193_v10, %v3192_v8 }
 0x36e   : > { %6587 = vmatmul.mubr.bf16.vlgmr.msra.gmra.mrb[16].mxu0 %v4807_v28  ;;  %v3195_v28 = vld [vmem:[#allocation2 + $0xfa] sm:$0xff] }
 0x36f   : > { %v8317_v16 = vadd.f32 %v6141_v27, %v4047_v22  ;;  %6590 = vmatprep.mubr.bf16.mxu0 %v4808_v12  ;;  %v6036_v9 = vpop.f32.mrb[172].mxu1  ;;  %v4812_v22 = vpack.c.bf16 %v4787_v33, %v4786_v38  ;;  %v3218_v60 = vpack.c.bf16 %v3195_v28, %v3194_v1  ;;  %v4792_v1 = vld [vmem:[%s7321_s20 + $0x90] sm:$0xff]  ;;  %v4793_v28 = vld [vmem:[%s7321_s20 + $0x98] sm:$0xff] }
 0x370   : > { %v6037_v54 = vpop.f32.mrb[173].mxu1 }
 0x371   : > { %v6142_v23 = vpop.f32.mrb[168].mxu0  ;;  %v6038_v6 = vadd.f32 %v6037_v54, %v6036_v9  ;;  %v6039_v4 = vpop.f32.mrb[174].mxu1  ;;  %v4789_v54 = vld [vmem:[%s7321_s20 + $0x78] sm:$0xff] }
 0x372   : > { %v6143_v17 = vpop.f32.mrb[169].mxu0  ;;  %v6040_v3 = vpop.f32.mrb[175].mxu1 }
 0x373   : > { %v6144_v20 = vadd.f32 %v6143_v17, %v6142_v23  ;;  %v6145_v48 = vpop.f32.mrb[170].mxu0  ;;  %v6041_v39 = vadd.f32 %v6040_v3, %v6039_v4  ;;  %v4060_v18 = vadd.f32 %v6038_v6, %v8264_v26  ;;  %v4788_v23 = vld [vmem:[%s7321_s20 + $0x70] sm:$0xff]  ;;  %v4790_v6 = vld [vmem:[%s7321_s20 + $0x80] sm:$0xff]  ;;  %v4791_v17 = vld [vmem:[%s7321_s20 + $0x88] sm:$0xff] }
 0x374   : > { %v6146_v42 = vpop.f32.mrb[171].mxu0  ;;  %6547 = vmatmul.mubr.bf16.gmra.mrb[24].mxu1 %v3215_v5  ;;  %v4814_v8 = vpack.c.bf16 %v4791_v17, %v4790_v6 }
 0x375   : > { %v8325_v35 = vadd.f32 %v6144_v20, %v4052_v32  ;;  %v6147_v2 = vadd.f32 %v6146_v42, %v6145_v48  ;;  %6550 = vmatprep.mubr.bf16.mxu1 %v3216_v52  ;;  %v4063_v45 = vadd.f32 %v6041_v39, %v8264_v26  ;;  %v3198_v32 = vld [vmem:[#allocation2 + $0x122] sm:$0xff]  ;;  %v3199_v20 = vld [vmem:[#allocation2 + $0x12a] sm:$0xff] }
 0x376   : > { %6591 = vmatmul.mubr.bf16.gmra.mrb[20].mxu0 %v4809_v29 }
 0x377   : > { %v8327_v31 = vadd.f32 %v6147_v2, %v4055_v58  ;;  %6594 = vmatprep.mubr.bf16.mxu0 %v4810_v55  ;;  %v6042_v37 = vpop.f32.mrb[176].mxu1  ;;  %v4813_v55 = vpack.c.bf16 %v4789_v54, %v4788_v23  ;;  %v3219_v2 = vpack.c.bf16 %v3197_v30, %v3196_v61 }
 0x378   : > { %v6043_v53 = vpop.f32.mrb[177].mxu1 }
 0x379   : > { %v6148_v63 = vpop.f32.mrb[172].mxu0  ;;  %v6044_v19 = vadd.f32 %v6043_v53, %v6042_v37  ;;  %v6045_v46 = vpop.f32.mrb[178].mxu1  ;;  %v3220_v37 = vpack.c.bf16 %v3199_v20, %v3198_v32  ;;  %v3200_v53 = vld [vmem:[#allocation2 + $0x13a] sm:$0xff]  ;;  %v3204_v20 = vld [vmem:[#allocation2 + $0x16a] sm:$0xff] }
 0x37a   : > { %v6149_v36 = vpop.f32.mrb[173].mxu0  ;;  %v6046_v51 = vpop.f32.mrb[179].mxu1 }
 0x37b   : > { %v6150_v12 = vadd.f32 %v6149_v36, %v6148_v63  ;;  %v6151_v62 = vpop.f32.mrb[174].mxu0  ;;  %v6047_v27 = vadd.f32 %v6046_v51, %v6045_v46  ;;  %v4068_v39 = vadd.f32 %v6044_v19, %v8264_v26  ;;  %v3201_v36 = vld [vmem:[#allocation2 + $0x142] sm:$0xff]  ;;  %v4794_v46 = vld [vmem:[%s7321_s20 + $0xa0] sm:$0xff]  ;;  %v3203_v51 = vld [vmem:[#allocation2 + $0x15a] sm:$0xff] }
 0x37c   : > { %v6152_v57 = vpop.f32.mrb[175].mxu0  ;;  %6551 = vmatmul.mubr.bf16.gmra.mrb[28].mxu1 %v3217_v34  ;;  %v3221_v23 = vpack.c.bf16 %v3201_v36, %v3200_v53 }
 0x37d   : > { %v8335_v9 = vadd.f32 %v6150_v12, %v4060_v18  ;;  %v6153_v11 = vadd.f32 %v6152_v57, %v6151_v62  ;;  %6554 = vmatprep.mubr.bf16.mxu1 %v3218_v60  ;;  %v4071_v10 = vadd.f32 %v6047_v27, %v8264_v26  ;;  %v3202_v62 = vld [vmem:[#allocation2 + $0x152] sm:$0xff]  ;;  %v4815_v57 = vpack.c.bf16 %v4793_v28, %v4792_v1 }
 0x37e   : > { %6595 = vmatmul.mubr.bf16.gmra.mrb[24].mxu0 %v4811_v13  ;;  %v4795_v13 = vld [vmem:[%s7321_s20 + $0xa8] sm:$0xff]  ;;  %v3222_v6 = vpack.c.bf16 %v3203_v51, %v3202_v62  ;;  %v3209_v62 = vld [vmem:[#allocation2 + $0x1a2] sm:$0xff] }
 0x37f   : > { %v8337_v15 = vadd.f32 %v6153_v11, %v4063_v45  ;;  %6598 = vmatprep.mubr.bf16.mxu0 %v4812_v22  ;;  %v6048_v47 = vpop.f32.mrb[180].mxu1  ;;  %v4816_v54 = vpack.c.bf16 %v4795_v13, %v4794_v46 }
 0x380   : > { %v6049_v29 = vpop.f32.mrb[181].mxu1 }
 0x381   : > { %v6154_v4 = vpop.f32.mrb[176].mxu0  ;;  %v6050_v48 = vadd.f32 %v6049_v29, %v6048_v47  ;;  %v6051_v5 = vpop.f32.mrb[182].mxu1 }
 0x382   : > { %v6155_v3 = vpop.f32.mrb[177].mxu0  ;;  %v6052_v58 = vpop.f32.mrb[183].mxu1 }
 0x383   : > { %v6156_v42 = vadd.f32 %v6155_v3, %v6154_v4  ;;  %v6157_v52 = vpop.f32.mrb[178].mxu0  ;;  %v6053_v56 = vadd.f32 %v6052_v58, %v6051_v5  ;;  %v4076_v60 = vadd.f32 %v6050_v48, %v8264_v26  ;;  %v4796_v48 = vld [vmem:[%s7321_s20 + $0xb0] sm:$0xff]  ;;  %v4797_v3 = vld [vmem:[%s7321_s20 + $0xb8] sm:$0xff] }
 0x384   : > { %v6158_v0 = vpop.f32.mrb[179].mxu0  ;;  %6555 = vmatmul.mubr.bf16.gmra.mrb[32].mxu1 %v3219_v2 }
 0x385   : > { %v8345_v38 = vadd.f32 %v6156_v42, %v4068_v39  ;;  %v6159_v33 = vadd.f32 %v6158_v0, %v6157_v52  ;;  %6558 = vmatprep.mubr.bf16.mxu1 %v3220_v37  ;;  %v4079_v17 = vadd.f32 %v6053_v56, %v8264_v26  ;;  %v4798_v39 = vld [vmem:[%s7321_s20 + $0xc0] sm:$0xff]  ;;  %v4799_v42 = vld [vmem:[%s7321_s20 + $0xc8] sm:$0xff]  ;;  %v4817_v0 = vpack.c.bf16 %v4797_v3, %v4796_v48 }
 0x386   : > { %6599 = vmatmul.mubr.bf16.gmra.mrb[28].mxu0 %v4813_v55  ;;  %v3205_v55 = vld [vmem:[#allocation2 + $0x172] sm:$0xff]  ;;  %v4818_v28 = vpack.c.bf16 %v4799_v42, %v4798_v39 }
 0x387   : > { %v8347_v63 = vadd.f32 %v6159_v33, %v4071_v10  ;;  %6602 = vmatprep.mubr.bf16.mxu0 %v4814_v8  ;;  %v6054_v19 = vpop.f32.mrb[184].mxu1  ;;  %v3223_v1 = vpack.c.bf16 %v3205_v55, %v3204_v20 }
 0x388   : > { %v6055_v12 = vpop.f32.mrb[185].mxu1 }
 0x389   : > { %v6160_v18 = vpop.f32.mrb[180].mxu0  ;;  %v6056_v34 = vadd.f32 %v6055_v12, %v6054_v19  ;;  %v6057_v27 = vpop.f32.mrb[186].mxu1  ;;  %v3208_v12 = vld [vmem:[#allocation2 + $0x19a] sm:$0xff] }
 0x38a   : > { %v6161_v22 = vpop.f32.mrb[181].mxu0  ;;  %v6058_v61 = vpop.f32.mrb[187].mxu1 }
 0x38b   : > { %v6162_v45 = vadd.f32 %v6161_v22, %v6160_v18  ;;  %v6163_v11 = vpop.f32.mrb[182].mxu0  ;;  %v6059_v47 = vadd.f32 %v6058_v61, %v6057_v27  ;;  %v4084_v37 = vadd.f32 %v6056_v34, %v8264_v26  ;;  %v4800_v34 = vld [vmem:[%s7321_s20 + $0xd0] sm:$0xff]  ;;  %v4801_v22 = vld [vmem:[%s7321_s20 + $0xd8] sm:$0xff]  ;;  %v3225_v61 = vpack.c.bf16 %v3209_v62, %v3208_v12 }
 0x38c   : > { %v6164_v30 = vpop.f32.mrb[183].mxu0  ;;  %6559 = vmatmul.mubr.bf16.gmra.mrb[36].mxu1 %v3221_v23 }
 0x38d   : > { %v8355_v4 = vadd.f32 %v6162_v45, %v4076_v60  ;;  %v6165_v29 = vadd.f32 %v6164_v30, %v6163_v11  ;;  %6562 = vmatprep.mubr.bf16.mxu1 %v3222_v6  ;;  %v4087_v46 = vadd.f32 %v6059_v47, %v8264_v26  ;;  %v4803_v60 = vld [vmem:[%s7321_s20 + $0xe8] sm:$0xff]  ;;  %v4819_v30 = vpack.c.bf16 %v4801_v22, %v4800_v34 }
 0x38e   : > { %6603 = vmatmul.mubr.bf16.gmra.mrb[32].mxu0 %v4815_v57  ;;  %v4802_v57 = vld [vmem:[%s7321_s20 + $0xe0] sm:$0xff] }
 0x38f   : > { %v8357_v32 = vadd.f32 %v6165_v29, %v4079_v17  ;;  %6606 = vmatprep.mubr.bf16.mxu0 %v4816_v54  ;;  %v6060_v5 = vpop.f32.mrb[188].mxu1  ;;  %v4820_v20 = vpack.c.bf16 %v4803_v60, %v4802_v57 }
 0x390   : > { %v6061_v58 = vpop.f32.mrb[189].mxu1 }
 0x391   : > { %v6166_v52 = vpop.f32.mrb[184].mxu0  ;;  %v6062_v2 = vadd.f32 %v6061_v58, %v6060_v5  ;;  %v6063_v56 = vpop.f32.mrb[190].mxu1  ;;  %v4805_v58 = vld [vmem:[%s7321_s20 + $0xf8] sm:$0xff] }
 0x392   : > { %v6167_v8 = vpop.f32.mrb[185].mxu0  ;;  %v6064_v53 = vpop.f32.mrb[191].mxu1 }
 0x393   : > { %v6168_v10 = vadd.f32 %v6167_v8, %v6166_v52  ;;  %v6169_v33 = vpop.f32.mrb[186].mxu0  ;;  %v6065_v19 = vadd.f32 %v6064_v53, %v6063_v56  ;;  %v4804_v52 = vld [vmem:[%s7321_s20 + $0xf0] sm:$0xff]  ;;  %s5214_s20 = scalar_lea.sflag [#allocation7], %s7317_s21 }
 0x394   : > { %v6170_v36 = vpop.f32.mrb[187].mxu0  ;;  %6563 = vmatmul.mubr.bf16.gmra.mrb[40].mxu1 %v3223_v1 }
 0x395   : > { %v8365_v13 = vadd.f32 %v6168_v10, %v4084_v37  ;;  %v6171_v18 = vadd.f32 %v6170_v36, %v6169_v33  ;;  %6566 = vmatprep.mubr.bf16.mxu1 %v8285_v24  ;;  %v4092_v24 = vadd.f32 %v6062_v2, %v8264_v26  ;;  %v4095_v5 = vadd.f32 %v6065_v19, %v8264_v26 }
 0x396   : > { %6607 = vmatmul.mubr.bf16.gmra.mrb[36].mxu0 %v4817_v0  ;;  %v4821_v33 = vpack.c.bf16 %v4805_v58, %v4804_v52 }
 0x397   : > { %v8368_v51 = vadd.f32 %v6171_v18, %v4087_v46  ;;  %6610 = vmatprep.mubr.bf16.mxu0 %v4818_v28  ;;  %v6066_v27 = vpop.f32.mrb[192].mxu1 }
 0x398   : > { %v6067_v11 = vpop.f32.mrb[193].mxu1 }
 0x399   : > { %v6172_v45 = vpop.f32.mrb[188].mxu0  ;;  %v6068_v23 = vadd.f32 %v6067_v11, %v6066_v27  ;;  %v6069_v47 = vpop.f32.mrb[194].mxu1 }
 0x39a   : > { %v6173_v54 = vpop.f32.mrb[189].mxu0  ;;  %v6070_v29 = vpop.f32.mrb[195].mxu1 }
 0x39b   : > { %v6174_v6 = vadd.f32 %v6173_v54, %v6172_v45  ;;  %v6175_v17 = vpop.f32.mrb[190].mxu0  ;;  %v6071_v48 = vadd.f32 %v6070_v29, %v6069_v47  ;;  %v4100_v53 = vadd.f32 %v6068_v23, %v8264_v26 }
 0x39c   : > { %v6176_v3 = vpop.f32.mrb[191].mxu0  ;;  %6567 = vmatmul.mubr.bf16.gmra.mrb[44].mxu1 %v3225_v61 }
 0x39d   : > { %v8376_v55 = vadd.f32 %v6174_v6, %v4092_v24  ;;  %v6177_v39 = vadd.f32 %v6176_v3, %v6175_v17  ;;  %v4103_v18 = vadd.f32 %v6071_v48, %v8264_v26 }
 0x39e   : > { %6611 = vmatmul.mubr.bf16.gmra.mrb[40].mxu0 %v4819_v30 }
 0x39f   : > { %v8378_v42 = vadd.f32 %v6177_v39, %v4095_v5  ;;  %6614 = vmatprep.mubr.bf16.mxu0 %v4820_v20  ;;  %v6072_v8 = vpop.f32.mrb[196].mxu1 }
 0x3a0   : > { %v6073_v56 = vpop.f32.mrb[197].mxu1 }
 0x3a1   : > { %v6178_v2 = vpop.f32.mrb[192].mxu0  ;;  %v6074_v0 = vadd.f32 %v6073_v56, %v6072_v8  ;;  %v6075_v10 = vpop.f32.mrb[198].mxu1 }
 0x3a2   : > { %v6179_v37 = vpop.f32.mrb[193].mxu0  ;;  %v6076_v19 = vpop.f32.mrb[199].mxu1 }
 0x3a3   : > { %v6180_v1 = vadd.f32 %v6179_v37, %v6178_v2  ;;  %v6181_v28 = vpop.f32.mrb[194].mxu0  ;;  %v6077_v36 = vadd.f32 %v6076_v19, %v6075_v10  ;;  %v4108_v61 = vadd.f32 %v6074_v0, %v8264_v26 }
 0x3a4   : > { %v6182_v46 = vpop.f32.mrb[195].mxu0 }
 0x3a5   : > { %v8384_v12 = vadd.f32 %v6180_v1, %v4100_v53  ;;  %v6183_v62 = vadd.f32 %v6182_v46, %v6181_v28  ;;  %v4111_v6 = vadd.f32 %v6077_v36, %v8264_v26 }
 0x3a6   : > { %6615 = vmatmul.mubr.bf16.gmra.mrb[44].mxu0 %v4821_v33 }
 0x3a7   : > { %v8386_v34 = vadd.f32 %v6183_v62, %v4103_v18  ;;  %v6078_v22 = vpop.f32.mrb[200].mxu1 }
 0x3a8   : > { %v6079_v57 = vpop.f32.mrb[201].mxu1 }
 0x3a9   : > { %v6184_v27 = vpop.f32.mrb[196].mxu0  ;;  %v6080_v60 = vadd.f32 %v6079_v57, %v6078_v22  ;;  %v6081_v11 = vpop.f32.mrb[202].mxu1 }
 0x3aa   : > { %v6185_v45 = vpop.f32.mrb[197].mxu0  ;;  %v6082_v47 = vpop.f32.mrb[203].mxu1 }
 0x3ab   : > { %v6186_v23 = vadd.f32 %v6185_v45, %v6184_v27  ;;  %v6187_v54 = vpop.f32.mrb[198].mxu0  ;;  %v6083_v30 = vadd.f32 %v6082_v47, %v6081_v11  ;;  %v4116_v8 = vadd.f32 %v6080_v60, %v8264_v26 }
 0x3ac   : > { %v6188_v24 = vpop.f32.mrb[199].mxu0 }
 0x3ad   : > { %v8390_v17 = vadd.f32 %v6186_v23, %v4108_v61  ;;  %v6189_v29 = vadd.f32 %v6188_v24, %v6187_v54  ;;  %v4119_v33 = vadd.f32 %v6083_v30, %v8264_v26 }
 0x3af   : > { %v8392_v20 = vadd.f32 %v6189_v29, %v4111_v6  ;;  %v6084_v48 = vpop.f32.mrb[204].mxu1 }
 0x3b0   : > { %v6085_v5 = vpop.f32.mrb[205].mxu1 }
 0x3b1   : > { %v6190_v3 = vpop.f32.mrb[200].mxu0  ;;  %v6086_v39 = vadd.f32 %v6085_v5, %v6084_v48  ;;  %v6087_v58 = vpop.f32.mrb[206].mxu1 }
 0x3b2   : > { %v6191_v52 = vpop.f32.mrb[201].mxu0  ;;  %v6088_v0 = vpop.f32.mrb[207].mxu1 }
 0x3b3   : > { %v6192_v2 = vadd.f32 %v6191_v52, %v6190_v3  ;;  %v6193_v56 = vpop.f32.mrb[202].mxu0  ;;  %v6089_v37 = vadd.f32 %v6088_v0, %v6087_v58  ;;  %v4124_v27 = vadd.f32 %v6086_v39, %v8264_v26 }
 0x3b4   : > { %v6194_v10 = vpop.f32.mrb[203].mxu0 }
 0x3b5   : > { %v8396_v53 = vadd.f32 %v6192_v2, %v4116_v8  ;;  %v6195_v1 = vadd.f32 %v6194_v10, %v6193_v56  ;;  %v4127_v54 = vadd.f32 %v6089_v37, %v8264_v26 }
 0x3b7   : > { %v8398_v28 = vadd.f32 %v6195_v1, %v4119_v33  ;;  %v6218_v19 = vpop.f32.mrb[208].mxu1 }
 0x3b8   : > { %v6219_v46 = vpop.f32.mrb[209].mxu1 }
 0x3b9   : > { %v6196_v36 = vpop.f32.mrb[204].mxu0  ;;  %v6220_v62 = vadd.f32 %v6219_v46, %v6218_v19  ;;  %v6221_v22 = vpop.f32.mrb[210].mxu1 }
 0x3ba   : > { %v6197_v18 = vpop.f32.mrb[205].mxu0  ;;  %v6222_v45 = vpop.f32.mrb[211].mxu1 }
 0x3bb   : > { %v6198_v57 = vadd.f32 %v6197_v18, %v6196_v36  ;;  %v6199_v60 = vpop.f32.mrb[206].mxu0  ;;  %v4326_v11 = vadd.f32 %v6220_v62, %v8270_v50  ;;  %v6223_v23 = vadd.f32 %v6222_v45, %v6221_v22 }
 0x3bc   : > { %v6200_v61 = vpop.f32.mrb[207].mxu0 }
 0x3bd   : > { %v8403_v47 = vadd.f32 %v6198_v57, %v4124_v27  ;;  %v6201_v30 = vadd.f32 %v6200_v61, %v6199_v60  ;;  %v4329_v24 = vadd.f32 %v6223_v23, %v8274_v7 }
 0x3bf   : > { %v8406_v6 = vadd.f32 %v6201_v30, %v4127_v54  ;;  %v6224_v29 = vpop.f32.mrb[212].mxu1 }
 0x3c0   : > { %v6225_v3 = vpop.f32.mrb[213].mxu1 }
 0x3c1   : > { %v6330_v48 = vpop.f32.mrb[208].mxu0  ;;  %v6226_v5 = vadd.f32 %v6225_v3, %v6224_v29  ;;  %v6227_v52 = vpop.f32.mrb[214].mxu1 }
 0x3c2   : > { %v6331_v39 = vpop.f32.mrb[209].mxu0  ;;  %v6228_v50 = vpop.f32.mrb[215].mxu1 }
 0x3c3   : > { %v6332_v58 = vadd.f32 %v6331_v39, %v6330_v48  ;;  %v6333_v8 = vpop.f32.mrb[210].mxu0  ;;  %v4334_v2 = vadd.f32 %v6226_v5, %v8278_v59  ;;  %v6229_v56 = vadd.f32 %v6228_v50, %v6227_v52 }
 0x3c4   : > { %v6334_v26 = vpop.f32.mrb[211].mxu0 }
 0x3c5   : > { %v6335_v0 = vadd.f32 %v6334_v26, %v6333_v8  ;;  %v8409_v37 = vadd.f32 %v6332_v58, %v4326_v11  ;;  %v4337_v7 = vadd.f32 %v6229_v56, %v8282_v49 }
 0x3c7   : > { %v8412_v10 = vadd.f32 %v6335_v0, %v4329_v24  ;;  %v6230_v33 = vpop.f32.mrb[216].mxu1 }
 0x3c8   : > { %v6231_v19 = vpop.f32.mrb[217].mxu1 }
 0x3c9   : > { %v6336_v1 = vpop.f32.mrb[212].mxu0  ;;  %v6232_v36 = vadd.f32 %v6231_v19, %v6230_v33  ;;  %v6233_v18 = vpop.f32.mrb[218].mxu1 }
 0x3ca   : > { %v6337_v46 = vpop.f32.mrb[213].mxu0  ;;  %v6234_v27 = vpop.f32.mrb[219].mxu1 }
 0x3cb   : > { %v6338_v62 = vadd.f32 %v6337_v46, %v6336_v1  ;;  %v6339_v22 = vpop.f32.mrb[214].mxu0  ;;  %v4342_v59 = vadd.f32 %v6232_v36, %v8288_v44  ;;  %v6235_v57 = vadd.f32 %v6234_v27, %v6233_v18 }
 0x3cc   : > { %v6340_v60 = vpop.f32.mrb[215].mxu0 }
 0x3cd   : > { %v6341_v45 = vadd.f32 %v6340_v60, %v6339_v22  ;;  %v8415_v11 = vadd.f32 %v6338_v62, %v4334_v2  ;;  %v4345_v49 = vadd.f32 %v6235_v57, %v8292_v25 }
 0x3cf   : > { %v8418_v61 = vadd.f32 %v6341_v45, %v4337_v7  ;;  %v6236_v23 = vpop.f32.mrb[220].mxu1 }
 0x3d0   : > { %v6237_v30 = vpop.f32.mrb[221].mxu1 }
 0x3d1   : > { %v6342_v54 = vpop.f32.mrb[216].mxu0  ;;  %v6238_v24 = vadd.f32 %v6237_v30, %v6236_v23  ;;  %v6239_v48 = vpop.f32.mrb[222].mxu1 }
 0x3d2   : > { %v6343_v29 = vpop.f32.mrb[217].mxu0  ;;  %v6240_v39 = vpop.f32.mrb[223].mxu1 }
 0x3d3   : > { %v6344_v3 = vadd.f32 %v6343_v29, %v6342_v54  ;;  %v6345_v5 = vpop.f32.mrb[218].mxu0  ;;  %v4350_v44 = vadd.f32 %v6238_v24, %v8296_v14  ;;  %v6241_v52 = vadd.f32 %v6240_v39, %v6239_v48 }
 0x3d4   : > { %v6346_v58 = vpop.f32.mrb[219].mxu0 }
 0x3d5   : > { %v6347_v8 = vadd.f32 %v6346_v58, %v6345_v5  ;;  %v8421_v50 = vadd.f32 %v6344_v3, %v4342_v59  ;;  %v4353_v25 = vadd.f32 %v6241_v52, %v8299_v41 }
 0x3d7   : > { %v8424_v2 = vadd.f32 %v6347_v8, %v4345_v49  ;;  %v6242_v56 = vpop.f32.mrb[224].mxu1 }
 0x3d8   : > { %v6243_v0 = vpop.f32.mrb[225].mxu1 }
 0x3d9   : > { %v6348_v26 = vpop.f32.mrb[220].mxu0  ;;  %v6244_v7 = vadd.f32 %v6243_v0, %v6242_v56  ;;  %v6245_v1 = vpop.f32.mrb[226].mxu1 }
 0x3da   : > { %v6349_v33 = vpop.f32.mrb[221].mxu0  ;;  %v6246_v46 = vpop.f32.mrb[227].mxu1 }
 0x3db   : > { %v6350_v19 = vadd.f32 %v6349_v33, %v6348_v26  ;;  %v6351_v36 = vpop.f32.mrb[222].mxu0  ;;  %v4358_v14 = vadd.f32 %v6244_v7, %v8305_v21  ;;  %v6247_v18 = vadd.f32 %v6246_v46, %v6245_v1 }
 0x3dc   : > { %v6352_v62 = vpop.f32.mrb[223].mxu0 }
 0x3dd   : > { %v6353_v22 = vadd.f32 %v6352_v62, %v6351_v36  ;;  %v8427_v27 = vadd.f32 %v6350_v19, %v4350_v44  ;;  %v4361_v41 = vadd.f32 %v6247_v18, %v8307_v43 }
 0x3df   : > { %v8430_v59 = vadd.f32 %v6353_v22, %v4353_v25  ;;  %v6248_v57 = vpop.f32.mrb[228].mxu1 }
 0x3e0   : > { %v6249_v45 = vpop.f32.mrb[229].mxu1 }
 0x3e1   : > { %v6354_v60 = vpop.f32.mrb[224].mxu0  ;;  %v6250_v49 = vadd.f32 %v6249_v45, %v6248_v57  ;;  %v6251_v54 = vpop.f32.mrb[230].mxu1 }
 0x3e2   : > { %v6355_v23 = vpop.f32.mrb[225].mxu0  ;;  %v6252_v29 = vpop.f32.mrb[231].mxu1 }
 0x3e3   : > { %v6356_v30 = vadd.f32 %v6355_v23, %v6354_v60  ;;  %v6357_v24 = vpop.f32.mrb[226].mxu0  ;;  %v4366_v21 = vadd.f32 %v6250_v49, %v8315_v40  ;;  %v6253_v48 = vadd.f32 %v6252_v29, %v6251_v54 }
 0x3e4   : > { %v6358_v3 = vpop.f32.mrb[227].mxu0 }
 0x3e5   : > { %v6359_v5 = vadd.f32 %v6358_v3, %v6357_v24  ;;  %v8433_v39 = vadd.f32 %v6356_v30, %v4358_v14  ;;  %v4369_v43 = vadd.f32 %v6253_v48, %v8317_v16 }
 0x3e7   : > { %v8436_v44 = vadd.f32 %v6359_v5, %v4361_v41  ;;  %v6254_v52 = vpop.f32.mrb[232].mxu1 }
 0x3e8   : > { %v6255_v8 = vpop.f32.mrb[233].mxu1 }
 0x3e9   : > { %v6360_v58 = vpop.f32.mrb[228].mxu0  ;;  %v6256_v25 = vadd.f32 %v6255_v8, %v6254_v52  ;;  %v6257_v26 = vpop.f32.mrb[234].mxu1 }
 0x3ea   : > { %v6361_v56 = vpop.f32.mrb[229].mxu0  ;;  %v6258_v33 = vpop.f32.mrb[235].mxu1 }
 0x3eb   : > { %v6362_v0 = vadd.f32 %v6361_v56, %v6360_v58  ;;  %v6363_v7 = vpop.f32.mrb[230].mxu0  ;;  %v4374_v40 = vadd.f32 %v6256_v25, %v8325_v35  ;;  %v6259_v1 = vadd.f32 %v6258_v33, %v6257_v26 }
 0x3ec   : > { %v6364_v19 = vpop.f32.mrb[231].mxu0 }
 0x3ed   : > { %v6365_v36 = vadd.f32 %v6364_v19, %v6363_v7  ;;  %v8439_v46 = vadd.f32 %v6362_v0, %v4366_v21  ;;  %v4377_v16 = vadd.f32 %v6259_v1, %v8327_v31 }
 0x3ef   : > { %v8442_v14 = vadd.f32 %v6365_v36, %v4369_v43  ;;  %v6260_v18 = vpop.f32.mrb[236].mxu1 }
 0x3f0   : > { %v6261_v22 = vpop.f32.mrb[237].mxu1 }
 0x3f1   : > { %v6366_v62 = vpop.f32.mrb[232].mxu0  ;;  %v6262_v41 = vadd.f32 %v6261_v22, %v6260_v18  ;;  %v6263_v60 = vpop.f32.mrb[238].mxu1 }
 0x3f2   : > { %v6367_v57 = vpop.f32.mrb[233].mxu0  ;;  %v6264_v23 = vpop.f32.mrb[239].mxu1 }
 0x3f3   : > { %v6368_v45 = vadd.f32 %v6367_v57, %v6366_v62  ;;  %v6369_v49 = vpop.f32.mrb[234].mxu0  ;;  %v4382_v35 = vadd.f32 %v6262_v41, %v8335_v9  ;;  %v6265_v54 = vadd.f32 %v6264_v23, %v6263_v60 }
 0x3f4   : > { %v6370_v30 = vpop.f32.mrb[235].mxu0 }
 0x3f5   : > { %v6371_v24 = vadd.f32 %v6370_v30, %v6369_v49  ;;  %v8445_v29 = vadd.f32 %v6368_v45, %v4374_v40  ;;  %v4385_v31 = vadd.f32 %v6265_v54, %v8337_v15 }
 0x3f7   : > { %v8448_v21 = vadd.f32 %v6371_v24, %v4377_v16  ;;  %v6266_v48 = vpop.f32.mrb[240].mxu1 }
 0x3f8   : > { %v6267_v5 = vpop.f32.mrb[241].mxu1 }
 0x3f9   : > { %v6372_v3 = vpop.f32.mrb[236].mxu0  ;;  %v6268_v43 = vadd.f32 %v6267_v5, %v6266_v48  ;;  %v6269_v58 = vpop.f32.mrb[242].mxu1 }
 0x3fa   : > { %v6373_v52 = vpop.f32.mrb[237].mxu0  ;;  %v6270_v56 = vpop.f32.mrb[243].mxu1 }
 0x3fb   : > { %v6374_v8 = vadd.f32 %v6373_v52, %v6372_v3  ;;  %v6375_v25 = vpop.f32.mrb[238].mxu0  ;;  %v4390_v9 = vadd.f32 %v6268_v43, %v8345_v38  ;;  %v6271_v26 = vadd.f32 %v6270_v56, %v6269_v58 }
 0x3fc   : > { %v6376_v0 = vpop.f32.mrb[239].mxu0 }
 0x3fd   : > { %v6377_v7 = vadd.f32 %v6376_v0, %v6375_v25  ;;  %v8451_v33 = vadd.f32 %v6374_v8, %v4382_v35  ;;  %v4393_v15 = vadd.f32 %v6271_v26, %v8347_v63 }
 0x3ff   : > { %v8454_v40 = vadd.f32 %v6377_v7, %v4385_v31  ;;  %v6272_v1 = vpop.f32.mrb[244].mxu1 }
 0x400   : > { %v6273_v36 = vpop.f32.mrb[245].mxu1 }
 0x401   : > { %v6378_v19 = vpop.f32.mrb[240].mxu0  ;;  %v6274_v16 = vadd.f32 %v6273_v36, %v6272_v1  ;;  %v6275_v62 = vpop.f32.mrb[246].mxu1 }
 0x402   : > { %v6379_v18 = vpop.f32.mrb[241].mxu0  ;;  %v6276_v57 = vpop.f32.mrb[247].mxu1 }
 0x403   : > { %v6380_v22 = vadd.f32 %v6379_v18, %v6378_v19  ;;  %v6381_v41 = vpop.f32.mrb[242].mxu0  ;;  %v4398_v38 = vadd.f32 %v6274_v16, %v8355_v4  ;;  %v6277_v60 = vadd.f32 %v6276_v57, %v6275_v62 }
 0x404   : > { %v6382_v45 = vpop.f32.mrb[243].mxu0 }
 0x405   : > { %v6383_v49 = vadd.f32 %v6382_v45, %v6381_v41  ;;  %v8457_v23 = vadd.f32 %v6380_v22, %v4390_v9  ;;  %v4401_v63 = vadd.f32 %v6277_v60, %v8357_v32 }
 0x407   : > { %v8460_v35 = vadd.f32 %v6383_v49, %v4393_v15  ;;  %v6278_v54 = vpop.f32.mrb[248].mxu1 }
 0x408   : > { %v6279_v24 = vpop.f32.mrb[249].mxu1 }
 0x409   : > { %v6384_v30 = vpop.f32.mrb[244].mxu0  ;;  %v6280_v31 = vadd.f32 %v6279_v24, %v6278_v54  ;;  %v6281_v3 = vpop.f32.mrb[250].mxu1 }
 0x40a   : > { %v6385_v48 = vpop.f32.mrb[245].mxu0  ;;  %v6282_v52 = vpop.f32.mrb[251].mxu1 }
 0x40b   : > { %v6386_v5 = vadd.f32 %v6385_v48, %v6384_v30  ;;  %v6387_v43 = vpop.f32.mrb[246].mxu0  ;;  %v4406_v4 = vadd.f32 %v6280_v31, %v8365_v13  ;;  %v6283_v58 = vadd.f32 %v6282_v52, %v6281_v3 }
 0x40c   : > { %v6388_v8 = vpop.f32.mrb[247].mxu0 }
 0x40d   : > { %v6389_v25 = vadd.f32 %v6388_v8, %v6387_v43  ;;  %v8463_v56 = vadd.f32 %v6386_v5, %v4398_v38  ;;  %v4409_v32 = vadd.f32 %v6283_v58, %v8368_v51 }
 0x40f   : > { %v8466_v9 = vadd.f32 %v6389_v25, %v4401_v63  ;;  %v6284_v26 = vpop.f32.mrb[252].mxu1 }
 0x410   : > { %v6285_v7 = vpop.f32.mrb[253].mxu1 }
 0x411   : > { %v6390_v0 = vpop.f32.mrb[248].mxu0  ;;  %v6286_v15 = vadd.f32 %v6285_v7, %v6284_v26  ;;  %v6287_v19 = vpop.f32.mrb[254].mxu1 }
 0x412   : > { %v6391_v1 = vpop.f32.mrb[249].mxu0  ;;  %v6288_v18 = vpop.f32.mrb[255].mxu1 }
 0x413   : > { %v6392_v36 = vadd.f32 %v6391_v1, %v6390_v0  ;;  %v6393_v16 = vpop.f32.mrb[250].mxu0  ;;  %v4414_v13 = vadd.f32 %v6286_v15, %v8376_v55  ;;  %v6289_v62 = vadd.f32 %v6288_v18, %v6287_v19 }
 0x414   : > { %v6394_v22 = vpop.f32.mrb[251].mxu0 }
 0x415   : > { %v6395_v41 = vadd.f32 %v6394_v22, %v6393_v16  ;;  %v8469_v57 = vadd.f32 %v6392_v36, %v4406_v4  ;;  %v4417_v51 = vadd.f32 %v6289_v62, %v8378_v42 }
 0x417   : > { %v8472_v38 = vadd.f32 %v6395_v41, %v4409_v32  ;;  %v6290_v60 = vpop.f32.mrb[0].mxu1 }
 0x418   : > { %v6291_v49 = vpop.f32.mrb[1].mxu1 }
 0x419   : > { %v6396_v45 = vpop.f32.mrb[252].mxu0  ;;  %v6292_v63 = vadd.f32 %v6291_v49, %v6290_v60  ;;  %v6293_v30 = vpop.f32.mrb[2].mxu1 }
 0x41a   : > { %v6397_v54 = vpop.f32.mrb[253].mxu0  ;;  %v6294_v48 = vpop.f32.mrb[3].mxu1 }
 0x41b   : > { %v6398_v24 = vadd.f32 %v6397_v54, %v6396_v45  ;;  %v6399_v31 = vpop.f32.mrb[254].mxu0  ;;  %v4422_v55 = vadd.f32 %v6292_v63, %v8384_v12  ;;  %v6295_v3 = vadd.f32 %v6294_v48, %v6293_v30 }
 0x41c   : > { %v6400_v5 = vpop.f32.mrb[255].mxu0 }
 0x41d   : > { %v6401_v43 = vadd.f32 %v6400_v5, %v6399_v31  ;;  %v8475_v52 = vadd.f32 %v6398_v24, %v4414_v13  ;;  %v4425_v42 = vadd.f32 %v6295_v3, %v8386_v34 }
 0x41f   : > { %v8478_v4 = vadd.f32 %v6401_v43, %v4417_v51  ;;  %v6296_v58 = vpop.f32.mrb[4].mxu1 }
 0x420   : > { %v6297_v25 = vpop.f32.mrb[5].mxu1 }
 0x421   : > { %v6402_v8 = vpop.f32.mrb[0].mxu0  ;;  %v6298_v32 = vadd.f32 %v6297_v25, %v6296_v58  ;;  %v6299_v0 = vpop.f32.mrb[6].mxu1 }
 0x422   : > { %v6403_v26 = vpop.f32.mrb[1].mxu0  ;;  %v6300_v1 = vpop.f32.mrb[7].mxu1 }
 0x423   : > { %v6404_v7 = vadd.f32 %v6403_v26, %v6402_v8  ;;  %v6405_v15 = vpop.f32.mrb[2].mxu0  ;;  %v4430_v12 = vadd.f32 %v6298_v32, %v8390_v17  ;;  %v6301_v19 = vadd.f32 %v6300_v1, %v6299_v0 }
 0x424   : > { %v6406_v36 = vpop.f32.mrb[3].mxu0 }
 0x425   : > { %v6407_v16 = vadd.f32 %v6406_v36, %v6405_v15  ;;  %v8481_v18 = vadd.f32 %v6404_v7, %v4422_v55  ;;  %v4433_v34 = vadd.f32 %v6301_v19, %v8392_v20 }
 0x427   : > { %v8484_v13 = vadd.f32 %v6407_v16, %v4425_v42  ;;  %v6302_v62 = vpop.f32.mrb[8].mxu1 }
 0x428   : > { %v6303_v41 = vpop.f32.mrb[9].mxu1 }
 0x429   : > { %v6408_v22 = vpop.f32.mrb[4].mxu0  ;;  %v6304_v51 = vadd.f32 %v6303_v41, %v6302_v62  ;;  %v6305_v45 = vpop.f32.mrb[10].mxu1 }
 0x42a   : > { %v6409_v60 = vpop.f32.mrb[5].mxu0  ;;  %v6306_v54 = vpop.f32.mrb[11].mxu1 }
 0x42b   : > { %v6410_v49 = vadd.f32 %v6409_v60, %v6408_v22  ;;  %v6411_v63 = vpop.f32.mrb[6].mxu0  ;;  %v4438_v17 = vadd.f32 %v6304_v51, %v8396_v53  ;;  %v6307_v30 = vadd.f32 %v6306_v54, %v6305_v45 }
 0x42c   : > { %v6412_v24 = vpop.f32.mrb[7].mxu0 }
 0x42d   : > { %v6413_v31 = vadd.f32 %v6412_v24, %v6411_v63  ;;  %v8487_v48 = vadd.f32 %v6410_v49, %v4430_v12  ;;  %v4441_v20 = vadd.f32 %v6307_v30, %v8398_v28 }
 0x42f   : > { %v8490_v55 = vadd.f32 %v6413_v31, %v4433_v34  ;;  %v6308_v3 = vpop.f32.mrb[12].mxu1 }
 0x430   : > { %v6309_v43 = vpop.f32.mrb[13].mxu1 }
 0x431   : > { %v6414_v5 = vpop.f32.mrb[8].mxu0  ;;  %v6310_v42 = vadd.f32 %v6309_v43, %v6308_v3  ;;  %v6311_v8 = vpop.f32.mrb[14].mxu1 }
 0x432   : > { %v6415_v58 = vpop.f32.mrb[9].mxu0  ;;  %v6312_v26 = vpop.f32.mrb[15].mxu1 }
 0x433   : > { %v6416_v25 = vadd.f32 %v6415_v58, %v6414_v5  ;;  %v6417_v32 = vpop.f32.mrb[10].mxu0  ;;  %v4446_v53 = vadd.f32 %v6310_v42, %v8403_v47  ;;  %v6313_v0 = vadd.f32 %v6312_v26, %v6311_v8 }
 0x434   : > { %v6418_v7 = vpop.f32.mrb[11].mxu0 }
 0x435   : > { %v6419_v15 = vadd.f32 %v6418_v7, %v6417_v32  ;;  %v8493_v1 = vadd.f32 %v6416_v25, %v4438_v17  ;;  %v4449_v28 = vadd.f32 %v6313_v0, %v8406_v6 }
 0x437   : > { %v8496_v12 = vadd.f32 %v6419_v15, %v4441_v20  ;;  %v6540_v19 = vpop.f32.mrb[16].mxu1 }
 0x438   : > { %v4656_v16 = vadd.f32 %v6540_v19, %v8415_v11  ;;  %v4647_v34 = vpop.f32.mrb[17].mxu1  ;;  %v8507_v11 = vld [vmem:[%s8639_s6] ss:$0 sm:$0xff] }
 0x439   : > { %v6420_v36 = vpop.f32.mrb[12].mxu0  ;;  %v4648_v22 = vadd.f32 %v4647_v34, %v8409_v37  ;;  %v6541_v41 = vpop.f32.mrb[18].mxu1 }
 0x43a   : > { %v6421_v62 = vpop.f32.mrb[13].mxu0  ;;  %v4659_v60 = vadd.f32 %v6541_v41, %v8418_v61  ;;  %v4650_v45 = vpop.f32.mrb[19].mxu1 }
 0x43b   : > { %v6422_v51 = vadd.f32 %v6421_v62, %v6420_v36  ;;  %v6423_v47 = vpop.f32.mrb[14].mxu0  ;;  %v5054_v49 = vadd.f32 %v4656_v16, %v4648_v22  ;;  %v4651_v6 = vadd.f32 %v4650_v45, %v8412_v10 }
 0x43c   : > { %v6424_v63 = vpop.f32.mrb[15].mxu0 }
 0x43d   : > { %v6425_v54 = vadd.f32 %v6424_v63, %v6423_v47  ;;  %v8502_v17 = vadd.f32 %v6422_v51, %v4446_v53  ;;  %5070 = vst [vmem:[#allocation4] sm:$0xff] %v5054_v49  ;;  %v5055_v30 = vadd.f32 %v4659_v60, %v4651_v6 }
 0x43f   : > { %v8509_v37 = vadd.f32 %v6425_v54, %v4449_v28  ;;  %5071 = vst [vmem:[#allocation4 + $0x8] sm:$0xff] %v5055_v30  ;;  %v6544_v24 = vpop.f32.mrb[20].mxu1 }
 0x440   : > { %v4672_v61 = vadd.f32 %v6544_v24, %v8427_v27  ;;  %v4663_v20 = vpop.f32.mrb[21].mxu1 }
 0x441   : > { %v6588_v31 = vpop.f32.mrb[16].mxu0  ;;  %v4664_v3 = vadd.f32 %v4663_v20, %v8421_v50  ;;  %v6545_v43 = vpop.f32.mrb[22].mxu1 }
 0x442   : > { %v4936_v10 = vadd.f32 %v6588_v31, %v8507_v11  ;;  %v4927_v5 = vpop.f32.mrb[17].mxu0  ;;  %v4675_v58 = vadd.f32 %v6545_v43, %v8430_v59  ;;  %v4666_v25 = vpop.f32.mrb[23].mxu1 }
 0x443   : > { %v4928_v42 = vadd.f32 %v8507_v11, %v4927_v5  ;;  %v6589_v8 = vpop.f32.mrb[18].mxu0  ;;  %v5056_v32 = vadd.f32 %v4672_v61, %v4664_v3  ;;  %v4667_v53 = vadd.f32 %v4666_v25, %v8424_v2 }
 0x444   : > { %v4939_v26 = vadd.f32 %v6589_v8, %v8507_v11  ;;  %v4930_v27 = vpop.f32.mrb[19].mxu0 }
 0x445   : > { %v5133_v0 = vadd.f32 %v4936_v10, %v4928_v42  ;;  %v4931_v7 = vadd.f32 %v8507_v11, %v4930_v27  ;;  %5072 = vst [vmem:[#allocation4 + $0x10] sm:$0xff] %v5056_v32  ;;  %v5057_v15 = vadd.f32 %v4675_v58, %v4667_v53 }
 0x446   : > { %v5086_v50 = vld [vmem:[#allocation4] ss:$2 sm:$0xff]  ;;  %v5102_v28 = vld [vmem:[#allocation4 + $0x1] ss:$2 sm:$0xff] }
 0x447   : > { %v5134_v19 = vadd.f32 %v4939_v26, %v4931_v7  ;;  %5149 = vst [vmem:[#allocation4] sm:$0xff] %v5133_v0  ;;  %5073 = vst [vmem:[#allocation4 + $0x18] sm:$0xff] %v5057_v15  ;;  %v6548_v36 = vpop.f32.mrb[24].mxu1  ;;  %v5117_v24 = vadd.f32 %v5102_v28, %v5086_v50 }
 0x448   : > { %v4688_v59 = vadd.f32 %v6548_v36, %v8439_v46  ;;  %v4679_v34 = vpop.f32.mrb[25].mxu1 }
 0x449   : > { %5150 = vst [vmem:[#allocation4 + $0x8] sm:$0xff] %v5134_v19  ;;  %v6592_v16 = vpop.f32.mrb[20].mxu0  ;;  %v4680_v2 = vadd.f32 %v4679_v34, %v8433_v39  ;;  %v6549_v41 = vpop.f32.mrb[26].mxu1  ;;  %v5125_v26 = vmul.f32 0.25, %v5117_v24 }
 0x44a   : > { %v4952_v62 = vadd.f32 %v6592_v16, %v8507_v11  ;;  %v4943_v22 = vpop.f32.mrb[21].mxu0  ;;  %v4691_v47 = vadd.f32 %v6549_v41, %v8442_v14  ;;  %v4682_v45 = vpop.f32.mrb[27].mxu1 }
 0x44b   : > { %v4944_v51 = vadd.f32 %v8507_v11, %v4943_v22  ;;  %v6593_v60 = vpop.f32.mrb[22].mxu0  ;;  %v5058_v49 = vadd.f32 %v4688_v59, %v4680_v2  ;;  %v4683_v6 = vadd.f32 %v4682_v45, %v8436_v44 }
 0x44c   : > { %v4955_v63 = vadd.f32 %v6593_v60, %v8507_v11  ;;  %v4946_v46 = vpop.f32.mrb[23].mxu0 }
 0x44d   : > { %v5135_v54 = vadd.f32 %v4952_v62, %v4944_v51  ;;  %v4947_v30 = vadd.f32 %v8507_v11, %v4946_v46  ;;  %5074 = vst [vmem:[#allocation4 + $0x20] sm:$0xff] %v5058_v49  ;;  %v5059_v39 = vadd.f32 %v4691_v47, %v4683_v6 }
 0x44e   : > { %v5088_v61 = vld [vmem:[#allocation4 + $0x10] ss:$2 sm:$0xff]  ;;  %v5104_v31 = vld [vmem:[#allocation4 + $0x11] ss:$2 sm:$0xff] }
 0x44f   : > { %v5136_v20 = vadd.f32 %v4955_v63, %v4947_v30  ;;  %5151 = vst [vmem:[#allocation4 + $0x10] sm:$0xff] %v5135_v54  ;;  %5075 = vst [vmem:[#allocation4 + $0x28] sm:$0xff] %v5059_v39  ;;  %v6552_v3 = vpop.f32.mrb[28].mxu1  ;;  %v5118_v34 = vadd.f32 %v5104_v31, %v5088_v61 }
 0x450   : > { %v5165_v10 = vld [vmem:[#allocation4] ss:$2 sm:$0xff]  ;;  %v5173_v14 = vld [vmem:[#allocation4 + $0x1] ss:$2 sm:$0xff]  ;;  %v4704_v44 = vadd.f32 %v6552_v3, %v8451_v33  ;;  %v4695_v42 = vpop.f32.mrb[29].mxu1 }
 0x451   : > { %v5181_v5 = vadd.f32 %v5173_v14, %v5165_v10  ;;  %5152 = vst [vmem:[#allocation4 + $0x18] sm:$0xff] %v5136_v20  ;;  %v6596_v43 = vpop.f32.mrb[24].mxu0  ;;  %v4696_v8 = vadd.f32 %v4695_v42, %v8445_v29  ;;  %v6553_v32 = vpop.f32.mrb[30].mxu1  ;;  %v5126_v54 = vmul.f32 0.25, %v5118_v34 }
 0x452   : > { %v4968_v58 = vadd.f32 %v6596_v43, %v8507_v11  ;;  %v4959_v25 = vpop.f32.mrb[25].mxu0  ;;  %v4707_v0 = vadd.f32 %v6553_v32, %v8454_v40  ;;  %v4698_v15 = vpop.f32.mrb[31].mxu1 }
 0x453   : > { %v5189_v53 = vmul.f32 0.25, %v5181_v5  ;;  %v4960_v27 = vadd.f32 %v8507_v11, %v4959_v25  ;;  %v6597_v7 = vpop.f32.mrb[26].mxu0  ;;  %v5060_v50 = vadd.f32 %v4704_v44, %v4696_v8  ;;  %v4699_v28 = vadd.f32 %v4698_v15, %v8448_v21 }
 0x454   : > { %v4971_v33 = vadd.f32 %v6597_v7, %v8507_v11  ;;  %v4962_v19 = vpop.f32.mrb[27].mxu0 }
 0x455   : > { %v5197_v36 = vadd.f32 %v5189_v53, %v5125_v26  ;;  %v5137_v59 = vadd.f32 %v4968_v58, %v4960_v27  ;;  %v4963_v29 = vadd.f32 %v8507_v11, %v4962_v19  ;;  %5076 = vst [vmem:[#allocation4 + $0x30] sm:$0xff] %v5060_v50  ;;  %v5061_v16 = vadd.f32 %v4707_v0, %v4699_v28 }
 0x456   : > { %v5090_v62 = vld [vmem:[#allocation4 + $0x20] ss:$2 sm:$0xff]  ;;  %v5106_v2 = vld [vmem:[#allocation4 + $0x21] ss:$2 sm:$0xff] }
 0x457   : > { %v5138_v22 = vadd.f32 %v4971_v33, %v4963_v29  ;;  %5205 = vst [vmem:[%s8536_s29] sm:$0xff] %v5197_v36  ;;  %5153 = vst [vmem:[#allocation4 + $0x20] sm:$0xff] %v5137_v59  ;;  %v6556_v21 = vpop.f32.mrb[32].mxu1  ;;  %v5119_v43 = vadd.f32 %v5106_v2, %v5090_v62 }
 0x458   : > { %v5166_v40 = vld [vmem:[#allocation4 + $0x10] ss:$2 sm:$0xff]  ;;  %v5174_v41 = vld [vmem:[#allocation4 + $0x11] ss:$2 sm:$0xff]  ;;  %5077 = vst [vmem:[#allocation4 + $0x38] sm:$0xff] %v5061_v16  ;;  %v4720_v47 = vadd.f32 %v6556_v21, %v8463_v56  ;;  %v4711_v45 = vpop.f32.mrb[33].mxu1 }
 0x459   : > { %v5182_v51 = vadd.f32 %v5174_v41, %v5166_v40  ;;  %5154 = vst [vmem:[#allocation4 + $0x28] sm:$0xff] %v5138_v22  ;;  %v6600_v60 = vpop.f32.mrb[28].mxu0  ;;  %v4712_v63 = vadd.f32 %v4711_v45, %v8457_v23  ;;  %v6557_v46 = vpop.f32.mrb[34].mxu1  ;;  %v5127_v33 = vmul.f32 0.25, %v5119_v43 }
 0x45a   : > { %v4984_v49 = vadd.f32 %v6600_v60, %v8507_v11  ;;  %v4975_v6 = vpop.f32.mrb[29].mxu0  ;;  %v4723_v24 = vadd.f32 %v6557_v46, %v8466_v9  ;;  %v4714_v31 = vpop.f32.mrb[35].mxu1 }
 0x45b   : > { %v5190_v30 = vmul.f32 0.25, %v5182_v51  ;;  %v4976_v39 = vadd.f32 %v8507_v11, %v4975_v6  ;;  %v6601_v61 = vpop.f32.mrb[30].mxu0  ;;  %v5062_v20 = vadd.f32 %v4720_v47, %v4712_v63  ;;  %v4715_v10 = vadd.f32 %v4714_v31, %v8460_v35 }
 0x45c   : > { %v4987_v56 = vadd.f32 %v6601_v61, %v8507_v11  ;;  %v4978_v14 = vpop.f32.mrb[31].mxu0 }
 0x45d   : > { %v5198_v3 = vadd.f32 %v5190_v30, %v5126_v54  ;;  %v5139_v5 = vadd.f32 %v4984_v49, %v4976_v39  ;;  %v4979_v23 = vadd.f32 %v8507_v11, %v4978_v14  ;;  %5078 = vst [vmem:[#allocation4 + $0x40] sm:$0xff] %v5062_v20  ;;  %v5063_v44 = vadd.f32 %v4723_v24, %v4715_v10 }
 0x45f   : > { %v5092_v42 = vld [vmem:[#allocation4 + $0x30] ss:$2 sm:$0xff]  ;;  %v5108_v58 = vld [vmem:[#allocation4 + $0x31] ss:$2 sm:$0xff]  ;;  %v5140_v8 = vadd.f32 %v4987_v56, %v4979_v23  ;;  %5206 = vst [vmem:[%s8536_s29 + $0x8] sm:$0xff] %v5198_v3  ;;  %5079 = vst [vmem:[#allocation4 + $0x48] sm:$0xff] %v5063_v44 }
 0x460   : > { %v5167_v9 = vld [vmem:[#allocation4 + $0x20] ss:$2 sm:$0xff]  ;;  %v5175_v25 = vld [vmem:[#allocation4 + $0x21] ss:$2 sm:$0xff]  ;;  %5155 = vst [vmem:[#allocation4 + $0x30] sm:$0xff] %v5139_v5  ;;  %v6560_v32 = vpop.f32.mrb[36].mxu1  ;;  %v5120_v41 = vadd.f32 %v5108_v58, %v5092_v42 }
 0x461   : > { %v5183_v26 = vadd.f32 %v5175_v25, %v5167_v9  ;;  %5156 = vst [vmem:[#allocation4 + $0x38] sm:$0xff] %v5140_v8  ;;  %v4736_v35 = vadd.f32 %v6560_v32, %v8475_v52  ;;  %v6604_v53 = vpop.f32.mrb[32].mxu0  ;;  %v4727_v27 = vpop.f32.mrb[37].mxu1 }
 0x462   : > { %v5000_v0 = vadd.f32 %v6604_v53, %v8507_v11  ;;  %v4728_v7 = vadd.f32 %v4727_v27, %v8469_v57  ;;  %v4991_v15 = vpop.f32.mrb[33].mxu0  ;;  %v6561_v50 = vpop.f32.mrb[38].mxu1  ;;  %v5128_v24 = vmul.f32 0.25, %v5120_v41 }
 0x463   : > { %v5191_v28 = vmul.f32 0.25, %v5183_v26  ;;  %v4992_v19 = vadd.f32 %v8507_v11, %v4991_v15  ;;  %v4739_v36 = vadd.f32 %v6561_v50, %v8478_v4  ;;  %v6605_v59 = vpop.f32.mrb[34].mxu0  ;;  %v4730_v29 = vpop.f32.mrb[39].mxu1 }
 0x464   : > { %v5064_v16 = vadd.f32 %v4736_v35, %v4728_v7  ;;  %v5003_v52 = vadd.f32 %v6605_v59, %v8507_v11  ;;  %v4731_v34 = vadd.f32 %v4730_v29, %v8472_v38  ;;  %v4994_v62 = vpop.f32.mrb[35].mxu0 }
 0x465   : > { %v5199_v2 = vadd.f32 %v5191_v28, %v5127_v33  ;;  %v5141_v22 = vadd.f32 %v5000_v0, %v4992_v19  ;;  %v4995_v57 = vadd.f32 %v8507_v11, %v4994_v62 }
 0x466   : > { %5080 = vst [vmem:[#allocation4 + $0x50] sm:$0xff] %v5064_v16  ;;  %v5065_v40 = vadd.f32 %v4739_v36, %v4731_v34  ;;  %v5094_v21 = vld [vmem:[#allocation4 + $0x40] ss:$2 sm:$0xff]  ;;  %v5110_v51 = vld [vmem:[#allocation4 + $0x41] ss:$2 sm:$0xff] }
 0x467   : > { %v5142_v47 = vadd.f32 %v5003_v52, %v4995_v57  ;;  %5207 = vst [vmem:[%s8536_s29 + $0x10] sm:$0xff] %v5199_v2  ;;  %5157 = vst [vmem:[#allocation4 + $0x40] sm:$0xff] %v5141_v22  ;;  %v6564_v45 = vpop.f32.mrb[40].mxu1  ;;  %v5121_v42 = vadd.f32 %v5110_v51, %v5094_v21 }
 0x468   : > { %v5168_v4 = vld [vmem:[#allocation4 + $0x30] ss:$2 sm:$0xff]  ;;  %v5176_v60 = vld [vmem:[#allocation4 + $0x31] ss:$2 sm:$0xff]  ;;  %5081 = vst [vmem:[#allocation4 + $0x58] sm:$0xff] %v5065_v40  ;;  %v4752_v38 = vadd.f32 %v6564_v45, %v8487_v48  ;;  %v4743_v6 = vpop.f32.mrb[41].mxu1 }
 0x469   : > { %v5184_v49 = vadd.f32 %v5176_v60, %v5168_v4  ;;  %5158 = vst [vmem:[#allocation4 + $0x48] sm:$0xff] %v5142_v47  ;;  %v6608_v63 = vpop.f32.mrb[36].mxu0  ;;  %v4744_v54 = vadd.f32 %v4743_v6, %v8481_v18  ;;  %v6565_v39 = vpop.f32.mrb[42].mxu1  ;;  %v5129_v50 = vmul.f32 0.25, %v5121_v42 }
 0x46a   : > { %v5016_v46 = vadd.f32 %v6608_v63, %v8507_v11  ;;  %v5007_v30 = vpop.f32.mrb[37].mxu0  ;;  %v4755_v20 = vadd.f32 %v6565_v39, %v8490_v55  ;;  %v4746_v10 = vpop.f32.mrb[43].mxu1 }
 0x46b   : > { %v5192_v61 = vmul.f32 0.25, %v5184_v49  ;;  %v5008_v31 = vadd.f32 %v8507_v11, %v5007_v30  ;;  %v6609_v56 = vpop.f32.mrb[38].mxu0  ;;  %v5066_v14 = vadd.f32 %v4752_v38, %v4744_v54  ;;  %v4747_v3 = vadd.f32 %v4746_v10, %v8484_v13 }
 0x46c   : > { %v5019_v48 = vadd.f32 %v6609_v56, %v8507_v11  ;;  %v5010_v5 = vpop.f32.mrb[39].mxu0 }
 0x46d   : > { %v5200_v23 = vadd.f32 %v5192_v61, %v5128_v24  ;;  %v5143_v44 = vadd.f32 %v5016_v46, %v5008_v31  ;;  %v5011_v18 = vadd.f32 %v8507_v11, %v5010_v5  ;;  %5082 = vst [vmem:[#allocation4 + $0x60] sm:$0xff] %v5066_v14  ;;  %v5067_v43 = vadd.f32 %v4755_v20, %v4747_v3 }
 0x46f   : > { %v5096_v58 = vld [vmem:[#allocation4 + $0x50] ss:$2 sm:$0xff]  ;;  %v5112_v8 = vld [vmem:[#allocation4 + $0x51] ss:$2 sm:$0xff]  ;;  %v5144_v9 = vadd.f32 %v5019_v48, %v5011_v18  ;;  %5208 = vst [vmem:[%s8536_s29 + $0x18] sm:$0xff] %v5200_v23  ;;  %5083 = vst [vmem:[#allocation4 + $0x68] sm:$0xff] %v5067_v43 }
 0x470   : > { %v5169_v55 = vld [vmem:[#allocation4 + $0x40] ss:$2 sm:$0xff]  ;;  %v5177_v25 = vld [vmem:[#allocation4 + $0x41] ss:$2 sm:$0xff]  ;;  %5159 = vst [vmem:[#allocation4 + $0x50] sm:$0xff] %v5143_v44  ;;  %v6568_v32 = vpop.f32.mrb[44].mxu1  ;;  %v5122_v22 = vadd.f32 %v5112_v8, %v5096_v58 }
 0x471   : > { %v5185_v26 = vadd.f32 %v5177_v25, %v5169_v55  ;;  %5160 = vst [vmem:[#allocation4 + $0x58] sm:$0xff] %v5144_v9  ;;  %v4768_v13 = vadd.f32 %v6568_v32, %v8502_v17  ;;  %v6612_v35 = vpop.f32.mrb[40].mxu0  ;;  %v4759_v53 = vpop.f32.mrb[45].mxu1 }
 0x472   : > { %v5032_v27 = vadd.f32 %v6612_v35, %v8507_v11  ;;  %v4760_v0 = vadd.f32 %v4759_v53, %v8493_v1  ;;  %v5023_v7 = vpop.f32.mrb[41].mxu0  ;;  %v6569_v15 = vpop.f32.mrb[46].mxu1  ;;  %v5130_v60 = vmul.f32 0.25, %v5122_v22 }
 0x473   : > { %v5193_v33 = vmul.f32 0.25, %v5185_v26  ;;  %v5024_v28 = vadd.f32 %v8507_v11, %v5023_v7  ;;  %v4771_v19 = vadd.f32 %v6569_v15, %v8509_v37  ;;  %v6613_v36 = vpop.f32.mrb[42].mxu0  ;;  %v4762_v59 = vpop.f32.mrb[47].mxu1 }
 0x474   : > { %v5068_v29 = vadd.f32 %v4768_v13, %v4760_v0  ;;  %v5035_v17 = vadd.f32 %v6613_v36, %v8507_v11  ;;  %v4763_v16 = vadd.f32 %v4762_v59, %v8496_v12  ;;  %v5026_v52 = vpop.f32.mrb[43].mxu0 }
 0x475   : > { %v5201_v34 = vadd.f32 %v5193_v33, %v5129_v50  ;;  %v5145_v62 = vadd.f32 %v5032_v27, %v5024_v28  ;;  %v5027_v1 = vadd.f32 %v8507_v11, %v5026_v52 }
 0x476   : > { %5084 = vst [vmem:[#allocation4 + $0x70] sm:$0xff] %v5068_v29  ;;  %v5069_v2 = vadd.f32 %v4771_v19, %v4763_v16  ;;  %v5098_v57 = vld [vmem:[#allocation4 + $0x60] ss:$2 sm:$0xff]  ;;  %v5114_v40 = vld [vmem:[#allocation4 + $0x61] ss:$2 sm:$0xff] }
 0x477   : > { %v5146_v41 = vadd.f32 %v5035_v17, %v5027_v1  ;;  %5209 = vst [vmem:[%s8536_s29 + $0x20] sm:$0xff] %v5201_v34  ;;  %5161 = vst [vmem:[#allocation4 + $0x60] sm:$0xff] %v5145_v62  ;;  %v5123_v39 = vadd.f32 %v5114_v40, %v5098_v57 }
 0x478   : > { %v5170_v37 = vld [vmem:[#allocation4 + $0x50] ss:$2 sm:$0xff]  ;;  %v5178_v21 = vld [vmem:[#allocation4 + $0x51] ss:$2 sm:$0xff]  ;;  %5085 = vst [vmem:[#allocation4 + $0x78] sm:$0xff] %v5069_v2 }
 0x479   : > { %v5186_v51 = vadd.f32 %v5178_v21, %v5170_v37  ;;  %5162 = vst [vmem:[#allocation4 + $0x68] sm:$0xff] %v5146_v41  ;;  %v6616_v47 = vpop.f32.mrb[44].mxu0  ;;  %v5131_v14 = vmul.f32 0.25, %v5123_v39 }
 0x47a   : > { %v5048_v12 = vadd.f32 %v6616_v47, %v8507_v11  ;;  %v5039_v4 = vpop.f32.mrb[45].mxu0 }
 0x47b   : > { %v5194_v45 = vmul.f32 0.25, %v5186_v51  ;;  %v5040_v49 = vadd.f32 %v8507_v11, %v5039_v4  ;;  %v6617_v38 = vpop.f32.mrb[46].mxu0 }
 0x47c   : > { %v5051_v63 = vadd.f32 %v6617_v38, %v8507_v11  ;;  %v5042_v6 = vpop.f32.mrb[47].mxu0 }
 0x47d   : > { %v5202_v46 = vadd.f32 %v5194_v45, %v5130_v60  ;;  %v5147_v54 = vadd.f32 %v5048_v12, %v5040_v49  ;;  %v5043_v30 = vadd.f32 %v8507_v11, %v5042_v6 }
 0x47f   : > { %v5100_v24 = vld [vmem:[#allocation4 + $0x70] ss:$2 sm:$0xff]  ;;  %v5116_v61 = vld [vmem:[#allocation4 + $0x71] ss:$2 sm:$0xff]  ;;  %v5148_v31 = vadd.f32 %v5051_v63, %v5043_v30  ;;  %5210 = vst [vmem:[%s8536_s29 + $0x28] sm:$0xff] %v5202_v46 }
 0x480   : > { %v5171_v20 = vld [vmem:[#allocation4 + $0x60] ss:$2 sm:$0xff]  ;;  %v5179_v56 = vld [vmem:[#allocation4 + $0x61] ss:$2 sm:$0xff]  ;;  %5163 = vst [vmem:[#allocation4 + $0x70] sm:$0xff] %v5147_v54  ;;  %v5124_v5 = vadd.f32 %v5116_v61, %v5100_v24 }
 0x481   : > { %v5187_v10 = vadd.f32 %v5179_v56, %v5171_v20  ;;  %5164 = vst [vmem:[#allocation4 + $0x78] sm:$0xff] %v5148_v31 }
 0x482   : > { %v5132_v18 = vmul.f32 0.25, %v5124_v5 }
 0x483   : > { %v5195_v48 = vmul.f32 0.25, %v5187_v10 }
 0x485   : > { %v5203_v3 = vadd.f32 %v5195_v48, %v5131_v14 }
 0x487   : > { %5211 = vst [vmem:[%s8536_s29 + $0x30] sm:$0xff] %v5203_v3 }
 0x488   : > { %v5172_v11 = vld [vmem:[#allocation4 + $0x70] ss:$2 sm:$0xff]  ;;  %v5180_v23 = vld [vmem:[#allocation4 + $0x71] ss:$2 sm:$0xff] }
 0x489   : > { %v5188_v44 = vadd.f32 %v5180_v23, %v5172_v11 }
 0x48b   : > { %v5196_v43 = vmul.f32 0.25, %v5188_v44 }
 0x48d   : > { %v5204_v42 = vadd.f32 %v5196_v43, %v5132_v18 }
 0x48f   : > { %5212 = vst [vmem:[%s8536_s29 + $0x38] sm:$0xff] %v5204_v42 }
 0x490   : > { %6999 = shalt.err (!%p6996_p4)
}
 0x491   : > { %s7000_s10 = scalar_lea.hbm %s8586_s13, 1024  ;;  %s7004_s15 = scalar_lea.hbm %s8640_s7, 2048 }
 0x492   : > { %p7001_p9 = scmp.ne.s32.totalorder %s8586_s13, %s7000_s10  ;;  %p7005_p8 = scmp.lt.u32.totalorder %s8586_s13, %s8640_s7 }
 0x493   : > { %p7006_p13 = scmp.lt.u32.totalorder %s7004_s15, %s7000_s10  ;;  %p7008_p10 = scmp.lt.u32.totalorder %s7000_s10, %s8586_s13 }
 0x494   : > { %p7002_p0 = pnand %p7001_p9, %p7269_p5 }
 0x495   : > { %p7007_p6 = por %p7006_p13, %p7005_p8 }
 0x496   : > { %p7003_p11 = pneg %p7002_p0 }
 0x497   : > { %p7009_p3 = por %p7008_p10, %p7007_p6 }
 0x499   : > { %p7010_p7 = pnand %p7009_p3, %p7003_p11 }
 0x49b   : > { %7013 = shalt.err (!%p7010_p7)
}
 0x49c   : > { %s7073_s17 = smov 128   ;;  %s7074_s16 = smov 8  }
 0x49d   : > { %6648 = dma.vmem_to_hbm [thread:$0]  (%p7269_p5), %s8588_s8, 1024, %s8586_s13, %s5214_s20, %s7073_s17, %s7073_s17, %s7074_s16  }
 0x49e PF: > { %s8660_s30 = sld [smem:[#allocation18_spill]]  ;;  %s5242_s28 = sand.u32 1, %s7048_s24  }
 0x49f   : > { %p8662_p1 = scmp.ge.s32.totalorder %s7060_s27, 2  ;;  %s5243_s9 = scalar_lea.sflag [#allocation7], %s5242_s28 }
 0x4a4   : > { %p8661_p12 = scmp.ne.s32.totalorder %s8660_s30, 0 }
 0x4a6   : > { %p6665_p2 = pnand %p8662_p1, %p8661_p12 }
 0x4a8   : > { %7043 = dma.done.wait (!%p6665_p2), %s5243_s9, 1024  }
 0x4a9   : > { %7045 = vsyncadd (!%p6665_p2), %s5243_s9, 4294966272  ;;  %p22_p4 = scmp.ge.s32.totalorder %s7255_s22, 4   ;;  %s8663_s24 = smov %s7052_s25 }
 0x4aa   : > { %s8664_s25 = smov %s7056_s26  ;;  %s8665_s26 = smov %s7265_s18 }
 0x4ab   : > { %s8666_s27 = smov %s7255_s22  ;;  %24 = sbr.rel (!%p22_p4) target bundleno = 7 (0x7), region = 122 }
 0x4b2   :  { %5248 = vsyncpa [#allocation6], 1 }
 0x4b3   :  { %5250 = vsyncpa [#allocation6 + $0x1], 1 }
 0x4b4   :  { %5251 = vsyncpa [#allocation9], 1 }
 0x4b5   :  { %5252 = vsyncpa [#allocation12], 1 }
 0x4b6   :  { %5253 = vsyncpa [#allocation7], 1 }
 0x4b7   :  { %5255 = vsyncpa [#allocation7 + $0x1], 1 }

</bundles_post_ra>
